<compile_context>
chip_gen: v7x
topology: tpu7x:2x2x1
jax: 0.10.0
libtpu: 0.0.40
codegen_flags: <defaults>
</compile_context>

<pallas_src>
import functools
import math

import numpy as np
import jax
import jax.numpy as jnp
from jax import lax
from jax.experimental import pallas as pl
from jax.experimental.pallas import tpu as pltpu

LN_EPS = 1e-5          # torch.nn.LayerNorm / GPT2 default epsilon
NEG_BIG = -1e30        # stand-in for finfo(f32).min used by GPT2 masking
OUT_W = 128            # lane-dense prediction-head output width (real cols sliced in wrapper)


# ----------------------------------------------------------------------------
# small in-kernel helpers (operate on 2-D f32 values)
# ----------------------------------------------------------------------------
def _gelu_new(x):
    # GPT2 "gelu_new" activation
    return 0.5 * x * (1.0 + jnp.tanh(
        math.sqrt(2.0 / math.pi) * (x + 0.044715 * x * x * x)))


def _ln2d(x, g, b):
    # x: (M, H) f32 ; g, b: (1, H) f32
    mu = jnp.mean(x, axis=-1, keepdims=True)
    var = jnp.mean(jnp.square(x - mu), axis=-1, keepdims=True)
    return (x - mu) * lax.rsqrt(var + LN_EPS) * g + b


# ----------------------------------------------------------------------------
# Fully fused forward kernel (one grid step per batch element).
# ----------------------------------------------------------------------------
def _fused_adt_kernel(mask_ref, xcat_ref, temb_ref, causal_ref, wpe_ref,
                      wbd_ref, bcat_ref, eg_ref, eb_ref,
                      ln1g_ref, ln1b_ref, wqkv_ref, bqkv_ref, wpr_ref, bpr_ref,
                      ln2g_ref, ln2b_ref, wfc_ref, bfc_ref, wmp_ref, bmp_ref,
                      lnfg_ref, lnfb_ref, w2_ref, b2_ref, w1_ref, b1_ref,
                      o_ref, *, n_layer, n_head, hidden, seq_t):
    H, T = hidden, seq_t
    S = 4 * T
    hd = H // n_head

    # ---- fused embedding: block-diag embed matmul + timestep emb + embed_ln + wpe ----
    y = jnp.dot(xcat_ref[0].astype(jnp.bfloat16), wbd_ref[...],
                preferred_element_type=jnp.float32) + bcat_ref[...]       # (T, 4H)
    te = temb_ref[0]                                                      # (T, H)
    eg, eb = eg_ref[...], eb_ref[...]
    wpe = wpe_ref[...]                                                    # (T, 4H)
    slots = []
    for j in range(4):            # slot order (return, state, action, adv_action)
        z = y[:, j * H:(j + 1) * H] + te
        z = _ln2d(z, eg, eb)                                              # embed_ln
        slots.append(z + wpe[:, j * H:(j + 1) * H])                       # GPT2 wpe
    # slot-grouped layout: row j*T + t <-> original interleaved position 4*t + j
    h = jnp.concatenate(slots, axis=0)                                    # (S, H) f32

    # ---- additive attention bias (causal over original positions + key padding) ----
    m = mask_ref[0]                                                       # (1, T)
    keypad = jnp.concatenate([m, m, m, m], axis=-1)                       # (1, S)
    bias = causal_ref[...] + (1.0 - keypad) * NEG_BIG                     # (S, S)

    # ---- GPT2 blocks: statically unrolled, all weights VMEM-resident ----
    for l in range(n_layer):
        x = _ln2d(h, ln1g_ref[l], ln1b_ref[l])
        qkv = jnp.dot(x.astype(jnp.bfloat16), wqkv_ref[l],
                      preferred_element_type=jnp.float32) + bqkv_ref[l]   # (S, 3H)
        wpr_l = wpr_ref[l]                                                # (H, H) bf16
        attn = jnp.zeros((S, H), jnp.float32)
        for hh in range(n_head):   # 1/sqrt(hd) pre-folded into q columns of wqkv/bqkv
            q = qkv[:, hh * hd:(hh + 1) * hd].astype(jnp.bfloat16)
            k = qkv[:, H + hh * hd:H + (hh + 1) * hd].astype(jnp.bfloat16)
            v = qkv[:, 2 * H + hh * hd:2 * H + (hh + 1) * hd].astype(jnp.bfloat16)
            s = lax.dot_general(q, k, (((1,), (1,)), ((), ())),
                                preferred_element_type=jnp.float32)       # (S, S) NT matmul
            s = s + bias
            s = s - jnp.max(s, axis=-1, keepdims=True)
            p = jnp.exp(s)
            p = p / jnp.sum(p, axis=-1, keepdims=True)                    # exact softmax
            o_h = jnp.dot(p.astype(jnp.bfloat16), v,
                          preferred_element_type=jnp.float32)             # (S, hd)
            # accumulate directly through this head's slice of the output projection
            attn = attn + jnp.dot(o_h.astype(jnp.bfloat16),
                                  wpr_l[hh * hd:(hh + 1) * hd, :],
                                  preferred_element_type=jnp.float32)
        h = h + attn + bpr_ref[l]                                         # attn residual

        x = _ln2d(h, ln2g_ref[l], ln2b_ref[l])
        mlp = jnp.dot(x.astype(jnp.bfloat16), wfc_ref[l],
                      preferred_element_type=jnp.float32) + bfc_ref[l]
        mlp = _gelu_new(mlp)
        mlp = jnp.dot(mlp.astype(jnp.bfloat16), wmp_ref[l],
                      preferred_element_type=jnp.float32) + bmp_ref[l]
        h = h + mlp                                                        # MLP residual

    # ---- ln_f + prediction heads, single lane-dense (T, OUT_W) store ----
    # state-token hidden (slot 1) -> predict_action(+tanh); action-token hidden (slot 2)
    # -> predict_return / predict_state (matches x[:,1] / x[:,2] in the PyTorch ref).
    z1 = _ln2d(h[T:2 * T, :], lnfg_ref[...], lnfb_ref[...]).astype(jnp.bfloat16)
    z2 = _ln2d(h[2 * T:3 * T, :], lnfg_ref[...], lnfb_ref[...]).astype(jnp.bfloat16)
    out = jnp.dot(z2, w2_ref[...], preferred_element_type=jnp.float32) + b2_ref[...]
    out = out + jnp.tanh(jnp.dot(z1, w1_ref[...],
                                 preferred_element_type=jnp.float32) + b1_ref[...])
    o_ref[0] = out.astype(o_ref.dtype)


# ----------------------------------------------------------------------------
# AdversarialDecisionTransformer forward (rtg_seq=True, action_tanh=True)
# ----------------------------------------------------------------------------
def adt_forward(prep, cfg, states, actions, adv_actions, rewards,
                returns_to_go, timesteps, attention_mask=None):
    del rewards  # unused in the reference forward
    B, T, _ = states.shape
    H = cfg["hidden_size"]
    sd, ad, aad = cfg["state_dim"], cfg["act_dim"], cfg["adv_act_dim"]
    L, nh = cfg["n_layer"], cfg["n_head"]
    S = 4 * T
    K = 1 + sd + ad + aad
    if attention_mask is None:
        attention_mask = jnp.ones((B, T), dtype=jnp.int32)

    # minimal per-call glue: embedding-table gather + input concat + mask cast
    time_emb = prep["embed_timestep"][timesteps]                          # (B, T, H)
    x_cat = jnp.concatenate([returns_to_go, states, actions, adv_actions],
                            axis=-1).astype(jnp.float32)                 # (B, T, K)
    mask3 = attention_mask.astype(jnp.float32).reshape(B, 1, T)
    wpe_rows = prep["wpe_rows"][:T]                                       # (T, 4H)

    # trace-time constant: causal bias over original interleaved positions (4t+j),
    # laid out for the slot-grouped row order (row = j*T + t) used inside the kernel.
    r = np.arange(S)
    pos = 4 * (r % T) + r // T
    causal_bias = jnp.asarray(
        np.where(pos[None, :] <= pos[:, None], 0.0, NEG_BIG).astype(np.float32))

    def full(arr):
        nd = arr.ndim
        return pl.BlockSpec(arr.shape, lambda b, _n=nd: (0,) * _n)

    flops = B * (2 * T * K * 4 * H
                 + L * (2 * S * H * 3 * H      # qkv
                        + 4 * S * S * H        # scores + p@v (all heads)
                        + 2 * S * H * H        # attn proj
                        + 4 * S * H * 4 * H)   # fc + mlp proj
                 + 2 * 2 * T * H * OUT_W)      # heads
    transcend = B * (L * (nh * S * S + S * 4 * H) + T * OUT_W)
    bytes_acc = 4 * (B * (T * K + T * H + T + T * OUT_W) + S * S
                     + 13 * L * H * H + 20 * L * H + 2 * H * OUT_W + 10 * H)

    out = pl.pallas_call(
        functools.partial(_fused_adt_kernel, n_layer=L, n_head=nh,
                          hidden=H, seq_t=T),
        out_shape=jax.ShapeDtypeStruct((B, T, OUT_W), jnp.float32),
        grid=(B,),
        in_specs=[
            pl.BlockSpec((1, 1, T), lambda b: (b, 0, 0)),   # padding mask
            pl.BlockSpec((1, T, K), lambda b: (b, 0, 0)),   # concatenated raw inputs
            pl.BlockSpec((1, T, H), lambda b: (b, 0, 0)),   # timestep embeddings
            full(causal_bias), full(wpe_rows),
            full(prep["w_bd"]), full(prep["b_cat"]),
            full(prep["eln_g"]), full(prep["eln_b"]),
            full(prep["ln1_g"]), full(prep["ln1_b"]),
            full(prep["wqkv"]), full(prep["bqkv"]),
            full(prep["wpr"]), full(prep["bpr"]),
            full(prep["ln2_g"]), full(prep["ln2_b"]),
            full(prep["wfc"]), full(prep["bfc"]),
            full(prep["wmp"]), full(prep["bmp"]),
            full(prep["lnf_g"]), full(prep["lnf_b"]),
            full(prep["w_head2"]), full(prep["b_head2"]),
            full(prep["w_head1"]), full(prep["b_head1"]),
        ],
        out_specs=pl.BlockSpec((1, T, OUT_W), lambda b: (b, 0, 0)),
        compiler_params=pltpu.CompilerParams(dimension_semantics=("parallel",)),
        cost_estimate=pl.CostEstimate(flops=flops, transcendentals=transcend,
                                      bytes_accessed=bytes_acc),
    )(mask3, x_cat, time_emb, causal_bias, wpe_rows,
      prep["w_bd"], prep["b_cat"], prep["eln_g"], prep["eln_b"],
      prep["ln1_g"], prep["ln1_b"], prep["wqkv"], prep["bqkv"],
      prep["wpr"], prep["bpr"], prep["ln2_g"], prep["ln2_b"],
      prep["wfc"], prep["bfc"], prep["wmp"], prep["bmp"],
      prep["lnf_g"], prep["lnf_b"],
      prep["w_head2"], prep["b_head2"], prep["w_head1"], prep["b_head1"])

    return_preds = out[:, :, 0:1]
    state_preds = out[:, :, 1:1 + sd]
    action_preds = out[:, :, 1 + sd:1 + sd + ad]
    return state_preds, action_preds, return_preds, None, None


# ----------------------------------------------------------------------------
# Deterministic parameter init (synthetic, matches module shapes).
# Linear weights stored (in, out); biases / LN params stored as (1, N).
# ----------------------------------------------------------------------------
def init_params(key, cfg):
    H = cfg["hidden_size"]
    counter = iter(range(1_000_000))

    def nk():
        return jax.random.fold_in(key, next(counter))

    def dense(fan_in, fan_out):
        return {"w": 0.02 * jax.random.normal(nk(), (fan_in, fan_out), jnp.float32),
                "b": jnp.zeros((1, fan_out), jnp.float32)}

    p = {
        "embed_timestep": 0.02 * jax.random.normal(nk(), (cfg["max_ep_len"], H), jnp.float32),
        "wpe": 0.02 * jax.random.normal(nk(), (cfg["n_positions"], H), jnp.float32),
        "embed_return": dense(1, H),
        "embed_state": dense(cfg["state_dim"], H),
        "embed_action": dense(cfg["act_dim"], H),
        "embed_adv_action": dense(cfg["adv_act_dim"], H),
        "embed_ln_g": jnp.ones((1, H), jnp.float32),
        "embed_ln_b": jnp.zeros((1, H), jnp.float32),
        "lnf_g": jnp.ones((1, H), jnp.float32),
        "lnf_b": jnp.zeros((1, H), jnp.float32),
        "blocks": [],
    }
    for _ in range(cfg["n_layer"]):
        p["blocks"].append({
            "ln1_g": jnp.ones((1, H), jnp.float32), "ln1_b": jnp.zeros((1, H), jnp.float32),
            "attn": dense(H, 3 * H),
            "attn_proj": dense(H, H),
            "ln2_g": jnp.ones((1, H), jnp.float32), "ln2_b": jnp.zeros((1, H), jnp.float32),
            "fc": dense(H, 4 * H),
            "mlp_proj": dense(4 * H, H),
        })
    p["predict_state"] = dense(H, cfg["state_dim"])
    p["predict_action"] = dense(H, cfg["act_dim"])
    p["predict_return"] = dense(H, 1)
    return p


# ----------------------------------------------------------------------------
# One-time parameter preparation (outside the jitted forward):
#   * block-diagonal embed weight / concatenated bias
#   * wpe rows laid out per (timestep, slot)
#   * 1/sqrt(head_dim) folded into the q columns of wqkv / bqkv
#   * per-layer weights stacked with a leading layer axis
#   * prediction-head weights padded to a lane-dense OUT_W output
#   * matmul weights cast to bf16 (biases / LN params stay f32)
# ----------------------------------------------------------------------------
def prepare_params(params, cfg):
    H = cfg["hidden_size"]
    sd, ad, aad = cfg["state_dim"], cfg["act_dim"], cfg["adv_act_dim"]
    nh = cfg["n_head"]
    hd = H // nh
    scale = 1.0 / math.sqrt(hd)
    assert 1 + sd + ad <= OUT_W

    bf = lambda a: a.astype(jnp.bfloat16)

    # block-diagonal embedding weight (slot order: return, state, action, adv)
    K = 1 + sd + ad + aad
    w_bd = jnp.zeros((K, 4 * H), jnp.float32)
    w_bd = w_bd.at[0:1, 0:H].set(params["embed_return"]["w"])
    w_bd = w_bd.at[1:1 + sd, H:2 * H].set(params["embed_state"]["w"])
    w_bd = w_bd.at[1 + sd:1 + sd + ad, 2 * H:3 * H].set(params["embed_action"]["w"])
    w_bd = w_bd.at[1 + sd + ad:, 3 * H:].set(params["embed_adv_action"]["w"])
    b_cat = jnp.concatenate(
        [params["embed_return"]["b"], params["embed_state"]["b"],
         params["embed_action"]["b"], params["embed_adv_action"]["b"]], axis=-1)

    # wpe rows: column block j of row t holds wpe[4t + j]
    t_max = params["wpe"].shape[0] // 4
    wpe_rows = params["wpe"][:4 * t_max].reshape(t_max, 4 * H)

    # stacked per-layer weights; fold attention scale into q columns
    ln1_g, ln1_b, wqkv, bqkv, wpr, bpr = [], [], [], [], [], []
    ln2_g, ln2_b, wfc, bfc, wmp, bmp = [], [], [], [], [], []
    for blk in params["blocks"]:
        ln1_g.append(blk["ln1_g"]); ln1_b.append(blk["ln1_b"])
        wq = blk["attn"]["w"].at[:, :H].multiply(scale)
        bq = blk["attn"]["b"].at[:, :H].multiply(scale)
        wqkv.append(wq); bqkv.append(bq)
        wpr.append(blk["attn_proj"]["w"]); bpr.append(blk["attn_proj"]["b"])
        ln2_g.append(blk["ln2_g"]); ln2_b.append(blk["ln2_b"])
        wfc.append(blk["fc"]["w"]); bfc.append(blk["fc"]["b"])
        wmp.append(blk["mlp_proj"]["w"]); bmp.append(blk["mlp_proj"]["b"])

    # lane-dense padded prediction-head weights
    w2 = jnp.zeros((H, OUT_W), jnp.float32)
    w2 = w2.at[:, 0:1].set(params["predict_return"]["w"])
    w2 = w2.at[:, 1:1 + sd].set(params["predict_state"]["w"])
    b2 = jnp.zeros((1, OUT_W), jnp.float32)
    b2 = b2.at[:, 0:1].set(params["predict_return"]["b"])
    b2 = b2.at[:, 1:1 + sd].set(params["predict_state"]["b"])
    w1 = jnp.zeros((H, OUT_W), jnp.float32).at[:, 1 + sd:1 + sd + ad].set(
        params["predict_action"]["w"])
    b1 = jnp.zeros((1, OUT_W), jnp.float32).at[:, 1 + sd:1 + sd + ad].set(
        params["predict_action"]["b"])

    return {
        "embed_timestep": params["embed_timestep"],
        "wpe_rows": wpe_rows,
        "w_bd": bf(w_bd), "b_cat": b_cat,
        "eln_g": params["embed_ln_g"], "eln_b": params["embed_ln_b"],
        "ln1_g": jnp.stack(ln1_g), "ln1_b": jnp.stack(ln1_b),
        "wqkv": bf(jnp.stack(wqkv)), "bqkv": jnp.stack(bqkv),
        "wpr": bf(jnp.stack(wpr)), "bpr": jnp.stack(bpr),
        "ln2_g": jnp.stack(ln2_g), "ln2_b": jnp.stack(ln2_b),
        "wfc": bf(jnp.stack(wfc)), "bfc": jnp.stack(bfc),
        "wmp": bf(jnp.stack(wmp)), "bmp": jnp.stack(bmp),
        "lnf_g": params["lnf_g"], "lnf_b": params["lnf_b"],
        "w_head2": bf(w2), "b_head2": b2,
        "w_head1": bf(w1), "b_head1": b1,
    }


# ----------------------------------------------------------------------------
if __name__ == "__main__":
    cfg = dict(
        state_dim=11, act_dim=3, adv_act_dim=3,
        hidden_size=32, n_layer=2, n_head=2,
        max_ep_len=64, n_positions=128,
    )
    B, T = 2, 8

    root = jax.random.PRNGKey(0)
    kp, ks, ka, kadv, kr, krtg, kt = jax.random.split(root, 7)

    params = init_params(kp, cfg)
    prep = prepare_params(params, cfg)          # one-time weight preprocessing

    states = jax.random.normal(ks, (B, T, cfg["state_dim"]), jnp.float32)
    actions = jax.random.normal(ka, (B, T, cfg["act_dim"]), jnp.float32)
    adv_actions = jax.random.normal(kadv, (B, T, cfg["adv_act_dim"]), jnp.float32)
    rewards = jax.random.normal(kr, (B, T, 1), jnp.float32)
    returns_to_go = jax.random.normal(krtg, (B, T, 1), jnp.float32)
    timesteps = jax.random.randint(kt, (B, T), 0, cfg["max_ep_len"], jnp.int32)

    fwd = jax.jit(functools.partial(adt_forward, prep, cfg))
    state_preds, action_preds, return_preds, _, _ = fwd(
        states, actions, adv_actions, rewards, returns_to_go, timesteps)

    jax.block_until_ready((state_preds, action_preds, return_preds))

    assert state_preds.shape == (B, T, cfg["state_dim"])
    assert action_preds.shape == (B, T, cfg["act_dim"])
    assert return_preds.shape == (B, T, 1)
    assert bool(jnp.all(jnp.isfinite(state_preds)))
    assert bool(jnp.all(jnp.isfinite(return_preds)))
    assert bool(jnp.all(jnp.abs(action_preds) <= 1.0))  # tanh head

    print("KERNEL_OK")
</pallas_src>

<mosaic_0001>
module attributes {stable_mosaic.version = 11 : i64} {
  func.func @_fused_adt_kernel(%arg0: i32, %arg1: memref<1x1x8xf32, #tpu.memory_space<vmem>>, %arg2: memref<1x8x18xf32, #tpu.memory_space<vmem>>, %arg3: memref<1x8x32xf32, #tpu.memory_space<vmem>>, %arg4: memref<32x32xf32, #tpu.memory_space<vmem>>, %arg5: memref<8x128xf32, #tpu.memory_space<vmem>>, %arg6: memref<18x128xbf16, #tpu.memory_space<vmem>>, %arg7: memref<1x128xf32, #tpu.memory_space<vmem>>, %arg8: memref<1x32xf32, #tpu.memory_space<vmem>>, %arg9: memref<1x32xf32, #tpu.memory_space<vmem>>, %arg10: memref<2x1x32xf32, #tpu.memory_space<vmem>>, %arg11: memref<2x1x32xf32, #tpu.memory_space<vmem>>, %arg12: memref<2x32x96xbf16, #tpu.memory_space<vmem>>, %arg13: memref<2x1x96xf32, #tpu.memory_space<vmem>>, %arg14: memref<2x32x32xbf16, #tpu.memory_space<vmem>>, %arg15: memref<2x1x32xf32, #tpu.memory_space<vmem>>, %arg16: memref<2x1x32xf32, #tpu.memory_space<vmem>>, %arg17: memref<2x1x32xf32, #tpu.memory_space<vmem>>, %arg18: memref<2x32x128xbf16, #tpu.memory_space<vmem>>, %arg19: memref<2x1x128xf32, #tpu.memory_space<vmem>>, %arg20: memref<2x128x32xbf16, #tpu.memory_space<vmem>>, %arg21: memref<2x1x32xf32, #tpu.memory_space<vmem>>, %arg22: memref<1x32xf32, #tpu.memory_space<vmem>>, %arg23: memref<1x32xf32, #tpu.memory_space<vmem>>, %arg24: memref<32x128xbf16, #tpu.memory_space<vmem>>, %arg25: memref<1x128xf32, #tpu.memory_space<vmem>>, %arg26: memref<32x128xbf16, #tpu.memory_space<vmem>>, %arg27: memref<1x128xf32, #tpu.memory_space<vmem>>, %arg28: memref<1x8x128xf32, #tpu.memory_space<vmem>>) attributes {dimension_semantics = [#tpu.dimension_semantics<parallel>], iteration_bounds = array<i64: 2>, scalar_prefetch = 0 : i64, scratch_operands = 0 : i64, tpu.core_type = #tpu.core_type<tc>, window_params = [{transform_indices = @transform_0, window_bounds = array<i64: 1, 1, 8>}, {transform_indices = @transform_1, window_bounds = array<i64: 1, 8, 18>}, {transform_indices = @transform_2, window_bounds = array<i64: 1, 8, 32>}, {pipeline_mode = #tpu.pipeline_mode<synchronous>, transform_indices = @transform_3, window_bounds = array<i64: 32, 32>}, {pipeline_mode = #tpu.pipeline_mode<synchronous>, transform_indices = @transform_4, window_bounds = array<i64: 8, 128>}, {pipeline_mode = #tpu.pipeline_mode<synchronous>, transform_indices = @transform_5, window_bounds = array<i64: 18, 128>}, {pipeline_mode = #tpu.pipeline_mode<synchronous>, transform_indices = @transform_6, window_bounds = array<i64: 1, 128>}, {pipeline_mode = #tpu.pipeline_mode<synchronous>, transform_indices = @transform_7, window_bounds = array<i64: 1, 32>}, {pipeline_mode = #tpu.pipeline_mode<synchronous>, transform_indices = @transform_8, window_bounds = array<i64: 1, 32>}, {pipeline_mode = #tpu.pipeline_mode<synchronous>, transform_indices = @transform_9, window_bounds = array<i64: 2, 1, 32>}, {pipeline_mode = #tpu.pipeline_mode<synchronous>, transform_indices = @transform_10, window_bounds = array<i64: 2, 1, 32>}, {pipeline_mode = #tpu.pipeline_mode<synchronous>, transform_indices = @transform_11, window_bounds = array<i64: 2, 32, 96>}, {pipeline_mode = #tpu.pipeline_mode<synchronous>, transform_indices = @transform_12, window_bounds = array<i64: 2, 1, 96>}, {pipeline_mode = #tpu.pipeline_mode<synchronous>, transform_indices = @transform_13, window_bounds = array<i64: 2, 32, 32>}, {pipeline_mode = #tpu.pipeline_mode<synchronous>, transform_indices = @transform_14, window_bounds = array<i64: 2, 1, 32>}, {pipeline_mode = #tpu.pipeline_mode<synchronous>, transform_indices = @transform_15, window_bounds = array<i64: 2, 1, 32>}, {pipeline_mode = #tpu.pipeline_mode<synchronous>, transform_indices = @transform_16, window_bounds = array<i64: 2, 1, 32>}, {pipeline_mode = #tpu.pipeline_mode<synchronous>, transform_indices = @transform_17, window_bounds = array<i64: 2, 32, 128>}, {pipeline_mode = #tpu.pipeline_mode<synchronous>, transform_indices = @transform_18, window_bounds = array<i64: 2, 1, 128>}, {pipeline_mode = #tpu.pipeline_mode<synchronous>, transform_indices = @transform_19, window_bounds = array<i64: 2, 128, 32>}, {pipeline_mode = #tpu.pipeline_mode<synchronous>, transform_indices = @transform_20, window_bounds = array<i64: 2, 1, 32>}, {pipeline_mode = #tpu.pipeline_mode<synchronous>, transform_indices = @transform_21, window_bounds = array<i64: 1, 32>}, {pipeline_mode = #tpu.pipeline_mode<synchronous>, transform_indices = @transform_22, window_bounds = array<i64: 1, 32>}, {pipeline_mode = #tpu.pipeline_mode<synchronous>, transform_indices = @transform_23, window_bounds = array<i64: 32, 128>}, {pipeline_mode = #tpu.pipeline_mode<synchronous>, transform_indices = @transform_24, window_bounds = array<i64: 1, 128>}, {pipeline_mode = #tpu.pipeline_mode<synchronous>, transform_indices = @transform_25, window_bounds = array<i64: 32, 128>}, {pipeline_mode = #tpu.pipeline_mode<synchronous>, transform_indices = @transform_26, window_bounds = array<i64: 1, 128>}, {transform_indices = @transform_27, window_bounds = array<i64: 1, 8, 128>}]} {
    %c0 = arith.constant 0 : index
    %c0_0 = arith.constant 0 : index
    %c0_1 = arith.constant 0 : index
    %0 = vector.load %arg2[%c0, %c0_0, %c0_1] : memref<1x8x18xf32, #tpu.memory_space<vmem>>, vector<1x8x18xf32>
    %1 = vector.shape_cast %0 : vector<1x8x18xf32> to vector<8x18xf32>
    %2 = arith.truncf %1 : vector<8x18xf32> to vector<8x18xbf16>
    %c0_2 = arith.constant 0 : index
    %c0_3 = arith.constant 0 : index
    %3 = vector.load %arg6[%c0_2, %c0_3] : memref<18x128xbf16, #tpu.memory_space<vmem>>, vector<18x128xbf16>
    %cst = arith.constant dense<0.000000e+00> : vector<8x128xf32>
    %4 = tpu.matmul %2, %3, %cst {dimension_numbers = #tpu.dot_dimension_numbers<[1], [0], [0], [1], [0, 0, 1, 1], [], []>} : vector<8x18xbf16>, vector<18x128xbf16>, vector<8x128xf32> -> vector<8x128xf32>
    %c0_4 = arith.constant 0 : index
    %c0_5 = arith.constant 0 : index
    %5 = vector.load %arg7[%c0_4, %c0_5] : memref<1x128xf32, #tpu.memory_space<vmem>>, vector<1x128xf32>
    %6 = vector.broadcast %5 : vector<1x128xf32> to vector<8x128xf32>
    %7 = arith.addf %4, %6 : vector<8x128xf32>
    %c0_6 = arith.constant 0 : index
    %c0_7 = arith.constant 0 : index
    %c0_8 = arith.constant 0 : index
    %8 = vector.load %arg3[%c0_6, %c0_7, %c0_8] : memref<1x8x32xf32, #tpu.memory_space<vmem>>, vector<1x8x32xf32>
    %9 = vector.shape_cast %8 : vector<1x8x32xf32> to vector<8x32xf32>
    %c0_9 = arith.constant 0 : index
    %c0_10 = arith.constant 0 : index
    %10 = vector.load %arg8[%c0_9, %c0_10] : memref<1x32xf32, #tpu.memory_space<vmem>>, vector<1x32xf32>
    %c0_11 = arith.constant 0 : index
    %c0_12 = arith.constant 0 : index
    %11 = vector.load %arg9[%c0_11, %c0_12] : memref<1x32xf32, #tpu.memory_space<vmem>>, vector<1x32xf32>
    %c0_13 = arith.constant 0 : index
    %c0_14 = arith.constant 0 : index
    %12 = vector.load %arg5[%c0_13, %c0_14] : memref<8x128xf32, #tpu.memory_space<vmem>>, vector<8x128xf32>
    %13 = vector.extract_strided_slice %7 {offsets = [0, 0], sizes = [8, 32], strides = [1, 1]} : vector<8x128xf32> to vector<8x32xf32>
    %14 = arith.addf %13, %9 : vector<8x32xf32>
    %cst_15 = arith.constant dense<0.000000e+00> : vector<8xf32>
    %15 = vector.multi_reduction <add>, %14, %cst_15 [1] : vector<8x32xf32> to vector<8xf32>
    %16 = vector.shape_cast %15 : vector<8xf32> to vector<8x1xf32>
    %cst_16 = arith.constant 3.200000e+01 : f32
    %17 = vector.broadcast %cst_16 : f32 to vector<8x1xf32>
    %18 = arith.divf %16, %17 : vector<8x1xf32>
    %19 = vector.broadcast %18 : vector<8x1xf32> to vector<8x32xf32>
    %20 = arith.subf %14, %19 : vector<8x32xf32>
    %21 = arith.mulf %20, %20 : vector<8x32xf32>
    %cst_17 = arith.constant dense<0.000000e+00> : vector<8xf32>
    %22 = vector.multi_reduction <add>, %21, %cst_17 [1] : vector<8x32xf32> to vector<8xf32>
    %23 = vector.shape_cast %22 : vector<8xf32> to vector<8x1xf32>
    %cst_18 = arith.constant 3.200000e+01 : f32
    %24 = vector.broadcast %cst_18 : f32 to vector<8x1xf32>
    %25 = arith.divf %23, %24 : vector<8x1xf32>
    %26 = vector.broadcast %18 : vector<8x1xf32> to vector<8x32xf32>
    %27 = arith.subf %14, %26 : vector<8x32xf32>
    %cst_19 = arith.constant 9.99999974E-6 : f32
    %28 = vector.broadcast %cst_19 : f32 to vector<8x1xf32>
    %29 = arith.addf %25, %28 : vector<8x1xf32>
    %30 = math.rsqrt %29 : vector<8x1xf32>
    %31 = vector.broadcast %30 : vector<8x1xf32> to vector<8x32xf32>
    %32 = arith.mulf %27, %31 : vector<8x32xf32>
    %33 = vector.broadcast %10 : vector<1x32xf32> to vector<8x32xf32>
    %34 = arith.mulf %32, %33 : vector<8x32xf32>
    %35 = vector.broadcast %11 : vector<1x32xf32> to vector<8x32xf32>
    %36 = arith.addf %34, %35 : vector<8x32xf32>
    %37 = vector.extract_strided_slice %12 {offsets = [0, 0], sizes = [8, 32], strides = [1, 1]} : vector<8x128xf32> to vector<8x32xf32>
    %38 = arith.addf %36, %37 : vector<8x32xf32>
    %39 = vector.extract_strided_slice %7 {offsets = [0, 32], sizes = [8, 32], strides = [1, 1]} : vector<8x128xf32> to vector<8x32xf32>
    %40 = arith.addf %39, %9 : vector<8x32xf32>
    %cst_20 = arith.constant dense<0.000000e+00> : vector<8xf32>
    %41 = vector.multi_reduction <add>, %40, %cst_20 [1] : vector<8x32xf32> to vector<8xf32>
    %42 = vector.shape_cast %41 : vector<8xf32> to vector<8x1xf32>
    %cst_21 = arith.constant 3.200000e+01 : f32
    %43 = vector.broadcast %cst_21 : f32 to vector<8x1xf32>
    %44 = arith.divf %42, %43 : vector<8x1xf32>
    %45 = vector.broadcast %44 : vector<8x1xf32> to vector<8x32xf32>
    %46 = arith.subf %40, %45 : vector<8x32xf32>
    %47 = arith.mulf %46, %46 : vector<8x32xf32>
    %cst_22 = arith.constant dense<0.000000e+00> : vector<8xf32>
    %48 = vector.multi_reduction <add>, %47, %cst_22 [1] : vector<8x32xf32> to vector<8xf32>
    %49 = vector.shape_cast %48 : vector<8xf32> to vector<8x1xf32>
    %cst_23 = arith.constant 3.200000e+01 : f32
    %50 = vector.broadcast %cst_23 : f32 to vector<8x1xf32>
    %51 = arith.divf %49, %50 : vector<8x1xf32>
    %52 = vector.broadcast %44 : vector<8x1xf32> to vector<8x32xf32>
    %53 = arith.subf %40, %52 : vector<8x32xf32>
    %cst_24 = arith.constant 9.99999974E-6 : f32
    %54 = vector.broadcast %cst_24 : f32 to vector<8x1xf32>
    %55 = arith.addf %51, %54 : vector<8x1xf32>
    %56 = math.rsqrt %55 : vector<8x1xf32>
    %57 = vector.broadcast %56 : vector<8x1xf32> to vector<8x32xf32>
    %58 = arith.mulf %53, %57 : vector<8x32xf32>
    %59 = vector.broadcast %10 : vector<1x32xf32> to vector<8x32xf32>
    %60 = arith.mulf %58, %59 : vector<8x32xf32>
    %61 = vector.broadcast %11 : vector<1x32xf32> to vector<8x32xf32>
    %62 = arith.addf %60, %61 : vector<8x32xf32>
    %63 = vector.extract_strided_slice %12 {offsets = [0, 32], sizes = [8, 32], strides = [1, 1]} : vector<8x128xf32> to vector<8x32xf32>
    %64 = arith.addf %62, %63 : vector<8x32xf32>
    %65 = vector.extract_strided_slice %7 {offsets = [0, 64], sizes = [8, 32], strides = [1, 1]} : vector<8x128xf32> to vector<8x32xf32>
    %66 = arith.addf %65, %9 : vector<8x32xf32>
    %cst_25 = arith.constant dense<0.000000e+00> : vector<8xf32>
    %67 = vector.multi_reduction <add>, %66, %cst_25 [1] : vector<8x32xf32> to vector<8xf32>
    %68 = vector.shape_cast %67 : vector<8xf32> to vector<8x1xf32>
    %cst_26 = arith.constant 3.200000e+01 : f32
    %69 = vector.broadcast %cst_26 : f32 to vector<8x1xf32>
    %70 = arith.divf %68, %69 : vector<8x1xf32>
    %71 = vector.broadcast %70 : vector<8x1xf32> to vector<8x32xf32>
    %72 = arith.subf %66, %71 : vector<8x32xf32>
    %73 = arith.mulf %72, %72 : vector<8x32xf32>
    %cst_27 = arith.constant dense<0.000000e+00> : vector<8xf32>
    %74 = vector.multi_reduction <add>, %73, %cst_27 [1] : vector<8x32xf32> to vector<8xf32>
    %75 = vector.shape_cast %74 : vector<8xf32> to vector<8x1xf32>
    %cst_28 = arith.constant 3.200000e+01 : f32
    %76 = vector.broadcast %cst_28 : f32 to vector<8x1xf32>
    %77 = arith.divf %75, %76 : vector<8x1xf32>
    %78 = vector.broadcast %70 : vector<8x1xf32> to vector<8x32xf32>
    %79 = arith.subf %66, %78 : vector<8x32xf32>
    %cst_29 = arith.constant 9.99999974E-6 : f32
    %80 = vector.broadcast %cst_29 : f32 to vector<8x1xf32>
    %81 = arith.addf %77, %80 : vector<8x1xf32>
    %82 = math.rsqrt %81 : vector<8x1xf32>
    %83 = vector.broadcast %82 : vector<8x1xf32> to vector<8x32xf32>
    %84 = arith.mulf %79, %83 : vector<8x32xf32>
    %85 = vector.broadcast %10 : vector<1x32xf32> to vector<8x32xf32>
    %86 = arith.mulf %84, %85 : vector<8x32xf32>
    %87 = vector.broadcast %11 : vector<1x32xf32> to vector<8x32xf32>
    %88 = arith.addf %86, %87 : vector<8x32xf32>
    %89 = vector.extract_strided_slice %12 {offsets = [0, 64], sizes = [8, 32], strides = [1, 1]} : vector<8x128xf32> to vector<8x32xf32>
    %90 = arith.addf %88, %89 : vector<8x32xf32>
    %91 = vector.extract_strided_slice %7 {offsets = [0, 96], sizes = [8, 32], strides = [1, 1]} : vector<8x128xf32> to vector<8x32xf32>
    %92 = arith.addf %91, %9 : vector<8x32xf32>
    %cst_30 = arith.constant dense<0.000000e+00> : vector<8xf32>
    %93 = vector.multi_reduction <add>, %92, %cst_30 [1] : vector<8x32xf32> to vector<8xf32>
    %94 = vector.shape_cast %93 : vector<8xf32> to vector<8x1xf32>
    %cst_31 = arith.constant 3.200000e+01 : f32
    %95 = vector.broadcast %cst_31 : f32 to vector<8x1xf32>
    %96 = arith.divf %94, %95 : vector<8x1xf32>
    %97 = vector.broadcast %96 : vector<8x1xf32> to vector<8x32xf32>
    %98 = arith.subf %92, %97 : vector<8x32xf32>
    %99 = arith.mulf %98, %98 : vector<8x32xf32>
    %cst_32 = arith.constant dense<0.000000e+00> : vector<8xf32>
    %100 = vector.multi_reduction <add>, %99, %cst_32 [1] : vector<8x32xf32> to vector<8xf32>
    %101 = vector.shape_cast %100 : vector<8xf32> to vector<8x1xf32>
    %cst_33 = arith.constant 3.200000e+01 : f32
    %102 = vector.broadcast %cst_33 : f32 to vector<8x1xf32>
    %103 = arith.divf %101, %102 : vector<8x1xf32>
    %104 = vector.broadcast %96 : vector<8x1xf32> to vector<8x32xf32>
    %105 = arith.subf %92, %104 : vector<8x32xf32>
    %cst_34 = arith.constant 9.99999974E-6 : f32
    %106 = vector.broadcast %cst_34 : f32 to vector<8x1xf32>
    %107 = arith.addf %103, %106 : vector<8x1xf32>
    %108 = math.rsqrt %107 : vector<8x1xf32>
    %109 = vector.broadcast %108 : vector<8x1xf32> to vector<8x32xf32>
    %110 = arith.mulf %105, %109 : vector<8x32xf32>
    %111 = vector.broadcast %10 : vector<1x32xf32> to vector<8x32xf32>
    %112 = arith.mulf %110, %111 : vector<8x32xf32>
    %113 = vector.broadcast %11 : vector<1x32xf32> to vector<8x32xf32>
    %114 = arith.addf %112, %113 : vector<8x32xf32>
    %115 = vector.extract_strided_slice %12 {offsets = [0, 96], sizes = [8, 32], strides = [1, 1]} : vector<8x128xf32> to vector<8x32xf32>
    %116 = arith.addf %114, %115 : vector<8x32xf32>
    %117 = tpu.concatenate %38, %64, %90, %116 in 0 : vector<8x32xf32>, vector<8x32xf32>, vector<8x32xf32>, vector<8x32xf32> -> vector<32x32xf32>
    %c0_35 = arith.constant 0 : index
    %c0_36 = arith.constant 0 : index
    %c0_37 = arith.constant 0 : index
    %118 = vector.load %arg1[%c0_35, %c0_36, %c0_37] : memref<1x1x8xf32, #tpu.memory_space<vmem>>, vector<1x1x8xf32>
    %119 = vector.shape_cast %118 : vector<1x1x8xf32> to vector<1x8xf32>
    %120 = tpu.concatenate %119, %119, %119, %119 in 1 : vector<1x8xf32>, vector<1x8xf32>, vector<1x8xf32>, vector<1x8xf32> -> vector<1x32xf32>
    %c0_38 = arith.constant 0 : index
    %c0_39 = arith.constant 0 : index
    %121 = vector.load %arg4[%c0_38, %c0_39] : memref<32x32xf32, #tpu.memory_space<vmem>>, vector<32x32xf32>
    %cst_40 = arith.constant 1.000000e+00 : f32
    %122 = vector.broadcast %cst_40 : f32 to vector<1x32xf32>
    %123 = arith.subf %122, %120 : vector<1x32xf32>
    %cst_41 = arith.constant -1.000000e+30 : f32
    %124 = vector.broadcast %cst_41 : f32 to vector<1x32xf32>
    %125 = arith.mulf %123, %124 : vector<1x32xf32>
    %126 = vector.broadcast %125 : vector<1x32xf32> to vector<32x32xf32>
    %127 = arith.addf %121, %126 : vector<32x32xf32>
    %c0_42 = arith.constant 0 : index
    %c0_43 = arith.constant 0 : index
    %c0_44 = arith.constant 0 : index
    %128 = vector.load %arg10[%c0_42, %c0_43, %c0_44] : memref<2x1x32xf32, #tpu.memory_space<vmem>>, vector<1x1x32xf32>
    %129 = vector.shape_cast %128 : vector<1x1x32xf32> to vector<1x32xf32>
    %c0_45 = arith.constant 0 : index
    %c0_46 = arith.constant 0 : index
    %c0_47 = arith.constant 0 : index
    %130 = vector.load %arg11[%c0_45, %c0_46, %c0_47] : memref<2x1x32xf32, #tpu.memory_space<vmem>>, vector<1x1x32xf32>
    %131 = vector.shape_cast %130 : vector<1x1x32xf32> to vector<1x32xf32>
    %cst_48 = arith.constant dense<0.000000e+00> : vector<32xf32>
    %132 = vector.multi_reduction <add>, %117, %cst_48 [1] : vector<32x32xf32> to vector<32xf32>
    %133 = vector.shape_cast %132 : vector<32xf32> to vector<32x1xf32>
    %cst_49 = arith.constant 3.200000e+01 : f32
    %134 = vector.broadcast %cst_49 : f32 to vector<32x1xf32>
    %135 = arith.divf %133, %134 : vector<32x1xf32>
    %136 = vector.broadcast %135 : vector<32x1xf32> to vector<32x32xf32>
    %137 = arith.subf %117, %136 : vector<32x32xf32>
    %138 = arith.mulf %137, %137 : vector<32x32xf32>
    %cst_50 = arith.constant dense<0.000000e+00> : vector<32xf32>
    %139 = vector.multi_reduction <add>, %138, %cst_50 [1] : vector<32x32xf32> to vector<32xf32>
    %140 = vector.shape_cast %139 : vector<32xf32> to vector<32x1xf32>
    %cst_51 = arith.constant 3.200000e+01 : f32
    %141 = vector.broadcast %cst_51 : f32 to vector<32x1xf32>
    %142 = arith.divf %140, %141 : vector<32x1xf32>
    %143 = vector.broadcast %135 : vector<32x1xf32> to vector<32x32xf32>
    %144 = arith.subf %117, %143 : vector<32x32xf32>
    %cst_52 = arith.constant 9.99999974E-6 : f32
    %145 = vector.broadcast %cst_52 : f32 to vector<32x1xf32>
    %146 = arith.addf %142, %145 : vector<32x1xf32>
    %147 = math.rsqrt %146 : vector<32x1xf32>
    %148 = vector.broadcast %147 : vector<32x1xf32> to vector<32x32xf32>
    %149 = arith.mulf %144, %148 : vector<32x32xf32>
    %150 = vector.broadcast %129 : vector<1x32xf32> to vector<32x32xf32>
    %151 = arith.mulf %149, %150 : vector<32x32xf32>
    %152 = vector.broadcast %131 : vector<1x32xf32> to vector<32x32xf32>
    %153 = arith.addf %151, %152 : vector<32x32xf32>
    %154 = arith.truncf %153 : vector<32x32xf32> to vector<32x32xbf16>
    %c0_53 = arith.constant 0 : index
    %c0_54 = arith.constant 0 : index
    %c0_55 = arith.constant 0 : index
    %155 = vector.load %arg12[%c0_53, %c0_54, %c0_55] : memref<2x32x96xbf16, #tpu.memory_space<vmem>>, vector<1x32x96xbf16>
    %156 = vector.shape_cast %155 : vector<1x32x96xbf16> to vector<32x96xbf16>
    %cst_56 = arith.constant dense<0.000000e+00> : vector<32x96xf32>
    %157 = tpu.matmul %154, %156, %cst_56 {dimension_numbers = #tpu.dot_dimension_numbers<[1], [0], [0], [1], [0, 0, 1, 1], [], []>} : vector<32x32xbf16>, vector<32x96xbf16>, vector<32x96xf32> -> vector<32x96xf32>
    %c0_57 = arith.constant 0 : index
    %c0_58 = arith.constant 0 : index
    %c0_59 = arith.constant 0 : index
    %158 = vector.load %arg13[%c0_57, %c0_58, %c0_59] : memref<2x1x96xf32, #tpu.memory_space<vmem>>, vector<1x1x96xf32>
    %159 = vector.shape_cast %158 : vector<1x1x96xf32> to vector<1x96xf32>
    %160 = vector.broadcast %159 : vector<1x96xf32> to vector<32x96xf32>
    %161 = arith.addf %157, %160 : vector<32x96xf32>
    %c0_60 = arith.constant 0 : index
    %c0_61 = arith.constant 0 : index
    %c0_62 = arith.constant 0 : index
    %162 = vector.load %arg14[%c0_60, %c0_61, %c0_62] : memref<2x32x32xbf16, #tpu.memory_space<vmem>>, vector<1x32x32xbf16>
    %163 = vector.shape_cast %162 : vector<1x32x32xbf16> to vector<32x32xbf16>
    %cst_63 = arith.constant 0.000000e+00 : f32
    %164 = vector.broadcast %cst_63 : f32 to vector<32x32xf32>
    %165 = vector.extract_strided_slice %161 {offsets = [0, 0], sizes = [32, 16], strides = [1, 1]} : vector<32x96xf32> to vector<32x16xf32>
    %166 = arith.truncf %165 : vector<32x16xf32> to vector<32x16xbf16>
    %167 = vector.extract_strided_slice %161 {offsets = [0, 32], sizes = [32, 16], strides = [1, 1]} : vector<32x96xf32> to vector<32x16xf32>
    %168 = arith.truncf %167 : vector<32x16xf32> to vector<32x16xbf16>
    %169 = vector.extract_strided_slice %161 {offsets = [0, 64], sizes = [32, 16], strides = [1, 1]} : vector<32x96xf32> to vector<32x16xf32>
    %170 = arith.truncf %169 : vector<32x16xf32> to vector<32x16xbf16>
    %cst_64 = arith.constant dense<0.000000e+00> : vector<32x32xf32>
    %171 = tpu.matmul %166, %168, %cst_64 {dimension_numbers = #tpu.dot_dimension_numbers<[1], [1], [0], [0], [0, 0, 1, 0], [], []>} : vector<32x16xbf16>, vector<32x16xbf16>, vector<32x32xf32> -> vector<32x32xf32>
    %172 = arith.addf %171, %127 : vector<32x32xf32>
    %cst_65 = arith.constant dense<0xFF800000> : vector<32xf32>
    %173 = vector.multi_reduction <maximumf>, %172, %cst_65 [1] : vector<32x32xf32> to vector<32xf32>
    %174 = vector.shape_cast %173 : vector<32xf32> to vector<32x1xf32>
    %175 = vector.broadcast %174 : vector<32x1xf32> to vector<32x32xf32>
    %176 = arith.subf %172, %175 : vector<32x32xf32>
    %177 = math.exp %176 : vector<32x32xf32>
    %cst_66 = arith.constant dense<0.000000e+00> : vector<32xf32>
    %178 = vector.multi_reduction <add>, %177, %cst_66 [1] : vector<32x32xf32> to vector<32xf32>
    %179 = vector.shape_cast %178 : vector<32xf32> to vector<32x1xf32>
    %180 = vector.broadcast %179 : vector<32x1xf32> to vector<32x32xf32>
    %181 = arith.divf %177, %180 : vector<32x32xf32>
    %182 = arith.truncf %181 : vector<32x32xf32> to vector<32x32xbf16>
    %cst_67 = arith.constant dense<0.000000e+00> : vector<32x16xf32>
    %183 = tpu.matmul %182, %170, %cst_67 {dimension_numbers = #tpu.dot_dimension_numbers<[1], [0], [0], [1], [0, 0, 1, 1], [], []>} : vector<32x32xbf16>, vector<32x16xbf16>, vector<32x16xf32> -> vector<32x16xf32>
    %184 = arith.truncf %183 : vector<32x16xf32> to vector<32x16xbf16>
    %185 = vector.extract_strided_slice %163 {offsets = [0, 0], sizes = [16, 32], strides = [1, 1]} : vector<32x32xbf16> to vector<16x32xbf16>
    %cst_68 = arith.constant dense<0.000000e+00> : vector<32x32xf32>
    %186 = tpu.matmul %184, %185, %cst_68 {dimension_numbers = #tpu.dot_dimension_numbers<[1], [0], [0], [1], [0, 0, 1, 1], [], []>} : vector<32x16xbf16>, vector<16x32xbf16>, vector<32x32xf32> -> vector<32x32xf32>
    %187 = arith.addf %164, %186 : vector<32x32xf32>
    %188 = vector.extract_strided_slice %161 {offsets = [0, 16], sizes = [32, 16], strides = [1, 1]} : vector<32x96xf32> to vector<32x16xf32>
    %189 = arith.truncf %188 : vector<32x16xf32> to vector<32x16xbf16>
    %190 = vector.extract_strided_slice %161 {offsets = [0, 48], sizes = [32, 16], strides = [1, 1]} : vector<32x96xf32> to vector<32x16xf32>
    %191 = arith.truncf %190 : vector<32x16xf32> to vector<32x16xbf16>
    %192 = vector.extract_strided_slice %161 {offsets = [0, 80], sizes = [32, 16], strides = [1, 1]} : vector<32x96xf32> to vector<32x16xf32>
    %193 = arith.truncf %192 : vector<32x16xf32> to vector<32x16xbf16>
    %cst_69 = arith.constant dense<0.000000e+00> : vector<32x32xf32>
    %194 = tpu.matmul %189, %191, %cst_69 {dimension_numbers = #tpu.dot_dimension_numbers<[1], [1], [0], [0], [0, 0, 1, 0], [], []>} : vector<32x16xbf16>, vector<32x16xbf16>, vector<32x32xf32> -> vector<32x32xf32>
    %195 = arith.addf %194, %127 : vector<32x32xf32>
    %cst_70 = arith.constant dense<0xFF800000> : vector<32xf32>
    %196 = vector.multi_reduction <maximumf>, %195, %cst_70 [1] : vector<32x32xf32> to vector<32xf32>
    %197 = vector.shape_cast %196 : vector<32xf32> to vector<32x1xf32>
    %198 = vector.broadcast %197 : vector<32x1xf32> to vector<32x32xf32>
    %199 = arith.subf %195, %198 : vector<32x32xf32>
    %200 = math.exp %199 : vector<32x32xf32>
    %cst_71 = arith.constant dense<0.000000e+00> : vector<32xf32>
    %201 = vector.multi_reduction <add>, %200, %cst_71 [1] : vector<32x32xf32> to vector<32xf32>
    %202 = vector.shape_cast %201 : vector<32xf32> to vector<32x1xf32>
    %203 = vector.broadcast %202 : vector<32x1xf32> to vector<32x32xf32>
    %204 = arith.divf %200, %203 : vector<32x32xf32>
    %205 = arith.truncf %204 : vector<32x32xf32> to vector<32x32xbf16>
    %cst_72 = arith.constant dense<0.000000e+00> : vector<32x16xf32>
    %206 = tpu.matmul %205, %193, %cst_72 {dimension_numbers = #tpu.dot_dimension_numbers<[1], [0], [0], [1], [0, 0, 1, 1], [], []>} : vector<32x32xbf16>, vector<32x16xbf16>, vector<32x16xf32> -> vector<32x16xf32>
    %207 = arith.truncf %206 : vector<32x16xf32> to vector<32x16xbf16>
    %208 = vector.extract_strided_slice %163 {offsets = [16, 0], sizes = [16, 32], strides = [1, 1]} : vector<32x32xbf16> to vector<16x32xbf16>
    %cst_73 = arith.constant dense<0.000000e+00> : vector<32x32xf32>
    %209 = tpu.matmul %207, %208, %cst_73 {dimension_numbers = #tpu.dot_dimension_numbers<[1], [0], [0], [1], [0, 0, 1, 1], [], []>} : vector<32x16xbf16>, vector<16x32xbf16>, vector<32x32xf32> -> vector<32x32xf32>
    %210 = arith.addf %187, %209 : vector<32x32xf32>
    %211 = arith.addf %117, %210 : vector<32x32xf32>
    %c0_74 = arith.constant 0 : index
    %c0_75 = arith.constant 0 : index
    %c0_76 = arith.constant 0 : index
    %212 = vector.load %arg15[%c0_74, %c0_75, %c0_76] : memref<2x1x32xf32, #tpu.memory_space<vmem>>, vector<1x1x32xf32>
    %213 = vector.shape_cast %212 : vector<1x1x32xf32> to vector<1x32xf32>
    %214 = vector.broadcast %213 : vector<1x32xf32> to vector<32x32xf32>
    %215 = arith.addf %211, %214 : vector<32x32xf32>
    %c0_77 = arith.constant 0 : index
    %c0_78 = arith.constant 0 : index
    %c0_79 = arith.constant 0 : index
    %216 = vector.load %arg16[%c0_77, %c0_78, %c0_79] : memref<2x1x32xf32, #tpu.memory_space<vmem>>, vector<1x1x32xf32>
    %217 = vector.shape_cast %216 : vector<1x1x32xf32> to vector<1x32xf32>
    %c0_80 = arith.constant 0 : index
    %c0_81 = arith.constant 0 : index
    %c0_82 = arith.constant 0 : index
    %218 = vector.load %arg17[%c0_80, %c0_81, %c0_82] : memref<2x1x32xf32, #tpu.memory_space<vmem>>, vector<1x1x32xf32>
    %219 = vector.shape_cast %218 : vector<1x1x32xf32> to vector<1x32xf32>
    %cst_83 = arith.constant dense<0.000000e+00> : vector<32xf32>
    %220 = vector.multi_reduction <add>, %215, %cst_83 [1] : vector<32x32xf32> to vector<32xf32>
    %221 = vector.shape_cast %220 : vector<32xf32> to vector<32x1xf32>
    %cst_84 = arith.constant 3.200000e+01 : f32
    %222 = vector.broadcast %cst_84 : f32 to vector<32x1xf32>
    %223 = arith.divf %221, %222 : vector<32x1xf32>
    %224 = vector.broadcast %223 : vector<32x1xf32> to vector<32x32xf32>
    %225 = arith.subf %215, %224 : vector<32x32xf32>
    %226 = arith.mulf %225, %225 : vector<32x32xf32>
    %cst_85 = arith.constant dense<0.000000e+00> : vector<32xf32>
    %227 = vector.multi_reduction <add>, %226, %cst_85 [1] : vector<32x32xf32> to vector<32xf32>
    %228 = vector.shape_cast %227 : vector<32xf32> to vector<32x1xf32>
    %cst_86 = arith.constant 3.200000e+01 : f32
    %229 = vector.broadcast %cst_86 : f32 to vector<32x1xf32>
    %230 = arith.divf %228, %229 : vector<32x1xf32>
    %231 = vector.broadcast %223 : vector<32x1xf32> to vector<32x32xf32>
    %232 = arith.subf %215, %231 : vector<32x32xf32>
    %cst_87 = arith.constant 9.99999974E-6 : f32
    %233 = vector.broadcast %cst_87 : f32 to vector<32x1xf32>
    %234 = arith.addf %230, %233 : vector<32x1xf32>
    %235 = math.rsqrt %234 : vector<32x1xf32>
    %236 = vector.broadcast %235 : vector<32x1xf32> to vector<32x32xf32>
    %237 = arith.mulf %232, %236 : vector<32x32xf32>
    %238 = vector.broadcast %217 : vector<1x32xf32> to vector<32x32xf32>
    %239 = arith.mulf %237, %238 : vector<32x32xf32>
    %240 = vector.broadcast %219 : vector<1x32xf32> to vector<32x32xf32>
    %241 = arith.addf %239, %240 : vector<32x32xf32>
    %242 = arith.truncf %241 : vector<32x32xf32> to vector<32x32xbf16>
    %c0_88 = arith.constant 0 : index
    %c0_89 = arith.constant 0 : index
    %c0_90 = arith.constant 0 : index
    %243 = vector.load %arg18[%c0_88, %c0_89, %c0_90] : memref<2x32x128xbf16, #tpu.memory_space<vmem>>, vector<1x32x128xbf16>
    %244 = vector.shape_cast %243 : vector<1x32x128xbf16> to vector<32x128xbf16>
    %cst_91 = arith.constant dense<0.000000e+00> : vector<32x128xf32>
    %245 = tpu.matmul %242, %244, %cst_91 {dimension_numbers = #tpu.dot_dimension_numbers<[1], [0], [0], [1], [0, 0, 1, 1], [], []>} : vector<32x32xbf16>, vector<32x128xbf16>, vector<32x128xf32> -> vector<32x128xf32>
    %c0_92 = arith.constant 0 : index
    %c0_93 = arith.constant 0 : index
    %c0_94 = arith.constant 0 : index
    %246 = vector.load %arg19[%c0_92, %c0_93, %c0_94] : memref<2x1x128xf32, #tpu.memory_space<vmem>>, vector<1x1x128xf32>
    %247 = vector.shape_cast %246 : vector<1x1x128xf32> to vector<1x128xf32>
    %248 = vector.broadcast %247 : vector<1x128xf32> to vector<32x128xf32>
    %249 = arith.addf %245, %248 : vector<32x128xf32>
    %cst_95 = arith.constant 5.000000e-01 : f32
    %250 = vector.broadcast %cst_95 : f32 to vector<32x128xf32>
    %251 = arith.mulf %250, %249 : vector<32x128xf32>
    %cst_96 = arith.constant 4.471500e-02 : f32
    %252 = vector.broadcast %cst_96 : f32 to vector<32x128xf32>
    %253 = arith.mulf %252, %249 : vector<32x128xf32>
    %254 = arith.mulf %253, %249 : vector<32x128xf32>
    %255 = arith.mulf %254, %249 : vector<32x128xf32>
    %256 = arith.addf %249, %255 : vector<32x128xf32>
    %cst_97 = arith.constant 0.797884583 : f32
    %257 = vector.broadcast %cst_97 : f32 to vector<32x128xf32>
    %258 = arith.mulf %257, %256 : vector<32x128xf32>
    %259 = math.tanh %258 : vector<32x128xf32>
    %cst_98 = arith.constant 1.000000e+00 : f32
    %260 = vector.broadcast %cst_98 : f32 to vector<32x128xf32>
    %261 = arith.addf %260, %259 : vector<32x128xf32>
    %262 = arith.mulf %251, %261 : vector<32x128xf32>
    %263 = arith.truncf %262 : vector<32x128xf32> to vector<32x128xbf16>
    %c0_99 = arith.constant 0 : index
    %c0_100 = arith.constant 0 : index
    %c0_101 = arith.constant 0 : index
    %264 = vector.load %arg20[%c0_99, %c0_100, %c0_101] : memref<2x128x32xbf16, #tpu.memory_space<vmem>>, vector<1x128x32xbf16>
    %265 = vector.shape_cast %264 : vector<1x128x32xbf16> to vector<128x32xbf16>
    %cst_102 = arith.constant dense<0.000000e+00> : vector<32x32xf32>
    %266 = tpu.matmul %263, %265, %cst_102 {dimension_numbers = #tpu.dot_dimension_numbers<[1], [0], [0], [1], [0, 0, 1, 1], [], []>} : vector<32x128xbf16>, vector<128x32xbf16>, vector<32x32xf32> -> vector<32x32xf32>
    %c0_103 = arith.constant 0 : index
    %c0_104 = arith.constant 0 : index
    %c0_105 = arith.constant 0 : index
    %267 = vector.load %arg21[%c0_103, %c0_104, %c0_105] : memref<2x1x32xf32, #tpu.memory_space<vmem>>, vector<1x1x32xf32>
    %268 = vector.shape_cast %267 : vector<1x1x32xf32> to vector<1x32xf32>
    %269 = vector.broadcast %268 : vector<1x32xf32> to vector<32x32xf32>
    %270 = arith.addf %266, %269 : vector<32x32xf32>
    %271 = arith.addf %215, %270 : vector<32x32xf32>
    %c1 = arith.constant 1 : index
    %c0_106 = arith.constant 0 : index
    %c0_107 = arith.constant 0 : index
    %272 = vector.load %arg10[%c1, %c0_106, %c0_107] : memref<2x1x32xf32, #tpu.memory_space<vmem>>, vector<1x1x32xf32>
    %273 = vector.shape_cast %272 : vector<1x1x32xf32> to vector<1x32xf32>
    %c1_108 = arith.constant 1 : index
    %c0_109 = arith.constant 0 : index
    %c0_110 = arith.constant 0 : index
    %274 = vector.load %arg11[%c1_108, %c0_109, %c0_110] : memref<2x1x32xf32, #tpu.memory_space<vmem>>, vector<1x1x32xf32>
    %275 = vector.shape_cast %274 : vector<1x1x32xf32> to vector<1x32xf32>
    %cst_111 = arith.constant dense<0.000000e+00> : vector<32xf32>
    %276 = vector.multi_reduction <add>, %271, %cst_111 [1] : vector<32x32xf32> to vector<32xf32>
    %277 = vector.shape_cast %276 : vector<32xf32> to vector<32x1xf32>
    %cst_112 = arith.constant 3.200000e+01 : f32
    %278 = vector.broadcast %cst_112 : f32 to vector<32x1xf32>
    %279 = arith.divf %277, %278 : vector<32x1xf32>
    %280 = vector.broadcast %279 : vector<32x1xf32> to vector<32x32xf32>
    %281 = arith.subf %271, %280 : vector<32x32xf32>
    %282 = arith.mulf %281, %281 : vector<32x32xf32>
    %cst_113 = arith.constant dense<0.000000e+00> : vector<32xf32>
    %283 = vector.multi_reduction <add>, %282, %cst_113 [1] : vector<32x32xf32> to vector<32xf32>
    %284 = vector.shape_cast %283 : vector<32xf32> to vector<32x1xf32>
    %cst_114 = arith.constant 3.200000e+01 : f32
    %285 = vector.broadcast %cst_114 : f32 to vector<32x1xf32>
    %286 = arith.divf %284, %285 : vector<32x1xf32>
    %287 = vector.broadcast %279 : vector<32x1xf32> to vector<32x32xf32>
    %288 = arith.subf %271, %287 : vector<32x32xf32>
    %cst_115 = arith.constant 9.99999974E-6 : f32
    %289 = vector.broadcast %cst_115 : f32 to vector<32x1xf32>
    %290 = arith.addf %286, %289 : vector<32x1xf32>
    %291 = math.rsqrt %290 : vector<32x1xf32>
    %292 = vector.broadcast %291 : vector<32x1xf32> to vector<32x32xf32>
    %293 = arith.mulf %288, %292 : vector<32x32xf32>
    %294 = vector.broadcast %273 : vector<1x32xf32> to vector<32x32xf32>
    %295 = arith.mulf %293, %294 : vector<32x32xf32>
    %296 = vector.broadcast %275 : vector<1x32xf32> to vector<32x32xf32>
    %297 = arith.addf %295, %296 : vector<32x32xf32>
    %298 = arith.truncf %297 : vector<32x32xf32> to vector<32x32xbf16>
    %c1_116 = arith.constant 1 : index
    %c0_117 = arith.constant 0 : index
    %c0_118 = arith.constant 0 : index
    %299 = vector.load %arg12[%c1_116, %c0_117, %c0_118] : memref<2x32x96xbf16, #tpu.memory_space<vmem>>, vector<1x32x96xbf16>
    %300 = vector.shape_cast %299 : vector<1x32x96xbf16> to vector<32x96xbf16>
    %cst_119 = arith.constant dense<0.000000e+00> : vector<32x96xf32>
    %301 = tpu.matmul %298, %300, %cst_119 {dimension_numbers = #tpu.dot_dimension_numbers<[1], [0], [0], [1], [0, 0, 1, 1], [], []>} : vector<32x32xbf16>, vector<32x96xbf16>, vector<32x96xf32> -> vector<32x96xf32>
    %c1_120 = arith.constant 1 : index
    %c0_121 = arith.constant 0 : index
    %c0_122 = arith.constant 0 : index
    %302 = vector.load %arg13[%c1_120, %c0_121, %c0_122] : memref<2x1x96xf32, #tpu.memory_space<vmem>>, vector<1x1x96xf32>
    %303 = vector.shape_cast %302 : vector<1x1x96xf32> to vector<1x96xf32>
    %304 = vector.broadcast %303 : vector<1x96xf32> to vector<32x96xf32>
    %305 = arith.addf %301, %304 : vector<32x96xf32>
    %c1_123 = arith.constant 1 : index
    %c0_124 = arith.constant 0 : index
    %c0_125 = arith.constant 0 : index
    %306 = vector.load %arg14[%c1_123, %c0_124, %c0_125] : memref<2x32x32xbf16, #tpu.memory_space<vmem>>, vector<1x32x32xbf16>
    %307 = vector.shape_cast %306 : vector<1x32x32xbf16> to vector<32x32xbf16>
    %cst_126 = arith.constant 0.000000e+00 : f32
    %308 = vector.broadcast %cst_126 : f32 to vector<32x32xf32>
    %309 = vector.extract_strided_slice %305 {offsets = [0, 0], sizes = [32, 16], strides = [1, 1]} : vector<32x96xf32> to vector<32x16xf32>
    %310 = arith.truncf %309 : vector<32x16xf32> to vector<32x16xbf16>
    %311 = vector.extract_strided_slice %305 {offsets = [0, 32], sizes = [32, 16], strides = [1, 1]} : vector<32x96xf32> to vector<32x16xf32>
    %312 = arith.truncf %311 : vector<32x16xf32> to vector<32x16xbf16>
    %313 = vector.extract_strided_slice %305 {offsets = [0, 64], sizes = [32, 16], strides = [1, 1]} : vector<32x96xf32> to vector<32x16xf32>
    %314 = arith.truncf %313 : vector<32x16xf32> to vector<32x16xbf16>
    %cst_127 = arith.constant dense<0.000000e+00> : vector<32x32xf32>
    %315 = tpu.matmul %310, %312, %cst_127 {dimension_numbers = #tpu.dot_dimension_numbers<[1], [1], [0], [0], [0, 0, 1, 0], [], []>} : vector<32x16xbf16>, vector<32x16xbf16>, vector<32x32xf32> -> vector<32x32xf32>
    %316 = arith.addf %315, %127 : vector<32x32xf32>
    %cst_128 = arith.constant dense<0xFF800000> : vector<32xf32>
    %317 = vector.multi_reduction <maximumf>, %316, %cst_128 [1] : vector<32x32xf32> to vector<32xf32>
    %318 = vector.shape_cast %317 : vector<32xf32> to vector<32x1xf32>
    %319 = vector.broadcast %318 : vector<32x1xf32> to vector<32x32xf32>
    %320 = arith.subf %316, %319 : vector<32x32xf32>
    %321 = math.exp %320 : vector<32x32xf32>
    %cst_129 = arith.constant dense<0.000000e+00> : vector<32xf32>
    %322 = vector.multi_reduction <add>, %321, %cst_129 [1] : vector<32x32xf32> to vector<32xf32>
    %323 = vector.shape_cast %322 : vector<32xf32> to vector<32x1xf32>
    %324 = vector.broadcast %323 : vector<32x1xf32> to vector<32x32xf32>
    %325 = arith.divf %321, %324 : vector<32x32xf32>
    %326 = arith.truncf %325 : vector<32x32xf32> to vector<32x32xbf16>
    %cst_130 = arith.constant dense<0.000000e+00> : vector<32x16xf32>
    %327 = tpu.matmul %326, %314, %cst_130 {dimension_numbers = #tpu.dot_dimension_numbers<[1], [0], [0], [1], [0, 0, 1, 1], [], []>} : vector<32x32xbf16>, vector<32x16xbf16>, vector<32x16xf32> -> vector<32x16xf32>
    %328 = arith.truncf %327 : vector<32x16xf32> to vector<32x16xbf16>
    %329 = vector.extract_strided_slice %307 {offsets = [0, 0], sizes = [16, 32], strides = [1, 1]} : vector<32x32xbf16> to vector<16x32xbf16>
    %cst_131 = arith.constant dense<0.000000e+00> : vector<32x32xf32>
    %330 = tpu.matmul %328, %329, %cst_131 {dimension_numbers = #tpu.dot_dimension_numbers<[1], [0], [0], [1], [0, 0, 1, 1], [], []>} : vector<32x16xbf16>, vector<16x32xbf16>, vector<32x32xf32> -> vector<32x32xf32>
    %331 = arith.addf %308, %330 : vector<32x32xf32>
    %332 = vector.extract_strided_slice %305 {offsets = [0, 16], sizes = [32, 16], strides = [1, 1]} : vector<32x96xf32> to vector<32x16xf32>
    %333 = arith.truncf %332 : vector<32x16xf32> to vector<32x16xbf16>
    %334 = vector.extract_strided_slice %305 {offsets = [0, 48], sizes = [32, 16], strides = [1, 1]} : vector<32x96xf32> to vector<32x16xf32>
    %335 = arith.truncf %334 : vector<32x16xf32> to vector<32x16xbf16>
    %336 = vector.extract_strided_slice %305 {offsets = [0, 80], sizes = [32, 16], strides = [1, 1]} : vector<32x96xf32> to vector<32x16xf32>
    %337 = arith.truncf %336 : vector<32x16xf32> to vector<32x16xbf16>
    %cst_132 = arith.constant dense<0.000000e+00> : vector<32x32xf32>
    %338 = tpu.matmul %333, %335, %cst_132 {dimension_numbers = #tpu.dot_dimension_numbers<[1], [1], [0], [0], [0, 0, 1, 0], [], []>} : vector<32x16xbf16>, vector<32x16xbf16>, vector<32x32xf32> -> vector<32x32xf32>
    %339 = arith.addf %338, %127 : vector<32x32xf32>
    %cst_133 = arith.constant dense<0xFF800000> : vector<32xf32>
    %340 = vector.multi_reduction <maximumf>, %339, %cst_133 [1] : vector<32x32xf32> to vector<32xf32>
    %341 = vector.shape_cast %340 : vector<32xf32> to vector<32x1xf32>
    %342 = vector.broadcast %341 : vector<32x1xf32> to vector<32x32xf32>
    %343 = arith.subf %339, %342 : vector<32x32xf32>
    %344 = math.exp %343 : vector<32x32xf32>
    %cst_134 = arith.constant dense<0.000000e+00> : vector<32xf32>
    %345 = vector.multi_reduction <add>, %344, %cst_134 [1] : vector<32x32xf32> to vector<32xf32>
    %346 = vector.shape_cast %345 : vector<32xf32> to vector<32x1xf32>
    %347 = vector.broadcast %346 : vector<32x1xf32> to vector<32x32xf32>
    %348 = arith.divf %344, %347 : vector<32x32xf32>
    %349 = arith.truncf %348 : vector<32x32xf32> to vector<32x32xbf16>
    %cst_135 = arith.constant dense<0.000000e+00> : vector<32x16xf32>
    %350 = tpu.matmul %349, %337, %cst_135 {dimension_numbers = #tpu.dot_dimension_numbers<[1], [0], [0], [1], [0, 0, 1, 1], [], []>} : vector<32x32xbf16>, vector<32x16xbf16>, vector<32x16xf32> -> vector<32x16xf32>
    %351 = arith.truncf %350 : vector<32x16xf32> to vector<32x16xbf16>
    %352 = vector.extract_strided_slice %307 {offsets = [16, 0], sizes = [16, 32], strides = [1, 1]} : vector<32x32xbf16> to vector<16x32xbf16>
    %cst_136 = arith.constant dense<0.000000e+00> : vector<32x32xf32>
    %353 = tpu.matmul %351, %352, %cst_136 {dimension_numbers = #tpu.dot_dimension_numbers<[1], [0], [0], [1], [0, 0, 1, 1], [], []>} : vector<32x16xbf16>, vector<16x32xbf16>, vector<32x32xf32> -> vector<32x32xf32>
    %354 = arith.addf %331, %353 : vector<32x32xf32>
    %355 = arith.addf %271, %354 : vector<32x32xf32>
    %c1_137 = arith.constant 1 : index
    %c0_138 = arith.constant 0 : index
    %c0_139 = arith.constant 0 : index
    %356 = vector.load %arg15[%c1_137, %c0_138, %c0_139] : memref<2x1x32xf32, #tpu.memory_space<vmem>>, vector<1x1x32xf32>
    %357 = vector.shape_cast %356 : vector<1x1x32xf32> to vector<1x32xf32>
    %358 = vector.broadcast %357 : vector<1x32xf32> to vector<32x32xf32>
    %359 = arith.addf %355, %358 : vector<32x32xf32>
    %c1_140 = arith.constant 1 : index
    %c0_141 = arith.constant 0 : index
    %c0_142 = arith.constant 0 : index
    %360 = vector.load %arg16[%c1_140, %c0_141, %c0_142] : memref<2x1x32xf32, #tpu.memory_space<vmem>>, vector<1x1x32xf32>
    %361 = vector.shape_cast %360 : vector<1x1x32xf32> to vector<1x32xf32>
    %c1_143 = arith.constant 1 : index
    %c0_144 = arith.constant 0 : index
    %c0_145 = arith.constant 0 : index
    %362 = vector.load %arg17[%c1_143, %c0_144, %c0_145] : memref<2x1x32xf32, #tpu.memory_space<vmem>>, vector<1x1x32xf32>
    %363 = vector.shape_cast %362 : vector<1x1x32xf32> to vector<1x32xf32>
    %cst_146 = arith.constant dense<0.000000e+00> : vector<32xf32>
    %364 = vector.multi_reduction <add>, %359, %cst_146 [1] : vector<32x32xf32> to vector<32xf32>
    %365 = vector.shape_cast %364 : vector<32xf32> to vector<32x1xf32>
    %cst_147 = arith.constant 3.200000e+01 : f32
    %366 = vector.broadcast %cst_147 : f32 to vector<32x1xf32>
    %367 = arith.divf %365, %366 : vector<32x1xf32>
    %368 = vector.broadcast %367 : vector<32x1xf32> to vector<32x32xf32>
    %369 = arith.subf %359, %368 : vector<32x32xf32>
    %370 = arith.mulf %369, %369 : vector<32x32xf32>
    %cst_148 = arith.constant dense<0.000000e+00> : vector<32xf32>
    %371 = vector.multi_reduction <add>, %370, %cst_148 [1] : vector<32x32xf32> to vector<32xf32>
    %372 = vector.shape_cast %371 : vector<32xf32> to vector<32x1xf32>
    %cst_149 = arith.constant 3.200000e+01 : f32
    %373 = vector.broadcast %cst_149 : f32 to vector<32x1xf32>
    %374 = arith.divf %372, %373 : vector<32x1xf32>
    %375 = vector.broadcast %367 : vector<32x1xf32> to vector<32x32xf32>
    %376 = arith.subf %359, %375 : vector<32x32xf32>
    %cst_150 = arith.constant 9.99999974E-6 : f32
    %377 = vector.broadcast %cst_150 : f32 to vector<32x1xf32>
    %378 = arith.addf %374, %377 : vector<32x1xf32>
    %379 = math.rsqrt %378 : vector<32x1xf32>
    %380 = vector.broadcast %379 : vector<32x1xf32> to vector<32x32xf32>
    %381 = arith.mulf %376, %380 : vector<32x32xf32>
    %382 = vector.broadcast %361 : vector<1x32xf32> to vector<32x32xf32>
    %383 = arith.mulf %381, %382 : vector<32x32xf32>
    %384 = vector.broadcast %363 : vector<1x32xf32> to vector<32x32xf32>
    %385 = arith.addf %383, %384 : vector<32x32xf32>
    %386 = arith.truncf %385 : vector<32x32xf32> to vector<32x32xbf16>
    %c1_151 = arith.constant 1 : index
    %c0_152 = arith.constant 0 : index
    %c0_153 = arith.constant 0 : index
    %387 = vector.load %arg18[%c1_151, %c0_152, %c0_153] : memref<2x32x128xbf16, #tpu.memory_space<vmem>>, vector<1x32x128xbf16>
    %388 = vector.shape_cast %387 : vector<1x32x128xbf16> to vector<32x128xbf16>
    %cst_154 = arith.constant dense<0.000000e+00> : vector<32x128xf32>
    %389 = tpu.matmul %386, %388, %cst_154 {dimension_numbers = #tpu.dot_dimension_numbers<[1], [0], [0], [1], [0, 0, 1, 1], [], []>} : vector<32x32xbf16>, vector<32x128xbf16>, vector<32x128xf32> -> vector<32x128xf32>
    %c1_155 = arith.constant 1 : index
    %c0_156 = arith.constant 0 : index
    %c0_157 = arith.constant 0 : index
    %390 = vector.load %arg19[%c1_155, %c0_156, %c0_157] : memref<2x1x128xf32, #tpu.memory_space<vmem>>, vector<1x1x128xf32>
    %391 = vector.shape_cast %390 : vector<1x1x128xf32> to vector<1x128xf32>
    %392 = vector.broadcast %391 : vector<1x128xf32> to vector<32x128xf32>
    %393 = arith.addf %389, %392 : vector<32x128xf32>
    %cst_158 = arith.constant 5.000000e-01 : f32
    %394 = vector.broadcast %cst_158 : f32 to vector<32x128xf32>
    %395 = arith.mulf %394, %393 : vector<32x128xf32>
    %cst_159 = arith.constant 4.471500e-02 : f32
    %396 = vector.broadcast %cst_159 : f32 to vector<32x128xf32>
    %397 = arith.mulf %396, %393 : vector<32x128xf32>
    %398 = arith.mulf %397, %393 : vector<32x128xf32>
    %399 = arith.mulf %398, %393 : vector<32x128xf32>
    %400 = arith.addf %393, %399 : vector<32x128xf32>
    %cst_160 = arith.constant 0.797884583 : f32
    %401 = vector.broadcast %cst_160 : f32 to vector<32x128xf32>
    %402 = arith.mulf %401, %400 : vector<32x128xf32>
    %403 = math.tanh %402 : vector<32x128xf32>
    %cst_161 = arith.constant 1.000000e+00 : f32
    %404 = vector.broadcast %cst_161 : f32 to vector<32x128xf32>
    %405 = arith.addf %404, %403 : vector<32x128xf32>
    %406 = arith.mulf %395, %405 : vector<32x128xf32>
    %407 = arith.truncf %406 : vector<32x128xf32> to vector<32x128xbf16>
    %c1_162 = arith.constant 1 : index
    %c0_163 = arith.constant 0 : index
    %c0_164 = arith.constant 0 : index
    %408 = vector.load %arg20[%c1_162, %c0_163, %c0_164] : memref<2x128x32xbf16, #tpu.memory_space<vmem>>, vector<1x128x32xbf16>
    %409 = vector.shape_cast %408 : vector<1x128x32xbf16> to vector<128x32xbf16>
    %cst_165 = arith.constant dense<0.000000e+00> : vector<32x32xf32>
    %410 = tpu.matmul %407, %409, %cst_165 {dimension_numbers = #tpu.dot_dimension_numbers<[1], [0], [0], [1], [0, 0, 1, 1], [], []>} : vector<32x128xbf16>, vector<128x32xbf16>, vector<32x32xf32> -> vector<32x32xf32>
    %c1_166 = arith.constant 1 : index
    %c0_167 = arith.constant 0 : index
    %c0_168 = arith.constant 0 : index
    %411 = vector.load %arg21[%c1_166, %c0_167, %c0_168] : memref<2x1x32xf32, #tpu.memory_space<vmem>>, vector<1x1x32xf32>
    %412 = vector.shape_cast %411 : vector<1x1x32xf32> to vector<1x32xf32>
    %413 = vector.broadcast %412 : vector<1x32xf32> to vector<32x32xf32>
    %414 = arith.addf %410, %413 : vector<32x32xf32>
    %415 = arith.addf %359, %414 : vector<32x32xf32>
    %416 = vector.extract_strided_slice %415 {offsets = [8, 0], sizes = [8, 32], strides = [1, 1]} : vector<32x32xf32> to vector<8x32xf32>
    %c0_169 = arith.constant 0 : index
    %c0_170 = arith.constant 0 : index
    %417 = vector.load %arg22[%c0_169, %c0_170] : memref<1x32xf32, #tpu.memory_space<vmem>>, vector<1x32xf32>
    %c0_171 = arith.constant 0 : index
    %c0_172 = arith.constant 0 : index
    %418 = vector.load %arg23[%c0_171, %c0_172] : memref<1x32xf32, #tpu.memory_space<vmem>>, vector<1x32xf32>
    %cst_173 = arith.constant dense<0.000000e+00> : vector<8xf32>
    %419 = vector.multi_reduction <add>, %416, %cst_173 [1] : vector<8x32xf32> to vector<8xf32>
    %420 = vector.shape_cast %419 : vector<8xf32> to vector<8x1xf32>
    %cst_174 = arith.constant 3.200000e+01 : f32
    %421 = vector.broadcast %cst_174 : f32 to vector<8x1xf32>
    %422 = arith.divf %420, %421 : vector<8x1xf32>
    %423 = vector.broadcast %422 : vector<8x1xf32> to vector<8x32xf32>
    %424 = arith.subf %416, %423 : vector<8x32xf32>
    %425 = arith.mulf %424, %424 : vector<8x32xf32>
    %cst_175 = arith.constant dense<0.000000e+00> : vector<8xf32>
    %426 = vector.multi_reduction <add>, %425, %cst_175 [1] : vector<8x32xf32> to vector<8xf32>
    %427 = vector.shape_cast %426 : vector<8xf32> to vector<8x1xf32>
    %cst_176 = arith.constant 3.200000e+01 : f32
    %428 = vector.broadcast %cst_176 : f32 to vector<8x1xf32>
    %429 = arith.divf %427, %428 : vector<8x1xf32>
    %430 = vector.broadcast %422 : vector<8x1xf32> to vector<8x32xf32>
    %431 = arith.subf %416, %430 : vector<8x32xf32>
    %cst_177 = arith.constant 9.99999974E-6 : f32
    %432 = vector.broadcast %cst_177 : f32 to vector<8x1xf32>
    %433 = arith.addf %429, %432 : vector<8x1xf32>
    %434 = math.rsqrt %433 : vector<8x1xf32>
    %435 = vector.broadcast %434 : vector<8x1xf32> to vector<8x32xf32>
    %436 = arith.mulf %431, %435 : vector<8x32xf32>
    %437 = vector.broadcast %417 : vector<1x32xf32> to vector<8x32xf32>
    %438 = arith.mulf %436, %437 : vector<8x32xf32>
    %439 = vector.broadcast %418 : vector<1x32xf32> to vector<8x32xf32>
    %440 = arith.addf %438, %439 : vector<8x32xf32>
    %441 = arith.truncf %440 : vector<8x32xf32> to vector<8x32xbf16>
    %442 = vector.extract_strided_slice %415 {offsets = [16, 0], sizes = [8, 32], strides = [1, 1]} : vector<32x32xf32> to vector<8x32xf32>
    %c0_178 = arith.constant 0 : index
    %c0_179 = arith.constant 0 : index
    %443 = vector.load %arg22[%c0_178, %c0_179] : memref<1x32xf32, #tpu.memory_space<vmem>>, vector<1x32xf32>
    %c0_180 = arith.constant 0 : index
    %c0_181 = arith.constant 0 : index
    %444 = vector.load %arg23[%c0_180, %c0_181] : memref<1x32xf32, #tpu.memory_space<vmem>>, vector<1x32xf32>
    %cst_182 = arith.constant dense<0.000000e+00> : vector<8xf32>
    %445 = vector.multi_reduction <add>, %442, %cst_182 [1] : vector<8x32xf32> to vector<8xf32>
    %446 = vector.shape_cast %445 : vector<8xf32> to vector<8x1xf32>
    %cst_183 = arith.constant 3.200000e+01 : f32
    %447 = vector.broadcast %cst_183 : f32 to vector<8x1xf32>
    %448 = arith.divf %446, %447 : vector<8x1xf32>
    %449 = vector.broadcast %448 : vector<8x1xf32> to vector<8x32xf32>
    %450 = arith.subf %442, %449 : vector<8x32xf32>
    %451 = arith.mulf %450, %450 : vector<8x32xf32>
    %cst_184 = arith.constant dense<0.000000e+00> : vector<8xf32>
    %452 = vector.multi_reduction <add>, %451, %cst_184 [1] : vector<8x32xf32> to vector<8xf32>
    %453 = vector.shape_cast %452 : vector<8xf32> to vector<8x1xf32>
    %cst_185 = arith.constant 3.200000e+01 : f32
    %454 = vector.broadcast %cst_185 : f32 to vector<8x1xf32>
    %455 = arith.divf %453, %454 : vector<8x1xf32>
    %456 = vector.broadcast %448 : vector<8x1xf32> to vector<8x32xf32>
    %457 = arith.subf %442, %456 : vector<8x32xf32>
    %cst_186 = arith.constant 9.99999974E-6 : f32
    %458 = vector.broadcast %cst_186 : f32 to vector<8x1xf32>
    %459 = arith.addf %455, %458 : vector<8x1xf32>
    %460 = math.rsqrt %459 : vector<8x1xf32>
    %461 = vector.broadcast %460 : vector<8x1xf32> to vector<8x32xf32>
    %462 = arith.mulf %457, %461 : vector<8x32xf32>
    %463 = vector.broadcast %443 : vector<1x32xf32> to vector<8x32xf32>
    %464 = arith.mulf %462, %463 : vector<8x32xf32>
    %465 = vector.broadcast %444 : vector<1x32xf32> to vector<8x32xf32>
    %466 = arith.addf %464, %465 : vector<8x32xf32>
    %467 = arith.truncf %466 : vector<8x32xf32> to vector<8x32xbf16>
    %c0_187 = arith.constant 0 : index
    %c0_188 = arith.constant 0 : index
    %468 = vector.load %arg24[%c0_187, %c0_188] : memref<32x128xbf16, #tpu.memory_space<vmem>>, vector<32x128xbf16>
    %cst_189 = arith.constant dense<0.000000e+00> : vector<8x128xf32>
    %469 = tpu.matmul %467, %468, %cst_189 {dimension_numbers = #tpu.dot_dimension_numbers<[1], [0], [0], [1], [0, 0, 1, 1], [], []>} : vector<8x32xbf16>, vector<32x128xbf16>, vector<8x128xf32> -> vector<8x128xf32>
    %c0_190 = arith.constant 0 : index
    %c0_191 = arith.constant 0 : index
    %470 = vector.load %arg25[%c0_190, %c0_191] : memref<1x128xf32, #tpu.memory_space<vmem>>, vector<1x128xf32>
    %471 = vector.broadcast %470 : vector<1x128xf32> to vector<8x128xf32>
    %472 = arith.addf %469, %471 : vector<8x128xf32>
    %c0_192 = arith.constant 0 : index
    %c0_193 = arith.constant 0 : index
    %473 = vector.load %arg26[%c0_192, %c0_193] : memref<32x128xbf16, #tpu.memory_space<vmem>>, vector<32x128xbf16>
    %cst_194 = arith.constant dense<0.000000e+00> : vector<8x128xf32>
    %474 = tpu.matmul %441, %473, %cst_194 {dimension_numbers = #tpu.dot_dimension_numbers<[1], [0], [0], [1], [0, 0, 1, 1], [], []>} : vector<8x32xbf16>, vector<32x128xbf16>, vector<8x128xf32> -> vector<8x128xf32>
    %c0_195 = arith.constant 0 : index
    %c0_196 = arith.constant 0 : index
    %475 = vector.load %arg27[%c0_195, %c0_196] : memref<1x128xf32, #tpu.memory_space<vmem>>, vector<1x128xf32>
    %476 = vector.broadcast %475 : vector<1x128xf32> to vector<8x128xf32>
    %477 = arith.addf %474, %476 : vector<8x128xf32>
    %478 = math.tanh %477 : vector<8x128xf32>
    %479 = arith.addf %472, %478 : vector<8x128xf32>
    %c0_197 = arith.constant 0 : index
    %c0_198 = arith.constant 0 : index
    %c0_199 = arith.constant 0 : index
    %480 = vector.load %arg28[%c0_197, %c0_198, %c0_199] : memref<1x8x128xf32, #tpu.memory_space<vmem>>, vector<1x8x128xf32>
    %481 = vector.shape_cast %480 : vector<1x8x128xf32> to vector<8x128xf32>
    %482 = vector.shape_cast %479 : vector<8x128xf32> to vector<1x8x128xf32>
    tpu.vector_store %arg28[%c0_197, %c0_198, %c0_199], %482 {strides = array<i32>} : memref<1x8x128xf32, #tpu.memory_space<vmem>>, vector<1x8x128xf32>,
    return
  }
  func.func @transform_0(%arg0: i32) -> (i32, i32, i32) {
    %c0_i32 = arith.constant 0 : i32
    %c0_i32_0 = arith.constant 0 : i32
    %c0_i32_1 = arith.constant 0 : i32
    return %arg0, %c0_i32, %c0_i32_0 : i32, i32, i32
  }
  func.func @transform_1(%arg0: i32) -> (i32, i32, i32) {
    %c0_i32 = arith.constant 0 : i32
    %c0_i32_0 = arith.constant 0 : i32
    %c0_i32_1 = arith.constant 0 : i32
    return %arg0, %c0_i32, %c0_i32_0 : i32, i32, i32
  }
  func.func @transform_2(%arg0: i32) -> (i32, i32, i32) {
    %c0_i32 = arith.constant 0 : i32
    %c0_i32_0 = arith.constant 0 : i32
    %c0_i32_1 = arith.constant 0 : i32
    return %arg0, %c0_i32, %c0_i32_0 : i32, i32, i32
  }
  func.func @transform_3(%arg0: i32) -> (i32, i32) {
    %c0_i32 = arith.constant 0 : i32
    %c0_i32_0 = arith.constant 0 : i32
    %c0_i32_1 = arith.constant 0 : i32
    return %c0_i32, %c0_i32_0 : i32, i32
  }
  func.func @transform_4(%arg0: i32) -> (i32, i32) {
    %c0_i32 = arith.constant 0 : i32
    %c0_i32_0 = arith.constant 0 : i32
    %c0_i32_1 = arith.constant 0 : i32
    return %c0_i32, %c0_i32_0 : i32, i32
  }
  func.func @transform_5(%arg0: i32) -> (i32, i32) {
    %c0_i32 = arith.constant 0 : i32
    %c0_i32_0 = arith.constant 0 : i32
    %c0_i32_1 = arith.constant 0 : i32
    return %c0_i32, %c0_i32_0 : i32, i32
  }
  func.func @transform_6(%arg0: i32) -> (i32, i32) {
    %c0_i32 = arith.constant 0 : i32
    %c0_i32_0 = arith.constant 0 : i32
    %c0_i32_1 = arith.constant 0 : i32
    return %c0_i32, %c0_i32_0 : i32, i32
  }
  func.func @transform_7(%arg0: i32) -> (i32, i32) {
    %c0_i32 = arith.constant 0 : i32
    %c0_i32_0 = arith.constant 0 : i32
    %c0_i32_1 = arith.constant 0 : i32
    return %c0_i32, %c0_i32_0 : i32, i32
  }
  func.func @transform_8(%arg0: i32) -> (i32, i32) {
    %c0_i32 = arith.constant 0 : i32
    %c0_i32_0 = arith.constant 0 : i32
    %c0_i32_1 = arith.constant 0 : i32
    return %c0_i32, %c0_i32_0 : i32, i32
  }
  func.func @transform_9(%arg0: i32) -> (i32, i32, i32) {
    %c0_i32 = arith.constant 0 : i32
    %c0_i32_0 = arith.constant 0 : i32
    %c0_i32_1 = arith.constant 0 : i32
    %c0_i32_2 = arith.constant 0 : i32
    return %c0_i32, %c0_i32_0, %c0_i32_1 : i32, i32, i32
  }
  func.func @transform_10(%arg0: i32) -> (i32, i32, i32) {
    %c0_i32 = arith.constant 0 : i32
    %c0_i32_0 = arith.constant 0 : i32
    %c0_i32_1 = arith.constant 0 : i32
    %c0_i32_2 = arith.constant 0 : i32
    return %c0_i32, %c0_i32_0, %c0_i32_1 : i32, i32, i32
  }
  func.func @transform_11(%arg0: i32) -> (i32, i32, i32) {
    %c0_i32 = arith.constant 0 : i32
    %c0_i32_0 = arith.constant 0 : i32
    %c0_i32_1 = arith.constant 0 : i32
    %c0_i32_2 = arith.constant 0 : i32
    return %c0_i32, %c0_i32_0, %c0_i32_1 : i32, i32, i32
  }
  func.func @transform_12(%arg0: i32) -> (i32, i32, i32) {
    %c0_i32 = arith.constant 0 : i32
    %c0_i32_0 = arith.constant 0 : i32
    %c0_i32_1 = arith.constant 0 : i32
    %c0_i32_2 = arith.constant 0 : i32
    return %c0_i32, %c0_i32_0, %c0_i32_1 : i32, i32, i32
  }
  func.func @transform_13(%arg0: i32) -> (i32, i32, i32) {
    %c0_i32 = arith.constant 0 : i32
    %c0_i32_0 = arith.constant 0 : i32
    %c0_i32_1 = arith.constant 0 : i32
    %c0_i32_2 = arith.constant 0 : i32
    return %c0_i32, %c0_i32_0, %c0_i32_1 : i32, i32, i32
  }
  func.func @transform_14(%arg0: i32) -> (i32, i32, i32) {
    %c0_i32 = arith.constant 0 : i32
    %c0_i32_0 = arith.constant 0 : i32
    %c0_i32_1 = arith.constant 0 : i32
    %c0_i32_2 = arith.constant 0 : i32
    return %c0_i32, %c0_i32_0, %c0_i32_1 : i32, i32, i32
  }
  func.func @transform_15(%arg0: i32) -> (i32, i32, i32) {
    %c0_i32 = arith.constant 0 : i32
    %c0_i32_0 = arith.constant 0 : i32
    %c0_i32_1 = arith.constant 0 : i32
    %c0_i32_2 = arith.constant 0 : i32
    return %c0_i32, %c0_i32_0, %c0_i32_1 : i32, i32, i32
  }
  func.func @transform_16(%arg0: i32) -> (i32, i32, i32) {
    %c0_i32 = arith.constant 0 : i32
    %c0_i32_0 = arith.constant 0 : i32
    %c0_i32_1 = arith.constant 0 : i32
    %c0_i32_2 = arith.constant 0 : i32
    return %c0_i32, %c0_i32_0, %c0_i32_1 : i32, i32, i32
  }
  func.func @transform_17(%arg0: i32) -> (i32, i32, i32) {
    %c0_i32 = arith.constant 0 : i32
    %c0_i32_0 = arith.constant 0 : i32
    %c0_i32_1 = arith.constant 0 : i32
    %c0_i32_2 = arith.constant 0 : i32
    return %c0_i32, %c0_i32_0, %c0_i32_1 : i32, i32, i32
  }
  func.func @transform_18(%arg0: i32) -> (i32, i32, i32) {
    %c0_i32 = arith.constant 0 : i32
    %c0_i32_0 = arith.constant 0 : i32
    %c0_i32_1 = arith.constant 0 : i32
    %c0_i32_2 = arith.constant 0 : i32
    return %c0_i32, %c0_i32_0, %c0_i32_1 : i32, i32, i32
  }
  func.func @transform_19(%arg0: i32) -> (i32, i32, i32) {
    %c0_i32 = arith.constant 0 : i32
    %c0_i32_0 = arith.constant 0 : i32
    %c0_i32_1 = arith.constant 0 : i32
    %c0_i32_2 = arith.constant 0 : i32
    return %c0_i32, %c0_i32_0, %c0_i32_1 : i32, i32, i32
  }
  func.func @transform_20(%arg0: i32) -> (i32, i32, i32) {
    %c0_i32 = arith.constant 0 : i32
    %c0_i32_0 = arith.constant 0 : i32
    %c0_i32_1 = arith.constant 0 : i32
    %c0_i32_2 = arith.constant 0 : i32
    return %c0_i32, %c0_i32_0, %c0_i32_1 : i32, i32, i32
  }
  func.func @transform_21(%arg0: i32) -> (i32, i32) {
    %c0_i32 = arith.constant 0 : i32
    %c0_i32_0 = arith.constant 0 : i32
    %c0_i32_1 = arith.constant 0 : i32
    return %c0_i32, %c0_i32_0 : i32, i32
  }
  func.func @transform_22(%arg0: i32) -> (i32, i32) {
    %c0_i32 = arith.constant 0 : i32
    %c0_i32_0 = arith.constant 0 : i32
    %c0_i32_1 = arith.constant 0 : i32
    return %c0_i32, %c0_i32_0 : i32, i32
  }
  func.func @transform_23(%arg0: i32) -> (i32, i32) {
    %c0_i32 = arith.constant 0 : i32
    %c0_i32_0 = arith.constant 0 : i32
    %c0_i32_1 = arith.constant 0 : i32
    return %c0_i32, %c0_i32_0 : i32, i32
  }
  func.func @transform_24(%arg0: i32) -> (i32, i32) {
    %c0_i32 = arith.constant 0 : i32
    %c0_i32_0 = arith.constant 0 : i32
    %c0_i32_1 = arith.constant 0 : i32
    return %c0_i32, %c0_i32_0 : i32, i32
  }
  func.func @transform_25(%arg0: i32) -> (i32, i32) {
    %c0_i32 = arith.constant 0 : i32
    %c0_i32_0 = arith.constant 0 : i32
    %c0_i32_1 = arith.constant 0 : i32
    return %c0_i32, %c0_i32_0 : i32, i32
  }
  func.func @transform_26(%arg0: i32) -> (i32, i32) {
    %c0_i32 = arith.constant 0 : i32
    %c0_i32_0 = arith.constant 0 : i32
    %c0_i32_1 = arith.constant 0 : i32
    return %c0_i32, %c0_i32_0 : i32, i32
  }
  func.func @transform_27(%arg0: i32) -> (i32, i32, i32) {
    %c0_i32 = arith.constant 0 : i32
    %c0_i32_0 = arith.constant 0 : i32
    %c0_i32_1 = arith.constant 0 : i32
    return %arg0, %c0_i32, %c0_i32_0 : i32, i32, i32
  }
}

</mosaic_0001>

<bundles_post_ra>
// kernel: adt_forward.1
= control target key start
LH: loop header
LB: loop body
LE: loop exit
PB: predicated region body
PF: predicated region fallthrough
CT: control target
= control target key end

     0   :  { %s4721_s0 = inlined_call_operand.vmem [shape: f32[2,1,8], index: 0, kind: input, shape index: {}]   ;;  %s4722_s1 = inlined_call_operand.vmem [shape: f32[2,8,18], index: 1, kind: input, shape index: {}]   ;;  %s4723_s2 = inlined_call_operand.vmem [shape: f32[2,8,32], index: 2, kind: input, shape index: {}]   ;;  %s4724_s3 = inlined_call_operand.vmem [shape: f32[32,32], index: 3, kind: input, shape index: {}]   ;;  %s4725_s4 = inlined_call_operand.vmem [shape: f32[8,128], index: 4, kind: input, shape index: {}]   ;;  %s4726_s5 = inlined_call_operand.hbm [shape: bf16[18,128], index: 5, kind: input, shape index: {}]   ;;  %s4727_s6 = inlined_call_operand.vmem [shape: f32[1,128], index: 6, kind: input, shape index: {}, may-alias: {6,24,26}]   ;;  %s4728_s7 = inlined_call_operand.vmem [shape: f32[1,32], index: 7, kind: input, shape index: {}, may-alias: {7,21}]   ;;  %s4729_s8 = inlined_call_operand.vmem [shape: f32[1,32], index: 8, kind: input, shape index: {}, may-alias: {8,22}]   ;;  %s4730_s9 = inlined_call_operand.vmem [shape: f32[2,1,32], index: 9, kind: input, shape index: {}, may-alias: {9,15}]   ;;  %s4731_s10 = inlined_call_operand.vmem [shape: f32[2,1,32], index: 10, kind: input, shape index: {}, may-alias: {10,14,16,20}]   ;;  %s4732_s11 = inlined_call_operand.vmem [shape: bf16[2,32,96], index: 11, kind: input, shape index: {}]   ;;  %s4733_s12 = inlined_call_operand.vmem [shape: f32[2,1,96], index: 12, kind: input, shape index: {}]   ;;  %s4734_s13 = inlined_call_operand.vmem [shape: bf16[2,32,32], index: 13, kind: input, shape index: {}]   ;;  %s4735_s14 = inlined_call_operand.vmem [shape: f32[2,1,32], index: 14, kind: input, shape index: {}, may-alias: {10,14,16,20}]   ;;  %s4736_s15 = inlined_call_operand.vmem [shape: f32[2,1,32], index: 15, kind: input, shape index: {}, may-alias: {9,15}]   ;;  %s4737_s16 = inlined_call_operand.vmem [shape: f32[2,1,32], index: 16, kind: input, shape index: {}, may-alias: {10,14,16,20}]   ;;  %s4738_s17 = inlined_call_operand.vmem [shape: bf16[2,32,128], index: 17, kind: input, shape index: {}]   ;;  %s4739_s18 = inlined_call_operand.vmem [shape: f32[2,1,128], index: 18, kind: input, shape index: {}]   ;;  %s4740_s19 = inlined_call_operand.vmem [shape: bf16[2,128,32], index: 19, kind: input, shape index: {}]   ;;  %s4741_s20 = inlined_call_operand.vmem [shape: f32[2,1,32], index: 20, kind: input, shape index: {}, may-alias: {10,14,16,20}]   ;;  %s4742_s21 = inlined_call_operand.vmem [shape: f32[1,32], index: 21, kind: input, shape index: {}, may-alias: {7,21}]   ;;  %s4743_s22 = inlined_call_operand.vmem [shape: f32[1,32], index: 22, kind: input, shape index: {}, may-alias: {8,22}]   ;;  %s4744_s23 = inlined_call_operand.vmem [shape: bf16[32,128], index: 23, kind: input, shape index: {}]   ;;  %s4745_s24 = inlined_call_operand.vmem [shape: f32[1,128], index: 24, kind: input, shape index: {}, may-alias: {6,24,26}]   ;;  %s4746_s25 = inlined_call_operand.vmem [shape: bf16[32,128], index: 25, kind: input, shape index: {}]   ;;  %s4747_s26 = inlined_call_operand.vmem [shape: f32[1,128], index: 26, kind: input, shape index: {}, may-alias: {6,24,26}]   ;;  %s4748_s27 = inlined_call_operand.vmem [shape: f32[2,8,128], index: 27, kind: output, shape index: {}]  }
   0x1   :  { %4767 = sst [smem:[#allocation5_spill]] %s4721_s0 }
   0x2   :  { %4768 = sst [smem:[#allocation6_spill]] %s4722_s1 }
   0x3   :  { %4769 = sst [smem:[#allocation7_spill]] %s4723_s2 }
   0x4   :  { %4770 = sst [smem:[#allocation8_spill]] %s4724_s3 }
   0x5   :  { %4771 = sst [smem:[#allocation9_spill]] %s4725_s4 }
   0x6   :  { %4772 = sst [smem:[#allocation10_spill]] %s4726_s5 }
   0x7   :  { %4773 = sst [smem:[#allocation11_spill]] %s4727_s6 }
   0x8   :  { %4774 = sst [smem:[#allocation12_spill]] %s4728_s7 }
   0x9   :  { %4775 = sst [smem:[#allocation13_spill]] %s4729_s8 }
   0xa   :  { %4776 = sst [smem:[#allocation14_spill]] %s4730_s9 }
   0xb   :  { %4777 = sst [smem:[#allocation15_spill]] %s4731_s10 }
   0xc   :  { %4778 = sst [smem:[#allocation16_spill]] %s4732_s11 }
   0xd   :  { %32 = vsyncpa [#allocation3], 0  ;;  %s4139_s7 = smov 0  }
   0xe LB: > { %s4145_s4 = sadd.s32 4294967295, %s3983_s7   ;;  %p3326_p0 = scmp.ge.s32.totalorder %s3983_s7, 1  ;;  %s3983_s7 = sphi %s4139_s7, %s38_s7  }
   0xf   : > { %p651_p1 = scmp.lt.s32.totalorder %s3983_s7, 3  ;;  %s3985_s8 = smov [#allocation2]  }
  0x10   : > { %s669_s30 = sshll.u32 %s3985_s8, 4  ;;  %p4754_p3 = scmp.eq.s32.totalorder %s4145_s4, 0  ;;  %s670_s30 = int_to_ptr.vmem [resolvable:$true] %s669_s30 }
  0x11   : > { %p4149_p2 = pnand %p3326_p0, %p651_p1  ;;  %s4781_s10 = sld [smem:[#allocation10_spill]] }
  0x13   : > { %s4779_s9 = scalar_select %p4149_p2, 1, 0 }
  0x14   : > { %p3757_p4 = pneg %p4149_p2 }
  0x16   : > { %p4158_p5 = pnand %p4754_p3, %p3757_p4 }
  0x17   : > { %s3945_s29 = scalar_lea.hbm %s4781_s10, 192 }
  0x18   : > { %p3946_p6 = scmp.ne.s32.totalorder %s4781_s10, %s3945_s29  ;;  %p3947_p7 = pneg %p4158_p5 }
  0x19   : > { %p3952_p10 = scmp.lt.u32.totalorder %s3945_s29, %s4781_s10 }
  0x1a   : > { %p3948_p8 = pnand %p3947_p7, %p3946_p6 }
  0x1c   : > { %p3949_p9 = pneg %p3948_p8 }
  0x1e   : > { %p3954_p11 = pnand %p3952_p10, %p3949_p9 }
  0x20   : > { %3957 = shalt.err (!%p3954_p11)
}
  0x21   : > { %s3958_s3 = scalar_lea.vmem %s670_s30, 192  ;;  %p3966_p1 = scmp.lt.s32.totalorder %s670_s30, %s670_s30 }
  0x22   : > { %p3959_p12 = scmp.ne.s32.totalorder %s670_s30, %s3958_s3  ;;  %p3967_p4 = scmp.lt.s32.totalorder %s3958_s3, %s3958_s3 }
  0x24   : > { %p3961_p13 = pnand %p3959_p12, %p3947_p7  ;;  %p3968_p3 = por %p3967_p4, %p3966_p1 }
  0x26   : > { %p3962_p0 = pneg %p3961_p13 }
  0x28   : > { %p3969_p2 = pnand %p3968_p3, %p3962_p0 }
  0x2a   : > { %3972 = shalt.err (!%p3969_p2)
}
  0x2b   : > { %s3986_s8 = smov 64   ;;  %s3987_s28 = smov 4  }
  0x2c   : > { %3760 = dma.hbm_to_vmem [thread:$0]  (!%p4158_p5), %s4781_s10, 192, %s670_s30, [#allocation3], %s3986_s8, %s3986_s8, %s3987_s28  }
  0x2d   : > { %p4782_p6 = scmp.ne.s32.totalorder %s4779_s9, 0 }
  0x2e   : > { %p4783_p8 = scmp.eq.s32.totalorder (!%p4782_p6), %s4145_s4, 0 }
  0x2f   : > { %768 = sbr.rel (%p4782_p6) target bundleno = 6956 (0x1b2c), region = 128 }
  0x36   : > { %3978 = dma.done.wait (%p4783_p8), [#allocation3], 192   ;;  %p4784_p7 = pmov %p4783_p8 }
  0x37   : > { %p845_p2 = scmp.lt.s32.totalorder %s4145_s4, 1  ;;  %v3988_v0 = vmov 0.0   ;;  %vm3989_vm0 = vmmov 0   ;;  %vm886_vm1 = vcmask 1040384   ;;  %s4785_s29 = sld [smem:[#allocation6_spill]]  ;;  %v3785_v1 = vld [vmem:[#allocation2] sm:$0xff]  }
  0x38   : > { %3980 = vsyncadd (%p4784_p7), [#allocation3], 4294967104  ;;  %3553 = vmatprep.subr.bf16.mxu0 %v3988_v0  ;;  %3557 = vmatprep.mubr.msk.bf16.mxu0 %vm3989_vm0, %v3988_v0  ;;  %s4786_s3 = sld [smem:[#allocation7_spill]]  ;;  %v3786_v2 = vld [vmem:[#allocation2 + $0x8] ss:$0 sps:$4 sm:$0x11]  }
  0x39   : > { %s4802_s4 = smov (!%p845_p2, %s4145_s4), 1  ;;  %3554 = vmatpush3.bf16.msra.mxu0 %v3785_v1  ;;  %vm882_vm2 = vcmask 146432   ;;  %v888_v5 = vsel %vm886_vm1, %v3786_v2, 0  ;;  %s3990_s28 = smov 32   ;;  %vm935_vm3 = vcmask 261120   ;;  %vm1097_vm4 = vcmask 130048  }
  0x3a   : > { %s4192_s30 = sshll.u32 %s4802_s4, 3  ;;  %3555 = vmatprep.subr.bf16.mxu0 %v3988_v0  ;;  %s4758_s0 = smov 96   ;;  %vm1095_vm5 = vcmask 64512   ;;  %vm1099_vm6 = vcmask 195584  }
  0x3b   : > { %s4756_s1 = smov 64   ;;  %s4788_s2 = sld [smem:[#allocation12_spill]] }
  0x3c   : > { %s4789_s9 = sld [smem:[#allocation13_spill]]  ;;  %s4793_s11 = sld [smem:[#allocation15_spill]] }
  0x3d   : > { %s851_s6 = scalar_lea.vmem %s4785_s29, %s4192_s30  ;;  %3556 = vmatpush3.bf16.msra.mxu0 %v888_v5  ;;  %s4787_s29 = sld [smem:[#allocation11_spill]] }
  0x3e   : > { %s855_s8 = scalar_lea.vmem %s4786_s3, %s4192_s30  ;;  %v861_v3 = vld [vmem:[%s851_s6] sm:$0xff]  ;;  %s4790_s6 = sld [smem:[#allocation9_spill]] }
  0x3f   : > { %v930_v4 = vld [vmem:[%s855_s8] sm:$0xff]  ;;  %v862_v6 = vpack.c.bf16 %v861_v3, %v861_v3  ;;  %s3993_s3 = smov 8   ;;  %s3994_s8 = smov 24  }
  0x40   : > { %966 = vrot.lane.b32.xlu0 %v930_v4, %s3990_s28  ;;  %1034 = vrot.lane.b32.xlu1 %v930_v4, %s4758_s0  ;;  %s4760_s5 = smov 48  }
  0x41   : > { %3558 = vmatmul.mubr.msk.bf16.vlgmr.msra.gmra.mrb[0].mxu0 %vm882_vm2, %v862_v6  ;;  %v4221_v37 = vld [vmem:[%s4788_s2] ss:$0 sm:$0xff]  ;;  %s4791_s2 = sld [smem:[#allocation16_spill]] }
  0x42   : > { %v3339_v46 = vld [vmem:[%s4789_s9] ss:$0 sm:$0xff]  ;;  %s4795_s9 = sld [smem:[#allocation8_spill]] }
  0x43   : > { %v3334_v8 = vld [vmem:[%s4787_s29] ss:$0 sm:$0xff]  ;;  %s4792_s29 = sld [smem:[#allocation14_spill]] }
  0x44   : > { %1000 = vrot.lane.b32.xlu0 %v930_v4, %s4756_s1 }
  0xb2   : > { %v967_v7 = vpop.permute.xlu0 %966  ;;  %v1035_v17 = vpop.permute.xlu1 %1034 }
  0xb6   : > { %v1001_v10 = vpop.permute.xlu0 %1000 }
 0x114   : > { %v924_v9 = vpop.f32.mrb[0].mxu0 }
 0x115   : > { %v925_v11 = vadd.f32 %v3334_v8, %v924_v9  ;;  %v3559_v12 = vpop.f32.mrb[1].mxu0  ;;  %v933_v9 = vld [vmem:[%s4790_s6] sm:$0xff]  ;;  %s4794_s6 = sld [smem:[#allocation5_spill]] }
 0x116   : > { %v927_v13 = vpop.f32.mrb[2].mxu0 }
 0x117   : > { %v1003_v14 = vadd.f32 %v1001_v10, %v925_v11  ;;  %v3560_v15 = vpop.f32.mrb[3].mxu0  ;;  %v969_v16 = vadd.f32 %v967_v7, %v925_v11  ;;  %v1037_v18 = vadd.f32 %v1035_v17, %v925_v11  ;;  %v934_v38 = vadd.f32 %v930_v4, %v925_v11 }
 0x119   : > { %1005 = vrot.lane.b32.xlu0 %v1003_v14, %s4756_s1  ;;  %971 = vrot.lane.b32.xlu1 %v969_v16, %s4758_s0  ;;  %v936_v39 = vsel %vm935_vm3, %v934_v38, 0.0 }
 0x11d   : > { %1039 = vrot.lane.b32.xlu1 %v1037_v18, %s3990_s28 }
 0x18b   : > { %v1006_v19 = vpop.permute.xlu0 %1005  ;;  %v972_v20 = vpop.permute.xlu1 %971 }
 0x18c   : > { %v1008_v21 = vsel %vm935_vm3, %v1006_v19, 0.0  ;;  %v974_v22 = vsel %vm935_vm3, %v972_v20, 0.0 }
 0x18d   : > { %1009 = vadd.xlane.f32.xlu1 %v1008_v21  ;;  %975 = vadd.xlane.f32.xlu0 %v974_v22 }
 0x18f   : > { %v1040_v23 = vpop.permute.xlu1 %1039 }
 0x190   : > { %v1042_v24 = vsel %vm935_vm3, %v1040_v23, 0.0 }
 0x191   : > { %1043 = vadd.xlane.f32.xlu0 %v1042_v24 }
 0x21a   : > { %v976_v25 = vpop.xlane.xlu0 %975  ;;  %v1010_v26 = vpop.xlane.xlu1 %1009 }
 0x21b   : > { %v977_v27 = vmul.f32 0.03125, %v976_v25  ;;  %v1011_v28 = vmul.f32 0.03125, %v1010_v26 }
 0x21d   : > { %v978_v29 = vsub.f32 %v969_v16, %v977_v27  ;;  %v1012_v30 = vsub.f32 %v1003_v14, %v1011_v28 }
 0x21e   : > { %v1044_v31 = vpop.xlane.xlu0 %1043 }
 0x21f   : > { %v1045_v32 = vmul.f32 0.03125, %v1044_v31  ;;  %v979_v33 = vmul.f32 %v978_v29, %v978_v29  ;;  %v1013_v34 = vmul.f32 %v1012_v30, %v1012_v30 }
 0x221   : > { %v1046_v35 = vsub.f32 %v1037_v18, %v1045_v32  ;;  %981 = vrot.lane.b32.xlu0 %v979_v33, %s4758_s0  ;;  %1015 = vrot.lane.b32.xlu1 %v1013_v34, %s4756_s1 }
 0x223   : > { %v1047_v36 = vmul.f32 %v1046_v35, %v1046_v35 }
 0x225   : > { %1049 = vrot.lane.b32.xlu1 %v1047_v36, %s3990_s28 }
 0x229   : > { %991 = vrot.lane.b32.xlu1 %v4221_v37, %s3990_s28 }
 0x240   : > { %937 = vadd.xlane.f32.xlu0 %v936_v39 }
 0x293   : > { %v982_v40 = vpop.permute.xlu0 %981  ;;  %v1016_v41 = vpop.permute.xlu1 %1015 }
 0x294   : > { %v984_v42 = vsel %vm935_vm3, %v982_v40, 0.0  ;;  %v1018_v43 = vsel %vm935_vm3, %v1016_v41, 0.0 }
 0x295   : > { %985 = vadd.xlane.f32.xlu1 %v984_v42  ;;  %1019 = vadd.xlane.f32.xlu0 %v1018_v43 }
 0x297   : > { %v1050_v44 = vpop.permute.xlu1 %1049 }
 0x298   : > { %v1052_v45 = vsel %vm935_vm3, %v1050_v44, 0.0 }
 0x299   : > { %1053 = vadd.xlane.f32.xlu0 %v1052_v45 }
 0x29b   : > { %v992_v52 = vpop.permute.xlu1 %991 }
 0x2a6   : > { %1059 = vrot.lane.b32.xlu1 %v4221_v37, %s4758_s0 }
 0x2aa   : > { %995 = vrot.lane.b32.xlu1 %v3339_v46, %s3990_s28 }
 0x2ae   : > { %1063 = vrot.lane.b32.xlu1 %v3339_v46, %s4758_s0 }
 0x2af   : > { %1025 = vrot.lane.b32.xlu0 %v4221_v37, %s4756_s1 }
 0x2b3   : > { %1029 = vrot.lane.b32.xlu0 %v3339_v46, %s4756_s1 }
 0x2cd   : > { %v938_v47 = vpop.xlane.xlu0 %937 }
 0x2ce   : > { %v940_v48 = vmul.f32 0.03125, %v938_v47 }
 0x2d0   : > { %v941_v49 = vsub.f32 %v934_v38, %v940_v48 }
 0x2d2   : > { %v942_v50 = vmul.f32 %v941_v49, %v941_v49 }
 0x2d4   : > { %v943_v51 = vsel %vm935_vm3, %v942_v50, 0.0 }
 0x2d5   : > { %944 = vadd.xlane.f32.xlu0 %v943_v51 }
 0x322   : > { %v986_v53 = vpop.xlane.xlu1 %985  ;;  %v1020_v54 = vpop.xlane.xlu0 %1019 }
 0x323   : > { %v987_v55 = vmul.f32 0.03125, %v986_v53  ;;  %v1021_v56 = vmul.f32 0.03125, %v1020_v54 }
 0x325   : > { %v988_v57 = vadd.f32 1e-05, %v987_v55  ;;  %v1022_v58 = vadd.f32 1e-05, %v1021_v56  ;;  %v3787_v55 = vld [vmem:[%s4791_s2] sm:$0xff]   ;;  %v3788_v56 = vld [vmem:[%s4791_s2 + $0x8] sm:$0xff]  }
 0x326   : > { %v1054_v59 = vpop.xlane.xlu0 %1053  ;;  %v1060_v62 = vpop.permute.xlu1 %1059  ;;  %3561 = vmatprep.subr.bf16.mxu1 %v3787_v55 }
 0x327   : > { %3819 = vrsqrt.f32 %v988_v57  ;;  %v1055_v60 = vmul.f32 0.03125, %v1054_v59  ;;  %3562 = vmatpush3.bf16.msra.mxu1 %v3787_v55 }
 0x328   : > { %3821 = vrsqrt.f32 %v1022_v58  ;;  %3563 = vmatprep.subr.bf16.mxu1 %v3788_v56 }
 0x329   : > { %v1056_v61 = vadd.f32 1e-05, %v1055_v60 }
 0x32a   : > { %v1026_v63 = vpop.permute.xlu0 %1025  ;;  %v996_v5 = vpop.permute.xlu1 %995 }
 0x32b   : > { %3823 = vrsqrt.f32 %v1056_v61  ;;  %3564 = vmatpush3.bf16.msra.mxu1 %v3788_v56 }
 0x32e   : > { %v1030_v10 = vpop.permute.xlu0 %1029  ;;  %v1064_v16 = vpop.permute.xlu1 %1063 }
 0x331   : > { %v3820_v1 = vpop.eup %3819 }
 0x332   : > { %v3822_v2 = vpop.eup %3821  ;;  %v990_v3 = vmul.f32 %v3820_v1, %v978_v29 }
 0x333   : > { %v1024_v4 = vmul.f32 %v3822_v2, %v1012_v30 }
 0x334   : > { %v994_v6 = vmul.f32 %v992_v52, %v990_v3 }
 0x335   : > { %v3824_v7 = vpop.eup %3823  ;;  %v1028_v8 = vmul.f32 %v1026_v63, %v1024_v4 }
 0x336   : > { %v1058_v11 = vmul.f32 %v3824_v7, %v1046_v35  ;;  %v998_v12 = vadd.f32 %v996_v5, %v994_v6 }
 0x337   : > { %v1032_v15 = vadd.f32 %v1030_v10, %v1028_v8  ;;  %v3340_v8 = vld [vmem:[%s4792_s29] ss:$0 sm:$0xff] }
 0x338   : > { %v1062_v13 = vmul.f32 %v1060_v62, %v1058_v11  ;;  %v999_v14 = vadd.f32 %v998_v12, %v933_v9  ;;  %v3341_v12 = vld [vmem:[%s4793_s11] ss:$0 sm:$0xff] }
 0x339   : > { %v1033_v17 = vadd.f32 %v1032_v15, %v933_v9 }
 0x33a   : > { %1069 = vrot.lane.b32.xlu1 %v999_v14, %s4758_s0  ;;  %v1066_v18 = vadd.f32 %v1064_v16, %v1062_v13 }
 0x33c   : > { %v1067_v19 = vadd.f32 %v1066_v18, %v933_v9 }
 0x33e   : > { %1073 = vrot.lane.b32.xlu1 %v1033_v17, %s4756_s1  ;;  %s3995_s1 = smov 16  }
 0x342   : > { %1077 = vrot.lane.b32.xlu1 %v1067_v19, %s3990_s28  ;;  %s847_s28 = scalar_lea.vmem %s4794_s6, %s4802_s4  ;;  %s4764_s4 = smov 80  }
 0x362   : > { %v945_v20 = vpop.xlane.xlu0 %944 }
 0x363   : > { %v946_v21 = vmul.f32 0.03125, %v945_v20 }
 0x365   : > { %v947_v22 = vadd.f32 1e-05, %v946_v21 }
 0x367   : > { %3825 = vrsqrt.f32 %v947_v22 }
 0x371   : > { %v3826_v23 = vpop.eup %3825 }
 0x372   : > { %v949_v24 = vmul.f32 %v3826_v23, %v941_v49 }
 0x374   : > { %v956_v25 = vmul.f32 %v4221_v37, %v949_v24 }
 0x376   : > { %v963_v26 = vadd.f32 %v3339_v46, %v956_v25 }
 0x378   : > { %v4247_v27 = vadd.f32 %v963_v26, %v933_v9 }
 0x37a   : > { %v1117_v28 = vsel %vm935_vm3, %v4247_v27, 0.0 }
 0x37b   : > { %1118 = vadd.xlane.f32.xlu1 %v1117_v28  ;;  %v3342_v28 = vld [vmem:[%s4733_s12] ss:$0 sm:$0xff] }
 0x3ac   : > { %v4251_v29 = vpop.permute.xlu1 %1069 }
 0x3ad   : > { %v1120_v30 = vsel %vm935_vm3, %v4251_v29, 0.0 }
 0x3ae   : > { %1121 = vadd.xlane.f32.xlu0 %v1120_v30 }
 0x3b0   : > { %v4255_v31 = vpop.permute.xlu1 %1073 }
 0x3b1   : > { %v1123_v32 = vsel %vm935_vm3, %v4255_v31, 0.0 }
 0x3b2   : > { %1124 = vadd.xlane.f32.xlu0 %v1123_v32 }
 0x3b4   : > { %v4259_v33 = vpop.permute.xlu1 %1077 }
 0x3b5   : > { %v1126_v34 = vsel %vm935_vm3, %v4259_v33, 0.0 }
 0x3b6   : > { %1127 = vadd.xlane.f32.xlu0 %v1126_v34 }
 0x408   : > { %v1119_v35 = vpop.xlane.xlu1 %1118 }
 0x409   : > { %v1129_v36 = vmul.f32 0.03125, %v1119_v35 }
 0x40b   : > { %v1133_v37 = vsub.f32 %v4247_v27, %v1129_v36 }
 0x40d   : > { %v1137_v38 = vmul.f32 %v1133_v37, %v1133_v37 }
 0x40f   : > { %v1141_v39 = vsel %vm935_vm3, %v1137_v38, 0.0 }
 0x410   : > { %1142 = vadd.xlane.f32.xlu0 %v1141_v39 }
 0x43b   : > { %v1122_v40 = vpop.xlane.xlu0 %1121 }
 0x43c   : > { %v1130_v41 = vmul.f32 0.03125, %v1122_v40 }
 0x43e   : > { %v1134_v42 = vsub.f32 %v4251_v29, %v1130_v41  ;;  %v1082_v41 = vlaneseq }
 0x43f   : > { %v1125_v43 = vpop.xlane.xlu0 %1124 }
 0x440   : > { %v1131_v44 = vmul.f32 0.03125, %v1125_v43  ;;  %v1138_v45 = vmul.f32 %v1134_v42, %v1134_v42  ;;  %v1080_v43 = vld [vmem:[%s847_s28] sm:$0x1] }
 0x442   : > { %v1135_v46 = vsub.f32 %v4255_v31, %v1131_v44  ;;  %v1144_v47 = vsel %vm935_vm3, %v1138_v45, 0.0 }
 0x443   : > { %1145 = vadd.xlane.f32.xlu0 %v1144_v47  ;;  %v1128_v48 = vpop.xlane.xlu0 %1127 }
 0x444   : > { %v1132_v49 = vmul.f32 0.03125, %v1128_v48  ;;  %v1139_v50 = vmul.f32 %v1135_v46, %v1135_v46 }
 0x446   : > { %v1136_v51 = vsub.f32 %v4259_v33, %v1132_v49  ;;  %v1147_v52 = vsel %vm935_vm3, %v1139_v50, 0.0 }
 0x447   : > { %1148 = vadd.xlane.f32.xlu1 %v1147_v52 }
 0x448   : > { %v1140_v53 = vmul.f32 %v1136_v51, %v1136_v51 }
 0x44a   : > { %v1150_v54 = vsel %vm935_vm3, %v1140_v53, 0.0 }
 0x44b   : > { %1151 = vadd.xlane.f32.xlu0 %v1150_v54 }
 0x49d   : > { %v1143_v57 = vpop.xlane.xlu0 %1142 }
 0x49e   : > { %v1153_v58 = vmul.f32 0.03125, %v1143_v57 }
 0x4a0   : > { %v1157_v59 = vadd.f32 1e-05, %v1153_v58 }
 0x4a2   : > { %3827 = vrsqrt.f32 %v1157_v59  ;;  %v1101_v59 = vld [vmem:[%s4795_s9] sm:$0xff] }
 0x4ac   : > { %v3828_v4 = vpop.eup %3827 }
 0x4ad   : > { %v1165_v7 = vmul.f32 %v3828_v4, %v1133_v37 }
 0x4af   : > { %v1175_v11 = vmul.f32 %v3340_v8, %v1165_v7 }
 0x4b1   : > { %v1185_v16 = vadd.f32 %v3341_v12, %v1175_v11 }
 0x4d0   : > { %v1146_v60 = vpop.xlane.xlu0 %1145 }
 0x4d1   : > { %v1154_v61 = vmul.f32 0.03125, %v1146_v60 }
 0x4d3   : > { %v1158_v62 = vadd.f32 1e-05, %v1154_v61  ;;  %v1103_v61 = vld [vmem:[%s4795_s9 + $0x10] sm:$0xff] }
 0x4d4   : > { %v1149_v63 = vpop.xlane.xlu1 %1148 }
 0x4d5   : > { %3829 = vrsqrt.f32 %v1158_v62  ;;  %v1155_v1 = vmul.f32 0.03125, %v1149_v63  ;;  %v1104_v62 = vld [vmem:[%s4795_s9 + $0x18] sm:$0xff]  ;;  %v1102_v63 = vld [vmem:[%s4795_s9 + $0x8] sm:$0xff]  ;;  %s4797_s9 = smov 96  }
 0x4d7   : > { %v1159_v2 = vadd.f32 1e-05, %v1155_v1 }
 0x4d8   : > { %v1152_v3 = vpop.xlane.xlu0 %1151 }
 0x4d9   : > { %3831 = vrsqrt.f32 %v1159_v2  ;;  %v1156_v5 = vmul.f32 0.03125, %v1152_v3 }
 0x4db   : > { %v1160_v6 = vadd.f32 1e-05, %v1156_v5 }
 0x4dd   : > { %3833 = vrsqrt.f32 %v1160_v6 }
 0x4df   : > { %v3830_v9 = vpop.eup %3829 }
 0x4e0   : > { %v1166_v10 = vmul.f32 %v3830_v9, %v1134_v42  ;;  %v1083_v42 = vshrl.u32 %v1082_v41, 7 }
 0x4e2   : > { %v1176_v13 = vmul.f32 %v3340_v8, %v1166_v10  ;;  %v1084_v44 = vsub.s32 0, %v1083_v42 }
 0x4e3   : > { %v3832_v14 = vpop.eup %3831 }
 0x4e4   : > { %v1167_v15 = vmul.f32 %v3832_v14, %v1135_v46  ;;  %v1186_v17 = vadd.f32 %v3341_v12, %v1176_v13  ;;  %v1085_v45 = vrot.slane %v1080_v43, %v1084_v44 }
 0x4e6   : > { %v1189_v18 = vpack.c.bf16 %v1186_v17, %v1185_v16  ;;  %v1177_v21 = vmul.f32 %v3340_v8, %v1167_v15 }
 0x4e7   : > { %v3834_v19 = vpop.eup %3833 }
 0x4e8   : > { %v1168_v20 = vmul.f32 %v3834_v19, %v1136_v51  ;;  %3565 = vmatprep.mubr.msk.bf16.mxu1 %vm935_vm3, %v1189_v18  ;;  %v1187_v23 = vadd.f32 %v3341_v12, %v1177_v21 }
 0x4ea   : > { %v1178_v22 = vmul.f32 %v3340_v8, %v1168_v20 }
 0x4ec   : > { %v1188_v24 = vadd.f32 %v3341_v12, %v1178_v22 }
 0x4ee   : > { %v1190_v25 = vpack.c.bf16 %v1188_v24, %v1187_v23 }
 0x4f0   : > { %3566 = vmatmul.mubr.msk.bf16.vlgmr.msra.gmra.mrb[0].mxu1 %vm935_vm3, %v1190_v25 }
 0x5c3   : > { %v3567_v26 = vpop.f32.mrb[0].mxu1 }
 0x5c4   : > { %v1254_v30 = vpop.f32.mrb[1].mxu1  ;;  %v1263_v34 = vadd.f32 %v3567_v26, %v3342_v28 }
 0x5c5   : > { %v3568_v32 = vpop.f32.mrb[2].mxu1  ;;  %v1255_v37 = vadd.f32 %v3342_v28, %v1254_v30 }
 0x5c6   : > { %v1266_v35 = vadd.f32 %v3568_v32, %v3342_v28  ;;  %v1257_v36 = vpop.f32.mrb[3].mxu1 }
 0x5c7   : > { %v1258_v38 = vadd.f32 %v3342_v28, %v1257_v36 }
 0x5c8   : > { %v4288_v39 = vpack.c.bf16 %v1266_v35, %v1263_v34 }
 0x5c9   : > { %v4290_v40 = vpack.c.bf16 %v1258_v38, %v1255_v37 }
 0x5ca   : > { %1279 = vrot.lane.b32.xlu0 %v4288_v39, %s4758_s0 }
 0x5cb   : > { %1277 = vrot.lane.b32.xlu1 %v4290_v40, %s4758_s0  ;;  %3573 = vmatprep.mubr.msk.bf16.mxu0 %vm1097_vm4, %v4290_v40  ;;  %s4796_s0 = smov 64  }
 0x5ce   : > { %1092 = vrot.lane.b32.xlu0 %v1085_v45, %s3994_s8 }
 0x5cf   : > { %1086 = vrot.lane.b32.xlu1 %v1085_v45, %s3993_s3  ;;  %s4799_s3 = smov 112  }
 0x5d3   : > { %1089 = vrot.lane.b32.xlu1 %v1085_v45, %s3995_s1  ;;  %s4762_s1 = smov 112  }
 0x63c   : > { %v1280_v48 = vpop.permute.xlu0 %1279 }
 0x63d   : > { %v1278_v46 = vpop.permute.xlu1 %1277  ;;  %v1291_v49 = vsel %vm1097_vm4, %v1280_v48, 0 }
 0x63e   : > { %v1288_v47 = vsel %vm1097_vm4, %v1278_v46, 0  ;;  %3745 = vmatprep.subr.msk.bf16.mxu0 %vm1097_vm4, %v1278_v46 }
 0x63f   : > { %3570 = vmatpush3.bf16.xpose.msra.mxu0 %v1288_v47 }
 0x640   : > { %3746 = vmatprep.subr.msk.bf16.mxu0 %vm1097_vm4, %v1280_v48  ;;  %v1093_v54 = vpop.permute.xlu0 %1092 }
 0x641   : > { %v1087_v50 = vpop.permute.xlu1 %1086 }
 0x642   : > { %v1096_v51 = vsel %vm1095_vm5, %v1080_v43, %v1087_v50 }
 0x645   : > { %v1090_v52 = vpop.permute.xlu1 %1089 }
 0x646   : > { %v1098_v53 = vsel %vm1097_vm4, %v1096_v51, %v1090_v52 }
 0x647   : > { %3572 = vmatpush3.bf16.xpose.msra.mxu0 %v1291_v49  ;;  %v1100_v55 = vsel %vm1099_vm6, %v1098_v53, %v1093_v54 }
 0x648   : > { %v1105_v56 = vsub.f32 1.0, %v1100_v55 }
 0x64a   : > { %v1106_v57 = vmul.f32 -1e+30, %v1105_v56 }
 0x64c   : > { %v1110_v58 = vrot.slane %v1106_v57, %v1084_v44 }
 0x64e   : > { %3574 = vmatmul.mubr.msk.bf16.vlgmr.msra.gmra.mrb[4].mxu0 %vm1097_vm4, %v4288_v39  ;;  %v4312_v60 = vadd.f32 %v1110_v58, %v1101_v59  ;;  %v4323_v3 = vadd.f32 %v1110_v58, %v1103_v61  ;;  %v4326_v5 = vadd.f32 %v1110_v58, %v1104_v62  ;;  %v4328_v7 = vadd.f32 %v1110_v58, %v1102_v63 }
 0x721   : > { %v3575_v1 = vpop.f32.mrb[4].mxu0 }
 0x722   : > { %v1327_v2 = vpop.f32.mrb[5].mxu0  ;;  %v1336_v12 = vadd.f32 %v3575_v1, %v4323_v3 }
 0x723   : > { %v1328_v4 = vadd.f32 %v1327_v2, %v4312_v60  ;;  %v3576_v6 = vpop.f32.mrb[6].mxu0 }
 0x724   : > { %v1330_v8 = vpop.f32.mrb[7].mxu0  ;;  %v1339_v9 = vadd.f32 %v3576_v6, %v4326_v5  ;;  %v1348_v15 = vsel %vm935_vm3, %v1336_v12, -inf }
 0x725   : > { %v1331_v10 = vadd.f32 %v1330_v8, %v4328_v7  ;;  %v1342_v11 = vsel %vm935_vm3, %v1328_v4, -inf }
 0x726   : > { %1343 = vmax.xlane.f32.xlu1 %v1342_v11  ;;  %v1351_v14 = vsel %vm935_vm3, %v1339_v9, -inf }
 0x727   : > { %v1345_v13 = vsel %vm935_vm3, %v1331_v10, -inf }
 0x728   : > { %1346 = vmax.xlane.f32.xlu0 %v1345_v13 }
 0x72a   : > { %1352 = vmax.xlane.f32.xlu1 %v1351_v14 }
 0x72c   : > { %1349 = vmax.xlane.f32.xlu0 %v1348_v15 }
 0x73b   : > { %1390 = vrot.lane.b32.xlu1 %v4288_v39, %s4796_s0 }
 0x7b3   : > { %v1344_v16 = vpop.xlane.xlu1 %1343 }
 0x7b4   : > { %v1354_v20 = vsub.f32 %v1328_v4, %v1344_v16 }
 0x7b5   : > { %v1347_v17 = vpop.xlane.xlu0 %1346 }
 0x7b6   : > { %v1355_v18 = vsub.f32 %v1331_v10, %v1347_v17  ;;  %v1358_v26 = vmul.f32 1.442695, %v1354_v20 }
 0x7b7   : > { %v1353_v19 = vpop.xlane.xlu1 %1352 }
 0x7b8   : > { %v1357_v21 = vsub.f32 %v1339_v9, %v1353_v19  ;;  %v1360_v22 = vmul.f32 1.442695, %v1355_v18 }
 0x7b9   : > { %v1350_v23 = vpop.xlane.xlu0 %1349 }
 0x7ba   : > { %v1364_v24 = vmul.f32 1.442695, %v1357_v21  ;;  %v1356_v25 = vsub.f32 %v1336_v12, %v1350_v23 }
 0x7bb   : > { %v1391_v42 = vpop.permute.xlu1 %1390 }
 0x7bc   : > { %3835 = vpow2.f32 %v1364_v24  ;;  %v1362_v28 = vmul.f32 1.442695, %v1356_v25 }
 0x7bd   : > { %3837 = vpow2.f32 %v1360_v22 }
 0x7be   : > { %3839 = vpow2.f32 %v1362_v28 }
 0x7bf   : > { %3841 = vpow2.f32 %v1358_v26 }
 0x7c6   : > { %v3836_v30 = vpop.eup %3835 }
 0x7c7   : > { %v3838_v32 = vpop.eup %3837  ;;  %v1375_v34 = vsel %vm935_vm3, %v3836_v30, 0.0 }
 0x7c8   : > { %v3840_v35 = vpop.eup %3839  ;;  %1376 = vadd.xlane.f32.xlu1 %v1375_v34  ;;  %v1369_v38 = vsel %vm935_vm3, %v3838_v32, 0.0 }
 0x7c9   : > { %v1372_v36 = vsel %vm935_vm3, %v3840_v35, 0.0  ;;  %v3842_v37 = vpop.eup %3841 }
 0x7ca   : > { %1373 = vadd.xlane.f32.xlu0 %v1372_v36  ;;  %v1366_v41 = vsel %vm935_vm3, %v3842_v37, 0.0 }
 0x7cc   : > { %1370 = vadd.xlane.f32.xlu1 %v1369_v38 }
 0x7ce   : > { %1367 = vadd.xlane.f32.xlu0 %v1366_v41 }
 0x7dd   : > { %1455 = vrot.lane.b32.xlu1 %v4290_v40, %s4764_s4 }
 0x7e1   : > { %1451 = vrot.lane.b32.xlu1 %v4290_v40, %s4762_s1 }
 0x7e4   : > { %1388 = vrot.lane.b32.xlu0 %v4290_v40, %s4796_s0 }
 0x7e8   : > { %1457 = vrot.lane.b32.xlu0 %v4288_v39, %s4764_s4  ;;  %s4798_s4 = smov 80  }
 0x7ec   : > { %1453 = vrot.lane.b32.xlu0 %v4288_v39, %s4762_s1 }
 0x855   : > { %v1377_v43 = vpop.xlane.xlu1 %1376 }
 0x857   : > { %v1374_v44 = vpop.xlane.xlu0 %1373 }
 0x858   : > { %3843 = vrcp.f32 %v1374_v44 }
 0x859   : > { %v1371_v45 = vpop.xlane.xlu1 %1370 }
 0x85a   : > { %3845 = vrcp.f32 %v1371_v45 }
 0x85b   : > { %3847 = vrcp.f32 %v1377_v43  ;;  %v1368_v46 = vpop.xlane.xlu0 %1367 }
 0x85c   : > { %3849 = vrcp.f32 %v1368_v46 }
 0x85d   : > { %v1456_v51 = vpop.permute.xlu1 %1455 }
 0x85e   : > { %v1466_v61 = vsel %vm1097_vm4, %v1456_v51, 0 }
 0x85f   : > { %v1389_v47 = vpop.permute.xlu0 %1388 }
 0x860   : > { %3577 = vmatprep.subr.bf16.mxu1 %v1389_v47 }
 0x861   : > { %3578 = vmatpush3.bf16.msra.mxu1 %v1389_v47  ;;  %v1452_v59 = vpop.permute.xlu1 %1451 }
 0x862   : > { %3579 = vmatprep.subr.bf16.mxu1 %v1391_v42  ;;  %v3844_v48 = vpop.eup %3843 }
 0x863   : > { %v1383_v53 = vmul.f32 %v3844_v48, %v3840_v35  ;;  %v1458_v62 = vpop.permute.xlu0 %1457 }
 0x864   : > { %v3846_v49 = vpop.eup %3845  ;;  %v1469_v63 = vsel %vm1097_vm4, %v1458_v62, 0 }
 0x865   : > { %v3848_v50 = vpop.eup %3847  ;;  %3580 = vmatpush3.bf16.msra.mxu1 %v1391_v42  ;;  %v1381_v55 = vmul.f32 %v3846_v49, %v3838_v32 }
 0x866   : > { %v3850_v52 = vpop.eup %3849  ;;  %3747 = vmatprep.subr.msk.bf16.mxu1 %vm1097_vm4, %v1456_v51  ;;  %v1385_v56 = vmul.f32 %v3848_v50, %v3836_v30 }
 0x867   : > { %v1379_v54 = vmul.f32 %v3850_v52, %v3842_v37  ;;  %v1454_v1 = vpop.permute.xlu0 %1453 }
 0x868   : > { %v1387_v58 = vpack.c.bf16 %v1385_v56, %v1383_v53 }
 0x869   : > { %v1386_v57 = vpack.c.bf16 %v1381_v55, %v1379_v54 }
 0x86b   : > { %3581 = vmatprep.mubr.msk.bf16.mxu1 %vm935_vm3, %v1386_v57 }
 0x86c   : > { %3582 = vmatmul.mubr.msk.bf16.vlgmr.msra.gmra.mrb[4].mxu1 %vm935_vm3, %v1387_v58 }
 0x86d   : > { %3589 = vmatprep.mubr.msk.bf16.mxu1 %vm1097_vm4, %v1452_v59 }
 0x86e   : > { %3586 = vmatpush3.bf16.xpose.msra.mxu1 %v1466_v61 }
 0x86f   : > { %3748 = vmatprep.subr.msk.bf16.mxu1 %vm1097_vm4, %v1458_v62 }
 0x876   : > { %3588 = vmatpush3.bf16.xpose.msra.mxu1 %v1469_v63 }
 0x87d   : > { %3590 = vmatmul.mubr.msk.bf16.vlgmr.msra.gmra.mrb[8].mxu1 %vm1097_vm4, %v1454_v1 }
 0x93f   : > { %v4361_v2 = vpop.f32.mrb[4].mxu1 }
 0x940   : > { %v4363_v4 = vpop.f32.mrb[5].mxu1 }
 0x941   : > { %v4365_v6 = vpop.f32.mrb[6].mxu1 }
 0x942   : > { %v1450_v8 = vpack.c.bf16 %v4365_v6, %v4361_v2  ;;  %v4369_v9 = vpop.f32.mrb[7].mxu1 }
 0x943   : > { %v1449_v10 = vpack.c.bf16 %v4369_v9, %v4363_v4 }
 0x950   : > { %v3591_v11 = vpop.f32.mrb[8].mxu1 }
 0x951   : > { %v1505_v12 = vpop.f32.mrb[9].mxu1  ;;  %v1514_v19 = vadd.f32 %v3591_v11, %v4323_v3  ;;  %v3790_v11 = vld [vmem:[%s4734_s13] sm:$0xff]  }
 0x952   : > { %v1506_v13 = vadd.f32 %v1505_v12, %v4312_v60  ;;  %v3592_v14 = vpop.f32.mrb[10].mxu1 }
 0x953   : > { %v1508_v15 = vpop.f32.mrb[11].mxu1  ;;  %v1517_v16 = vadd.f32 %v3592_v14, %v4326_v5  ;;  %v1526_v22 = vsel %vm935_vm3, %v1514_v19, -inf }
 0x954   : > { %v1509_v17 = vadd.f32 %v1508_v15, %v4328_v7  ;;  %v1520_v18 = vsel %vm935_vm3, %v1506_v13, -inf }
 0x955   : > { %1521 = vmax.xlane.f32.xlu1 %v1520_v18  ;;  %v1529_v21 = vsel %vm935_vm3, %v1517_v16, -inf }
 0x956   : > { %v1523_v20 = vsel %vm935_vm3, %v1509_v17, -inf }
 0x957   : > { %1524 = vmax.xlane.f32.xlu0 %v1523_v20 }
 0x959   : > { %1530 = vmax.xlane.f32.xlu1 %v1529_v21 }
 0x95b   : > { %1527 = vmax.xlane.f32.xlu0 %v1526_v22 }
 0x9e2   : > { %v1522_v23 = vpop.xlane.xlu1 %1521 }
 0x9e3   : > { %v1532_v28 = vsub.f32 %v1506_v13, %v1522_v23 }
 0x9e4   : > { %v1525_v24 = vpop.xlane.xlu0 %1524 }
 0x9e5   : > { %v1533_v25 = vsub.f32 %v1509_v17, %v1525_v24  ;;  %v1536_v37 = vmul.f32 1.442695, %v1532_v28 }
 0x9e6   : > { %v1531_v26 = vpop.xlane.xlu1 %1530 }
 0x9e7   : > { %v1535_v30 = vsub.f32 %v1517_v16, %v1531_v26  ;;  %v1538_v32 = vmul.f32 1.442695, %v1533_v25 }
 0x9e8   : > { %v1528_v34 = vpop.xlane.xlu0 %1527 }
 0x9e9   : > { %v1542_v35 = vmul.f32 1.442695, %v1535_v30  ;;  %v1534_v36 = vsub.f32 %v1514_v19, %v1528_v34  ;;  %v3361_v19 = vld [vmem:[%s4735_s14] ss:$0 sm:$0xff] }
 0x9eb   : > { %3851 = vpow2.f32 %v1542_v35  ;;  %v1540_v38 = vmul.f32 1.442695, %v1534_v36 }
 0x9ec   : > { %3853 = vpow2.f32 %v1538_v32 }
 0x9ed   : > { %3855 = vpow2.f32 %v1540_v38 }
 0x9ee   : > { %3857 = vpow2.f32 %v1536_v37 }
 0x9f5   : > { %v3852_v41 = vpop.eup %3851 }
 0x9f6   : > { %v3854_v42 = vpop.eup %3853  ;;  %v1553_v43 = vsel %vm935_vm3, %v3852_v41, 0.0 }
 0x9f7   : > { %v3856_v44 = vpop.eup %3855  ;;  %1554 = vadd.xlane.f32.xlu1 %v1553_v43  ;;  %v1547_v47 = vsel %vm935_vm3, %v3854_v42, 0.0 }
 0x9f8   : > { %v1550_v45 = vsel %vm935_vm3, %v3856_v44, 0.0  ;;  %v3858_v46 = vpop.eup %3857 }
 0x9f9   : > { %1551 = vadd.xlane.f32.xlu0 %v1550_v45  ;;  %v1544_v48 = vsel %vm935_vm3, %v3858_v46, 0.0 }
 0x9fb   : > { %1548 = vadd.xlane.f32.xlu1 %v1547_v47 }
 0x9fd   : > { %1545 = vadd.xlane.f32.xlu0 %v1544_v48 }
 0xa0c   : > { %1568 = vrot.lane.b32.xlu1 %v4288_v39, %s4760_s5  ;;  %v3789_v39 = vld [vmem:[%s4734_s13 + $0x8] sm:$0xff]  }
 0xa13   : > { %1566 = vrot.lane.b32.xlu0 %v4290_v40, %s4760_s5 }
 0xa84   : > { %v1555_v49 = vpop.xlane.xlu1 %1554 }
 0xa86   : > { %v1552_v50 = vpop.xlane.xlu0 %1551 }
 0xa87   : > { %3859 = vrcp.f32 %v1552_v50 }
 0xa88   : > { %v1549_v51 = vpop.xlane.xlu1 %1548 }
 0xa89   : > { %3861 = vrcp.f32 %v1549_v51  ;;  %v3791_v51 = vld [vmem:[%s4738_s17] sm:$0xff]  }
 0xa8a   : > { %3863 = vrcp.f32 %v1555_v49  ;;  %v1546_v52 = vpop.xlane.xlu0 %1545  ;;  %3613 = vmatprep.subr.bf16.mxu1 %v3791_v51 }
 0xa8b   : > { %3865 = vrcp.f32 %v1546_v52  ;;  %3614 = vmatpush3.bf16.msra.mxu1 %v3791_v51  ;;  %v3792_v52 = vld [vmem:[%s4738_s17 + $0x8] sm:$0xff]  }
 0xa8c   : > { %v1569_v54 = vpop.permute.xlu1 %1568  ;;  %3615 = vmatprep.subr.bf16.mxu1 %v3792_v52 }
 0xa8e   : > { %v1567_v53 = vpop.permute.xlu0 %1566 }
 0xa8f   : > { %3593 = vmatprep.subr.bf16.mxu0 %v1567_v53  ;;  %3616 = vmatpush3.bf16.msra.mxu1 %v3792_v52 }
 0xa90   : > { %3594 = vmatpush3.bf16.msra.mxu0 %v1567_v53 }
 0xa91   : > { %3595 = vmatprep.subr.bf16.mxu0 %v1569_v54  ;;  %v3860_v55 = vpop.eup %3859 }
 0xa92   : > { %v1561_v58 = vmul.f32 %v3860_v55, %v3856_v44 }
 0xa93   : > { %v3862_v56 = vpop.eup %3861 }
 0xa94   : > { %v3864_v40 = vpop.eup %3863  ;;  %3596 = vmatpush3.bf16.msra.mxu0 %v1569_v54  ;;  %v1559_v61 = vmul.f32 %v3862_v56, %v3854_v42 }
 0xa95   : > { %v3866_v57 = vpop.eup %3865  ;;  %3601 = vmatprep.subr.bf16.mxu0 %v3789_v39  ;;  %v1563_v62 = vmul.f32 %v3864_v40, %v3852_v41 }
 0xa96   : > { %v1557_v59 = vmul.f32 %v3866_v57, %v3858_v46 }
 0xa97   : > { %v1565_v1 = vpack.c.bf16 %v1563_v62, %v1561_v58 }
 0xa98   : > { %v1564_v63 = vpack.c.bf16 %v1559_v61, %v1557_v59 }
 0xa9a   : > { %3597 = vmatprep.mubr.msk.bf16.mxu0 %vm935_vm3, %v1564_v63 }
 0xa9b   : > { %3598 = vmatmul.mubr.msk.bf16.vlgmr.msra.gmra.mrb[8].mxu0 %vm935_vm3, %v1565_v1 }
 0xa9c   : > { %3602 = vmatpush3.bf16.msra.mxu0 %v3789_v39 }
 0xa9d   : > { %3607 = vmatprep.subr.bf16.mxu0 %v3790_v11 }
 0xb6e   : > { %v3599_v12 = vpop.f32.mrb[8].mxu0 }
 0xb6f   : > { %v1612_v13 = vpop.f32.mrb[9].mxu0 }
 0xb70   : > { %v3600_v14 = vpop.f32.mrb[10].mxu0 }
 0xb71   : > { %v1628_v15 = vpack.c.bf16 %v3600_v14, %v3599_v12  ;;  %v1615_v16 = vpop.f32.mrb[11].mxu0 }
 0xb72   : > { %v1627_v17 = vpack.c.bf16 %v1615_v16, %v1612_v13  ;;  %v3363_v16 = vld [vmem:[%s4737_s16] ss:$0 sm:$0xff] }
 0xb74   : > { %3603 = vmatprep.mubr.msk.bf16.mxu0 %vm1097_vm4, %v1627_v17 }
 0xb75   : > { %3604 = vmatmul.mubr.msk.bf16.vlgmr.msra.gmra.mrb[12].mxu0 %vm1097_vm4, %v1628_v15 }
 0xb76   : > { %3608 = vmatpush3.bf16.msra.mxu0 %v3790_v11  ;;  %3609 = vmatprep.mubr.msk.bf16.mxu0 %vm1097_vm4, %v1449_v10  ;;  %v3362_v11 = vld [vmem:[%s4736_s15] ss:$0 sm:$0xff] }
 0xb81   : > { %3610 = vmatmul.mubr.msk.bf16.vlgmr.msra.gmra.mrb[12].mxu0 %vm1097_vm4, %v1450_v8 }
 0xc54   : > { %v3611_v18 = vpop.f32.mrb[12].mxu0 }
 0xc55   : > { %v1736_v20 = vpop.f32.mrb[13].mxu0  ;;  %v1753_v4 = vadd.f32 %v3611_v18, %v4255_v31 }
 0xc56   : > { %v1751_v21 = vadd.f32 %v1736_v20, %v4247_v27  ;;  %v3612_v22 = vpop.f32.mrb[14].mxu0 }
 0xc57   : > { %v1754_v23 = vadd.f32 %v3612_v22, %v4259_v33  ;;  %v1739_v24 = vpop.f32.mrb[15].mxu0  ;;  %v4422_v25 = vadd.f32 %v3361_v19, %v1753_v4 }
 0xc58   : > { %v4413_v9 = vadd.f32 %v3361_v19, %v1751_v21  ;;  %v1752_v2 = vadd.f32 %v1739_v24, %v4251_v29 }
 0xc59   : > { %v4416_v6 = vadd.f32 %v3361_v19, %v1754_v23  ;;  %v1774_v29 = vsel %vm935_vm3, %v4422_v25, 0.0 }
 0xc5a   : > { %v4418_v8 = vadd.f32 %v3361_v19, %v1752_v2  ;;  %v1768_v10 = vsel %vm935_vm3, %v4413_v9, 0.0 }
 0xc5b   : > { %1769 = vadd.xlane.f32.xlu1 %v1768_v10  ;;  %v1777_v31 = vsel %vm935_vm3, %v4416_v6, 0.0 }
 0xc5c   : > { %v1771_v27 = vsel %vm935_vm3, %v4418_v8, 0.0 }
 0xc5d   : > { %1772 = vadd.xlane.f32.xlu0 %v1771_v27 }
 0xc5f   : > { %1778 = vadd.xlane.f32.xlu1 %v1777_v31 }
 0xc61   : > { %1775 = vadd.xlane.f32.xlu0 %v1774_v29  ;;  %v3793_v29 = vld [vmem:[%s4740_s19] sm:$0xff]  }
 0xc62   : > { %3621 = vmatprep.subr.bf16.mxu1 %v3793_v29 }
 0xce8   : > { %v1770_v33 = vpop.xlane.xlu1 %1769 }
 0xce9   : > { %v1780_v26 = vmul.f32 0.03125, %v1770_v33  ;;  %v3794_v33 = vld [vmem:[%s4740_s19 + $0x8] sm:$0xff]  }
 0xcea   : > { %v1773_v28 = vpop.xlane.xlu0 %1772 }
 0xceb   : > { %v1784_v30 = vsub.f32 %v4413_v9, %v1780_v26  ;;  %v1781_v32 = vmul.f32 0.03125, %v1773_v28  ;;  %v3795_v26 = vld [vmem:[%s4740_s19 + $0x10] sm:$0xff]   ;;  %v3796_v28 = vld [vmem:[%s4740_s19 + $0x18] sm:$0xff]  }
 0xcec   : > { %v1779_v34 = vpop.xlane.xlu1 %1778 }
 0xced   : > { %v1785_v35 = vsub.f32 %v4418_v8, %v1781_v32  ;;  %v1783_v36 = vmul.f32 0.03125, %v1779_v34  ;;  %v1788_v37 = vmul.f32 %v1784_v30, %v1784_v30  ;;  %v3798_v32 = vld [vmem:[%s4740_s19 + $0x28] sm:$0xff]   ;;  %v3799_v34 = vld [vmem:[%s4740_s19 + $0x30] sm:$0xff]  }
 0xcee   : > { %v1776_v38 = vpop.xlane.xlu0 %1775 }
 0xcef   : > { %v1787_v41 = vsub.f32 %v4416_v6, %v1783_v36  ;;  %v1782_v42 = vmul.f32 0.03125, %v1776_v38  ;;  %v1792_v43 = vsel %vm935_vm3, %v1788_v37, 0.0  ;;  %v1789_v44 = vmul.f32 %v1785_v35, %v1785_v35  ;;  %v3364_v36 = vld [vmem:[%s4739_s18] ss:$0 sm:$0xff] }
 0xcf0   : > { %1793 = vadd.xlane.f32.xlu0 %v1792_v43 }
 0xcf1   : > { %v1786_v45 = vsub.f32 %v4422_v25, %v1782_v42  ;;  %v1795_v46 = vsel %vm935_vm3, %v1789_v44, 0.0  ;;  %v1791_v47 = vmul.f32 %v1787_v41, %v1787_v41 }
 0xcf2   : > { %1796 = vadd.xlane.f32.xlu1 %v1795_v46 }
 0xcf3   : > { %v1790_v48 = vmul.f32 %v1786_v45, %v1786_v45  ;;  %v1801_v49 = vsel %vm935_vm3, %v1791_v47, 0.0 }
 0xcf5   : > { %v1798_v50 = vsel %vm935_vm3, %v1790_v48, 0.0 }
 0xcf6   : > { %1802 = vadd.xlane.f32.xlu1 %v1801_v49  ;;  %1799 = vadd.xlane.f32.xlu0 %v1798_v50 }
 0xd7d   : > { %v1794_v53 = vpop.xlane.xlu0 %1793 }
 0xd7e   : > { %v1804_v54 = vmul.f32 0.03125, %v1794_v53 }
 0xd7f   : > { %v1797_v39 = vpop.xlane.xlu1 %1796 }
 0xd80   : > { %v1808_v55 = vadd.f32 1e-05, %v1804_v54  ;;  %v1805_v56 = vmul.f32 0.03125, %v1797_v39 }
 0xd82   : > { %3867 = vrsqrt.f32 %v1808_v55  ;;  %v1809_v40 = vadd.f32 1e-05, %v1805_v56 }
 0xd83   : > { %v1803_v57 = vpop.xlane.xlu1 %1802  ;;  %v1800_v58 = vpop.xlane.xlu0 %1799 }
 0xd84   : > { %3869 = vrsqrt.f32 %v1809_v40  ;;  %v1807_v59 = vmul.f32 0.03125, %v1803_v57  ;;  %v1806_v61 = vmul.f32 0.03125, %v1800_v58 }
 0xd86   : > { %v1811_v62 = vadd.f32 1e-05, %v1807_v59  ;;  %v1810_v63 = vadd.f32 1e-05, %v1806_v61 }
 0xd88   : > { %3871 = vrsqrt.f32 %v1811_v62 }
 0xd89   : > { %3873 = vrsqrt.f32 %v1810_v63 }
 0xd8c   : > { %v3868_v1 = vpop.eup %3867 }
 0xd8d   : > { %v1816_v12 = vmul.f32 %v3868_v1, %v1784_v30  ;;  %v3797_v30 = vld [vmem:[%s4740_s19 + $0x20] sm:$0xff]  }
 0xd8e   : > { %v3870_v13 = vpop.eup %3869 }
 0xd8f   : > { %v1817_v14 = vmul.f32 %v3870_v13, %v1785_v35  ;;  %v1826_v15 = vmul.f32 %v3362_v11, %v1816_v12  ;;  %v3800_v35 = vld [vmem:[%s4740_s19 + $0x38] sm:$0xff]  }
 0xd91   : > { %v1827_v17 = vmul.f32 %v3362_v11, %v1817_v14  ;;  %v1836_v21 = vadd.f32 %v3363_v16, %v1826_v15 }
 0xd92   : > { %v3872_v18 = vpop.eup %3871 }
 0xd93   : > { %v3874_v19 = vpop.eup %3873  ;;  %v1819_v20 = vmul.f32 %v3872_v18, %v1787_v41  ;;  %v1837_v22 = vadd.f32 %v3363_v16, %v1827_v17 }
 0xd94   : > { %v1818_v23 = vmul.f32 %v3874_v19, %v1786_v45 }
 0xd95   : > { %v1829_v24 = vmul.f32 %v3362_v11, %v1819_v20  ;;  %v1840_v4 = vpack.c.bf16 %v1837_v22, %v1836_v21 }
 0xd96   : > { %v1828_v2 = vmul.f32 %v3362_v11, %v1818_v23 }
 0xd97   : > { %3617 = vmatprep.mubr.msk.bf16.mxu1 %vm935_vm3, %v1840_v4  ;;  %v1839_v10 = vadd.f32 %v3363_v16, %v1829_v24 }
 0xd98   : > { %v1838_v27 = vadd.f32 %v3363_v16, %v1828_v2 }
 0xd9a   : > { %v1841_v31 = vpack.c.bf16 %v1839_v10, %v1838_v27 }
 0xd9c   : > { %3618 = vmatmul.mubr.msk.bf16.vlgmr.msra.gmra.mrb[12].mxu1 %vm935_vm3, %v1841_v31 }
 0xd9d   : > { %3622 = vmatpush3.bf16.msra.mxu1 %v3793_v29  ;;  %v3369_v29 = vld [vmem:[%s4741_s20] ss:$0 sm:$0xff] }
 0xd9e   : > { %3623 = vmatprep.subr.bf16.mxu1 %v3794_v33 }
 0xda1   : > { %3624 = vmatpush3.bf16.msra.mxu1 %v3794_v33 }
 0xda2   : > { %3625 = vmatprep.subr.bf16.mxu1 %v3795_v26 }
 0xda5   : > { %3626 = vmatpush3.bf16.msra.mxu1 %v3795_v26 }
 0xda6   : > { %3627 = vmatprep.subr.bf16.mxu1 %v3796_v28 }
 0xda9   : > { %3628 = vmatpush3.bf16.msra.mxu1 %v3796_v28 }
 0xdaa   : > { %3629 = vmatprep.subr.bf16.mxu1 %v3797_v30 }
 0xdad   : > { %3630 = vmatpush3.bf16.msra.mxu1 %v3797_v30 }
 0xdae   : > { %3631 = vmatprep.subr.bf16.mxu1 %v3798_v32 }
 0xdb1   : > { %3632 = vmatpush3.bf16.msra.mxu1 %v3798_v32 }
 0xdb2   : > { %3633 = vmatprep.subr.bf16.mxu1 %v3799_v34 }
 0xdb5   : > { %3634 = vmatpush3.bf16.msra.mxu1 %v3799_v34 }
 0xdb6   : > { %3635 = vmatprep.subr.bf16.mxu1 %v3800_v35 }
 0xdb9   : > { %3636 = vmatpush3.bf16.msra.mxu1 %v3800_v35 }
 0xe6f   : > { %v3619_v37 = vpop.f32.mrb[12].mxu1 }
 0xe70   : > { %v1914_v38 = vadd.f32 %v3619_v37, %v3364_v36  ;;  %v1905_v41 = vpop.f32.mrb[13].mxu1 }
 0xe71   : > { %v1906_v42 = vadd.f32 %v3364_v36, %v1905_v41  ;;  %v3620_v43 = vpop.f32.mrb[14].mxu1 }
 0xe72   : > { %v1926_v44 = vmul.f32 0.044715, %v1914_v38  ;;  %v1917_v45 = vadd.f32 %v3620_v43, %v3364_v36  ;;  %v1908_v46 = vpop.f32.mrb[15].mxu1  ;;  %v1922_v18 = vmul.f32 0.5, %v1914_v38 }
 0xe73   : > { %v1924_v47 = vmul.f32 0.044715, %v1906_v42  ;;  %v1909_v48 = vadd.f32 %v3364_v36, %v1908_v46  ;;  %v1920_v21 = vmul.f32 0.5, %v1906_v42 }
 0xe74   : > { %v1930_v49 = vmul.f32 %v1926_v44, %v1914_v38  ;;  %v1927_v50 = vmul.f32 0.044715, %v1917_v45  ;;  %v1923_v19 = vmul.f32 0.5, %v1917_v45 }
 0xe75   : > { %v1928_v51 = vmul.f32 %v1924_v47, %v1906_v42  ;;  %v1925_v52 = vmul.f32 0.044715, %v1909_v48  ;;  %v1921_v22 = vmul.f32 0.5, %v1909_v48 }
 0xe76   : > { %v1934_v53 = vmul.f32 %v1930_v49, %v1914_v38  ;;  %v1931_v54 = vmul.f32 %v1927_v50, %v1917_v45 }
 0xe77   : > { %v1932_v39 = vmul.f32 %v1928_v51, %v1906_v42  ;;  %v1929_v55 = vmul.f32 %v1925_v52, %v1909_v48 }
 0xe78   : > { %v1938_v56 = vadd.f32 %v1934_v53, %v1914_v38  ;;  %v1935_v40 = vmul.f32 %v1931_v54, %v1917_v45 }
 0xe79   : > { %v1933_v57 = vmul.f32 %v1929_v55, %v1909_v48  ;;  %v1936_v58 = vadd.f32 %v1932_v39, %v1906_v42 }
 0xe7a   : > { %v1942_v59 = vmul.f32 0.7978846, %v1938_v56  ;;  %v1939_v61 = vadd.f32 %v1935_v40, %v1917_v45 }
 0xe7b   : > { %v1937_v62 = vadd.f32 %v1933_v57, %v1909_v48  ;;  %v1940_v63 = vmul.f32 0.7978846, %v1936_v58 }
 0xe7c   : > { %3875 = vtanh.f32 %v1942_v59  ;;  %v1943_v1 = vmul.f32 0.7978846, %v1939_v61 }
 0xe7d   : > { %v1941_v11 = vmul.f32 0.7978846, %v1937_v62  ;;  %3877 = vtanh.f32 %v1940_v63  ;;  %v3801_v62 = vld [vmem:[%s4791_s2 + $0x10] sm:$0xff]   ;;  %v3802_v63 = vld [vmem:[%s4791_s2 + $0x18] sm:$0xff]  }
 0xe7e   : > { %3879 = vtanh.f32 %v1943_v1  ;;  %3641 = vmatprep.subr.bf16.mxu0 %v3801_v62 }
 0xe7f   : > { %3881 = vtanh.f32 %v1941_v11  ;;  %3642 = vmatpush3.bf16.msra.mxu0 %v3801_v62 }
 0xe80   : > { %3643 = vmatprep.subr.bf16.mxu0 %v3802_v63 }
 0xe83   : > { %3644 = vmatpush3.bf16.msra.mxu0 %v3802_v63 }
 0xe86   : > { %v3876_v12 = vpop.eup %3875 }
 0xe87   : > { %v3878_v13 = vpop.eup %3877  ;;  %v1950_v14 = vadd.f32 1.0, %v3876_v12 }
 0xe88   : > { %v3880_v15 = vpop.eup %3879  ;;  %v1948_v16 = vadd.f32 1.0, %v3878_v13 }
 0xe89   : > { %v3882_v17 = vpop.eup %3881  ;;  %v1951_v20 = vadd.f32 1.0, %v3880_v15  ;;  %v1954_v24 = vmul.f32 %v1950_v14, %v1922_v18 }
 0xe8a   : > { %v1949_v23 = vadd.f32 1.0, %v3882_v17  ;;  %v1952_v2 = vmul.f32 %v1948_v16, %v1920_v21 }
 0xe8b   : > { %v1955_v4 = vmul.f32 %v1951_v20, %v1923_v19 }
 0xe8c   : > { %v1953_v10 = vmul.f32 %v1949_v23, %v1921_v22  ;;  %v3380_v23 = vld [vmem:[%s4792_s29 + $0x1] ss:$0 sm:$0xff] }
 0xe8d   : > { %v1957_v27 = vpack.c.bf16 %v1955_v4, %v1954_v24 }
 0xe8e   : > { %v1956_v31 = vpack.c.bf16 %v1953_v10, %v1952_v2 }
 0xe90   : > { %3637 = vmatprep.mubr.bf16.mxu1 %v1956_v31  ;;  %v3381_v31 = vld [vmem:[%s4793_s11 + $0x1] ss:$0 sm:$0xff] }
 0xe91   : > { %3638 = vmatmul.mubr.bf16.vlgmr.msra.gmra.mrb[16].mxu1 %v1957_v27 }
 0xf64   : > { %v3639_v33 = vpop.f32.mrb[16].mxu1 }
 0xf65   : > { %v2063_v26 = vpop.f32.mrb[17].mxu1  ;;  %v2072_v28 = vadd.f32 %v3639_v33, %v3369_v29 }
 0xf66   : > { %v2064_v30 = vadd.f32 %v3369_v29, %v2063_v26  ;;  %v3640_v32 = vpop.f32.mrb[18].mxu1 }
 0xf67   : > { %v2066_v34 = vpop.f32.mrb[19].mxu1  ;;  %v2075_v36 = vadd.f32 %v3640_v32, %v3369_v29  ;;  %v4486_v38 = vadd.f32 %v2072_v28, %v4422_v25 }
 0xf68   : > { %v4483_v35 = vadd.f32 %v2064_v30, %v4413_v9  ;;  %v2067_v37 = vadd.f32 %v3369_v29, %v2066_v34 }
 0xf69   : > { %v4494_v43 = vadd.f32 %v2075_v36, %v4416_v6  ;;  %v2092_v9 = vsel %vm935_vm3, %v4486_v38, 0.0 }
 0xf6a   : > { %v4489_v41 = vadd.f32 %v2067_v37, %v4418_v8  ;;  %v2086_v42 = vsel %vm935_vm3, %v4483_v35, 0.0 }
 0xf6b   : > { %2087 = vadd.xlane.f32.xlu0 %v2086_v42  ;;  %v2095_v25 = vsel %vm935_vm3, %v4494_v43, 0.0 }
 0xf6c   : > { %v2089_v44 = vsel %vm935_vm3, %v4489_v41, 0.0 }
 0xf6d   : > { %2090 = vadd.xlane.f32.xlu1 %v2089_v44 }
 0xf6f   : > { %2093 = vadd.xlane.f32.xlu0 %v2092_v9 }
 0xf71   : > { %2096 = vadd.xlane.f32.xlu1 %v2095_v25 }
 0xff8   : > { %v2088_v8 = vpop.xlane.xlu0 %2087 }
 0xff9   : > { %v2098_v45 = vmul.f32 0.03125, %v2088_v8  ;;  %v3387_v8 = vld [vmem:[%s4733_s12 + $0x1] ss:$0 sm:$0xff] }
 0xffa   : > { %v2091_v46 = vpop.xlane.xlu1 %2090 }
 0xffb   : > { %v2102_v47 = vsub.f32 %v4483_v35, %v2098_v45  ;;  %v2099_v48 = vmul.f32 0.03125, %v2091_v46 }
 0xffc   : > { %v2094_v6 = vpop.xlane.xlu0 %2093 }
 0xffd   : > { %v2103_v49 = vsub.f32 %v4489_v41, %v2099_v48  ;;  %v2100_v50 = vmul.f32 0.03125, %v2094_v6  ;;  %v2106_v51 = vmul.f32 %v2102_v47, %v2102_v47 }
 0xffe   : > { %v2097_v52 = vpop.xlane.xlu1 %2096 }
 0xfff   : > { %v2104_v53 = vsub.f32 %v4486_v38, %v2100_v50  ;;  %v2101_v54 = vmul.f32 0.03125, %v2097_v52  ;;  %v2110_v39 = vsel %vm935_vm3, %v2106_v51, 0.0  ;;  %v2107_v55 = vmul.f32 %v2103_v49, %v2103_v49 }
0x1000   : > { %2111 = vadd.xlane.f32.xlu0 %v2110_v39 }
0x1001   : > { %v2105_v56 = vsub.f32 %v4494_v43, %v2101_v54  ;;  %v2113_v40 = vsel %vm935_vm3, %v2107_v55, 0.0  ;;  %v2108_v57 = vmul.f32 %v2104_v53, %v2104_v53 }
0x1002   : > { %2114 = vadd.xlane.f32.xlu1 %v2113_v40 }
0x1003   : > { %v2116_v58 = vsel %vm935_vm3, %v2108_v57, 0.0  ;;  %v2109_v59 = vmul.f32 %v2105_v56, %v2105_v56 }
0x1004   : > { %2117 = vadd.xlane.f32.xlu0 %v2116_v58 }
0x1005   : > { %v2119_v61 = vsel %vm935_vm3, %v2109_v59, 0.0 }
0x1006   : > { %2120 = vadd.xlane.f32.xlu1 %v2119_v61 }
0x108d   : > { %v2112_v1 = vpop.xlane.xlu0 %2111 }
0x108e   : > { %v2122_v11 = vmul.f32 0.03125, %v2112_v1 }
0x108f   : > { %v2115_v12 = vpop.xlane.xlu1 %2114 }
0x1090   : > { %v2126_v13 = vadd.f32 1e-05, %v2122_v11  ;;  %v2123_v14 = vmul.f32 0.03125, %v2115_v12 }
0x1091   : > { %v2118_v15 = vpop.xlane.xlu0 %2117 }
0x1092   : > { %3883 = vrsqrt.f32 %v2126_v13  ;;  %v2127_v16 = vadd.f32 1e-05, %v2123_v14  ;;  %v2124_v17 = vmul.f32 0.03125, %v2118_v15 }
0x1093   : > { %v2121_v18 = vpop.xlane.xlu1 %2120 }
0x1094   : > { %3885 = vrsqrt.f32 %v2127_v16  ;;  %v2128_v19 = vadd.f32 1e-05, %v2124_v17  ;;  %v2125_v20 = vmul.f32 0.03125, %v2121_v18 }
0x1096   : > { %3887 = vrsqrt.f32 %v2128_v19  ;;  %v2129_v21 = vadd.f32 1e-05, %v2125_v20 }
0x1098   : > { %3889 = vrsqrt.f32 %v2129_v21 }
0x109c   : > { %v3884_v22 = vpop.eup %3883 }
0x109d   : > { %v2134_v24 = vmul.f32 %v3884_v22, %v2102_v47 }
0x109e   : > { %v3886_v4 = vpop.eup %3885 }
0x109f   : > { %v2135_v2 = vmul.f32 %v3886_v4, %v2103_v49  ;;  %v2144_v10 = vmul.f32 %v3380_v23, %v2134_v24 }
0x10a0   : > { %v3888_v27 = vpop.eup %3887 }
0x10a1   : > { %v2136_v29 = vmul.f32 %v3888_v27, %v2104_v53  ;;  %v2145_v33 = vmul.f32 %v3380_v23, %v2135_v2  ;;  %v2154_v32 = vadd.f32 %v3381_v31, %v2144_v10 }
0x10a2   : > { %v3890_v26 = vpop.eup %3889 }
0x10a3   : > { %v2146_v28 = vmul.f32 %v3380_v23, %v2136_v29  ;;  %v2137_v30 = vmul.f32 %v3890_v26, %v2105_v56  ;;  %v2155_v34 = vadd.f32 %v3381_v31, %v2145_v33 }
0x10a5   : > { %v2147_v36 = vmul.f32 %v3380_v23, %v2137_v30  ;;  %v2158_v37 = vpack.c.bf16 %v2155_v34, %v2154_v32  ;;  %v2156_v42 = vadd.f32 %v3381_v31, %v2146_v28 }
0x10a7   : > { %3645 = vmatprep.mubr.msk.bf16.mxu0 %vm935_vm3, %v2158_v37  ;;  %v2157_v44 = vadd.f32 %v3381_v31, %v2147_v36 }
0x10a9   : > { %v2159_v9 = vpack.c.bf16 %v2157_v44, %v2156_v42 }
0x10ab   : > { %3646 = vmatmul.mubr.msk.bf16.vlgmr.msra.gmra.mrb[16].mxu0 %vm935_vm3, %v2159_v9 }
0x117e   : > { %v3647_v25 = vpop.f32.mrb[16].mxu0 }
0x117f   : > { %v2225_v45 = vpop.f32.mrb[17].mxu0  ;;  %v2234_v47 = vadd.f32 %v3647_v25, %v3387_v8 }
0x1180   : > { %v3648_v46 = vpop.f32.mrb[18].mxu0  ;;  %v2226_v49 = vadd.f32 %v3387_v8, %v2225_v45 }
0x1181   : > { %v2237_v48 = vadd.f32 %v3648_v46, %v3387_v8  ;;  %v2228_v6 = vpop.f32.mrb[19].mxu0 }
0x1182   : > { %v2229_v50 = vadd.f32 %v3387_v8, %v2228_v6 }
0x1183   : > { %v4527_v51 = vpack.c.bf16 %v2237_v48, %v2234_v47 }
0x1184   : > { %v4529_v52 = vpack.c.bf16 %v2229_v50, %v2226_v49 }
0x1185   : > { %2251 = vrot.lane.b32.xlu1 %v4527_v51, %s4797_s9 }
0x1186   : > { %2249 = vrot.lane.b32.xlu0 %v4529_v52, %s4797_s9  ;;  %3653 = vmatprep.mubr.msk.bf16.mxu0 %vm1097_vm4, %v4529_v52 }
0x1189   : > { %2427 = vrot.lane.b32.xlu1 %v4529_v52, %s4798_s4 }
0x118a   : > { %2429 = vrot.lane.b32.xlu0 %v4527_v51, %s4798_s4 }
0x118d   : > { %2423 = vrot.lane.b32.xlu1 %v4529_v52, %s4799_s3 }
0x118e   : > { %2425 = vrot.lane.b32.xlu0 %v4527_v51, %s4799_s3  ;;  %s859_s3 = scalar_lea.vmem %s4748_s27, %s4192_s30 }
0x11f7   : > { %v2252_v53 = vpop.permute.xlu1 %2251 }
0x11f8   : > { %v2250_v54 = vpop.permute.xlu0 %2249  ;;  %v2263_v58 = vsel %vm1097_vm4, %v2252_v53, 0 }
0x11f9   : > { %v2260_v39 = vsel %vm1097_vm4, %v2250_v54, 0  ;;  %3749 = vmatprep.subr.msk.bf16.mxu0 %vm1097_vm4, %v2250_v54 }
0x11fa   : > { %3650 = vmatpush3.bf16.xpose.msra.mxu0 %v2260_v39 }
0x11fb   : > { %v2428_v55 = vpop.permute.xlu1 %2427  ;;  %3750 = vmatprep.subr.msk.bf16.mxu0 %vm1097_vm4, %v2252_v53 }
0x11fc   : > { %v2438_v56 = vsel %vm1097_vm4, %v2428_v55, 0  ;;  %3751 = vmatprep.subr.msk.bf16.mxu1 %vm1097_vm4, %v2428_v55  ;;  %v2430_v40 = vpop.permute.xlu0 %2429 }
0x11fd   : > { %3666 = vmatpush3.bf16.xpose.msra.mxu1 %v2438_v56  ;;  %v2441_v59 = vsel %vm1097_vm4, %v2430_v40, 0 }
0x11fe   : > { %3752 = vmatprep.subr.msk.bf16.mxu1 %vm1097_vm4, %v2430_v40 }
0x11ff   : > { %v2424_v57 = vpop.permute.xlu1 %2423 }
0x1200   : > { %3669 = vmatprep.mubr.msk.bf16.mxu1 %vm1097_vm4, %v2424_v57  ;;  %v2426_v61 = vpop.permute.xlu0 %2425 }
0x1202   : > { %3652 = vmatpush3.bf16.xpose.msra.mxu0 %v2263_v58 }
0x1205   : > { %3668 = vmatpush3.bf16.xpose.msra.mxu1 %v2441_v59 }
0x1209   : > { %3654 = vmatmul.mubr.msk.bf16.vlgmr.msra.gmra.mrb[20].mxu0 %vm1097_vm4, %v4527_v51 }
0x120c   : > { %3670 = vmatmul.mubr.msk.bf16.vlgmr.msra.gmra.mrb[20].mxu1 %vm1097_vm4, %v2426_v61 }
0x12dc   : > { %v3655_v62 = vpop.f32.mrb[20].mxu0 }
0x12dd   : > { %v2299_v63 = vpop.f32.mrb[21].mxu0  ;;  %v2308_v19 = vadd.f32 %v3655_v62, %v4323_v3 }
0x12de   : > { %v2300_v1 = vadd.f32 %v2299_v63, %v4312_v60  ;;  %v3656_v11 = vpop.f32.mrb[22].mxu0 }
0x12df   : > { %v2302_v12 = vpop.f32.mrb[23].mxu0  ;;  %v3671_v13 = vpop.f32.mrb[20].mxu1  ;;  %v2311_v14 = vadd.f32 %v3656_v11, %v4326_v5  ;;  %v2320_v4 = vsel %vm935_vm3, %v2308_v19, -inf }
0x12e0   : > { %v2303_v15 = vadd.f32 %v2302_v12, %v4328_v7  ;;  %v2477_v16 = vpop.f32.mrb[21].mxu1  ;;  %v2314_v17 = vsel %vm935_vm3, %v2300_v1, -inf  ;;  %v2486_v27 = vadd.f32 %v3671_v13, %v4323_v3 }
0x12e1   : > { %v3672_v18 = vpop.f32.mrb[22].mxu1  ;;  %2315 = vmax.xlane.f32.xlu1 %v2314_v17  ;;  %v2323_v23 = vsel %vm935_vm3, %v2311_v14, -inf  ;;  %v2478_v24 = vadd.f32 %v2477_v16, %v4312_v60 }
0x12e2   : > { %v2480_v20 = vpop.f32.mrb[23].mxu1  ;;  %v2317_v21 = vsel %vm935_vm3, %v2303_v15, -inf  ;;  %v2489_v2 = vadd.f32 %v3672_v18, %v4326_v5  ;;  %v2498_v29 = vsel %vm935_vm3, %v2486_v27, -inf }
0x12e3   : > { %2318 = vmax.xlane.f32.xlu0 %v2317_v21  ;;  %v2481_v22 = vadd.f32 %v2480_v20, %v4328_v7  ;;  %v2492_v31 = vsel %vm935_vm3, %v2478_v24, -inf }
0x12e4   : > { %v2501_v7 = vsel %vm935_vm3, %v2489_v2, -inf }
0x12e5   : > { %2324 = vmax.xlane.f32.xlu1 %v2323_v23  ;;  %v2495_v10 = vsel %vm935_vm3, %v2481_v22, -inf }
0x12e7   : > { %2321 = vmax.xlane.f32.xlu0 %v2320_v4 }
0x12e9   : > { %2496 = vmax.xlane.f32.xlu1 %v2495_v10 }
0x12eb   : > { %2493 = vmax.xlane.f32.xlu0 %v2492_v31 }
0x12ed   : > { %2502 = vmax.xlane.f32.xlu1 %v2501_v7 }
0x12ef   : > { %2499 = vmax.xlane.f32.xlu0 %v2498_v29 }
0x12fe   : > { %2362 = vrot.lane.b32.xlu1 %v4527_v51, %s4796_s0 }
0x1305   : > { %2360 = vrot.lane.b32.xlu0 %v4529_v52, %s4796_s0  ;;  %s4800_s0 = smov 48  }
0x136e   : > { %v2316_v60 = vpop.xlane.xlu1 %2315 }
0x136f   : > { %v2326_v44 = vsub.f32 %v2300_v1, %v2316_v60 }
0x1370   : > { %v2319_v5 = vpop.xlane.xlu0 %2318 }
0x1371   : > { %v2327_v36 = vsub.f32 %v2303_v15, %v2319_v5  ;;  %v2330_v48 = vmul.f32 1.442695, %v2326_v44 }
0x1372   : > { %v2325_v33 = vpop.xlane.xlu1 %2324 }
0x1373   : > { %v2329_v26 = vsub.f32 %v2311_v14, %v2325_v33  ;;  %v2332_v25 = vmul.f32 1.442695, %v2327_v36 }
0x1374   : > { %v2322_v3 = vpop.xlane.xlu0 %2321 }
0x1375   : > { %v2336_v28 = vmul.f32 1.442695, %v2329_v26  ;;  %v2328_v30 = vsub.f32 %v2308_v19, %v2322_v3 }
0x1376   : > { %v2497_v32 = vpop.xlane.xlu1 %2496 }
0x1377   : > { %3891 = vpow2.f32 %v2336_v28  ;;  %v2334_v34 = vmul.f32 1.442695, %v2328_v30  ;;  %v2505_v45 = vsub.f32 %v2481_v22, %v2497_v32 }
0x1378   : > { %v2494_v37 = vpop.xlane.xlu0 %2493 }
0x1379   : > { %3893 = vpow2.f32 %v2334_v34  ;;  %v2504_v6 = vsub.f32 %v2478_v24, %v2494_v37  ;;  %v2510_v54 = vmul.f32 1.442695, %v2505_v45 }
0x137a   : > { %v2503_v42 = vpop.xlane.xlu1 %2502 }
0x137b   : > { %v2507_v9 = vsub.f32 %v2489_v2, %v2503_v42  ;;  %v2508_v40 = vmul.f32 1.442695, %v2504_v6 }
0x137c   : > { %v2500_v8 = vpop.xlane.xlu0 %2499 }
0x137d   : > { %v2514_v46 = vmul.f32 1.442695, %v2507_v9  ;;  %v2506_v47 = vsub.f32 %v2486_v27, %v2500_v8  ;;  %v3803_v9 = vld [vmem:[%s4734_s13 + $0x18] sm:$0xff]  }
0x137e   : > { %v2363_v39 = vpop.permute.xlu1 %2362 }
0x137f   : > { %3895 = vpow2.f32 %v2514_v46  ;;  %v2512_v49 = vmul.f32 1.442695, %v2506_v47 }
0x1380   : > { %3897 = vpow2.f32 %v2332_v25  ;;  %v2361_v50 = vpop.permute.xlu0 %2360  ;;  %v3804_v25 = vld [vmem:[%s4734_s13 + $0x10] sm:$0xff]  }
0x1381   : > { %v4577_v53 = vpop.eup %3891  ;;  %3899 = vpow2.f32 %v2512_v49  ;;  %3657 = vmatprep.subr.bf16.mxu0 %v2361_v50 }
0x1382   : > { %3658 = vmatpush3.bf16.msra.mxu0 %v2361_v50  ;;  %v2347_v55 = vsel %vm935_vm3, %v4577_v53, 0.0  ;;  %3901 = vpow2.f32 %v2330_v48 }
0x1383   : > { %v3894_v56 = vpop.eup %3893  ;;  %2348 = vadd.xlane.f32.xlu1 %v2347_v55  ;;  %3659 = vmatprep.subr.bf16.mxu0 %v2363_v39  ;;  %3903 = vpow2.f32 %v2510_v54 }
0x1384   : > { %v2344_v57 = vsel %vm935_vm3, %v3894_v56, 0.0  ;;  %3905 = vpow2.f32 %v2508_v40  ;;  %v3411_v40 = vld [vmem:[%s4735_s14 + $0x1] ss:$0 sm:$0xff] }
0x1385   : > { %2345 = vadd.xlane.f32.xlu0 %v2344_v57 }
0x1386   : > { %3660 = vmatpush3.bf16.msra.mxu0 %v2363_v39 }
0x1389   : > { %v3896_v58 = vpop.eup %3895 }
0x138a   : > { %v3898_v59 = vpop.eup %3897  ;;  %v2525_v61 = vsel %vm935_vm3, %v3896_v58, 0.0 }
0x138b   : > { %v3900_v62 = vpop.eup %3899  ;;  %2526 = vadd.xlane.f32.xlu1 %v2525_v61  ;;  %v2341_v11 = vsel %vm935_vm3, %v3898_v59, 0.0 }
0x138c   : > { %v2522_v63 = vsel %vm935_vm3, %v3900_v62, 0.0  ;;  %v3902_v1 = vpop.eup %3901 }
0x138d   : > { %2523 = vadd.xlane.f32.xlu0 %v2522_v63  ;;  %v3904_v12 = vpop.eup %3903  ;;  %v2338_v13 = vsel %vm935_vm3, %v3902_v1, 0.0 }
0x138e   : > { %v3906_v14 = vpop.eup %3905  ;;  %v2519_v15 = vsel %vm935_vm3, %v3904_v12, 0.0 }
0x138f   : > { %2342 = vadd.xlane.f32.xlu1 %v2341_v11  ;;  %v2516_v16 = vsel %vm935_vm3, %v3906_v14, 0.0 }
0x1391   : > { %2339 = vadd.xlane.f32.xlu0 %v2338_v13 }
0x1393   : > { %2520 = vadd.xlane.f32.xlu1 %v2519_v15 }
0x1395   : > { %2517 = vadd.xlane.f32.xlu0 %v2516_v16 }
0x13a4   : > { %2538 = vrot.lane.b32.xlu1 %v4529_v52, %s4800_s0 }
0x13ab   : > { %2540 = vrot.lane.b32.xlu0 %v4527_v51, %s4800_s0 }
0x1410   : > { %v2349_v17 = vpop.xlane.xlu1 %2348 }
0x1412   : > { %v2346_v18 = vpop.xlane.xlu0 %2345 }
0x1413   : > { %3907 = vrcp.f32 %v2346_v18 }
0x1418   : > { %v2527_v19 = vpop.xlane.xlu1 %2526 }
0x141a   : > { %v2524_v20 = vpop.xlane.xlu0 %2523 }
0x141c   : > { %v2343_v21 = vpop.xlane.xlu1 %2342 }
0x141d   : > { %3909 = vrcp.f32 %v2343_v21  ;;  %v3908_v52 = vpop.eup %3907 }
0x141e   : > { %3911 = vrcp.f32 %v2349_v17  ;;  %v2340_v22 = vpop.xlane.xlu0 %2339  ;;  %v2355_v27 = vmul.f32 %v3908_v52, %v3894_v56 }
0x141f   : > { %3913 = vrcp.f32 %v2340_v22 }
0x1420   : > { %v2521_v23 = vpop.xlane.xlu1 %2520 }
0x1421   : > { %3915 = vrcp.f32 %v2521_v23 }
0x1422   : > { %v2518_v24 = vpop.xlane.xlu0 %2517 }
0x1423   : > { %3917 = vrcp.f32 %v2518_v24 }
0x1424   : > { %3919 = vrcp.f32 %v2524_v20  ;;  %v2539_v4 = vpop.permute.xlu1 %2538 }
0x1425   : > { %3673 = vmatprep.subr.bf16.mxu0 %v2539_v4  ;;  %3921 = vrcp.f32 %v2527_v19 }
0x1426   : > { %v2541_v34 = vpop.permute.xlu0 %2540 }
0x1427   : > { %v3910_v51 = vpop.eup %3909 }
0x1428   : > { %v3912_v2 = vpop.eup %3911  ;;  %v2353_v7 = vmul.f32 %v3910_v51, %v3898_v59 }
0x1429   : > { %v3914_v10 = vpop.eup %3913  ;;  %v2357_v60 = vmul.f32 %v3912_v2, %v4577_v53 }
0x142a   : > { %v2351_v31 = vmul.f32 %v3914_v10, %v3902_v1 }
0x142b   : > { %v3916_v29 = vpop.eup %3915  ;;  %v2359_v26 = vpack.c.bf16 %v2357_v60, %v2355_v27 }
0x142c   : > { %v2358_v5 = vpack.c.bf16 %v2353_v7, %v2351_v31  ;;  %v2531_v30 = vmul.f32 %v3916_v29, %v3904_v12 }
0x142d   : > { %v3918_v33 = vpop.eup %3917 }
0x142e   : > { %v3920_v3 = vpop.eup %3919  ;;  %3661 = vmatprep.mubr.msk.bf16.mxu0 %vm935_vm3, %v2358_v5  ;;  %v2529_v28 = vmul.f32 %v3918_v33, %v3906_v14  ;;  %v3805_v5 = vld [vmem:[%s4738_s17 + $0x10] sm:$0xff]   ;;  %v3806_v33 = vld [vmem:[%s4738_s17 + $0x18] sm:$0xff]  }
0x142f   : > { %3662 = vmatmul.mubr.msk.bf16.vlgmr.msra.gmra.mrb[24].mxu0 %vm935_vm3, %v2359_v26  ;;  %v3922_v32 = vpop.eup %3921  ;;  %v2533_v37 = vmul.f32 %v3920_v3, %v3900_v62  ;;  %3693 = vmatprep.subr.bf16.mxu1 %v3805_v5 }
0x1430   : > { %3674 = vmatpush3.bf16.msra.mxu0 %v2539_v4  ;;  %v2536_v36 = vpack.c.bf16 %v2531_v30, %v2529_v28  ;;  %v2535_v42 = vmul.f32 %v3922_v32, %v3896_v58  ;;  %3694 = vmatpush3.bf16.msra.mxu1 %v3805_v5 }
0x1431   : > { %3675 = vmatprep.subr.bf16.mxu0 %v2541_v34  ;;  %3695 = vmatprep.subr.bf16.mxu1 %v3806_v33 }
0x1432   : > { %3677 = vmatprep.mubr.msk.bf16.mxu0 %vm935_vm3, %v2536_v36  ;;  %v2537_v44 = vpack.c.bf16 %v2535_v42, %v2533_v37 }
0x1434   : > { %3676 = vmatpush3.bf16.msra.mxu0 %v2541_v34  ;;  %3696 = vmatpush3.bf16.msra.mxu1 %v3806_v33 }
0x1435   : > { %3681 = vmatprep.subr.bf16.mxu0 %v3803_v9 }
0x1437   : > { %3678 = vmatmul.mubr.msk.bf16.vlgmr.msra.gmra.mrb[28].mxu0 %vm935_vm3, %v2537_v44 }
0x1438   : > { %3682 = vmatpush3.bf16.msra.mxu0 %v3803_v9 }
0x1439   : > { %3687 = vmatprep.subr.bf16.mxu0 %v3804_v25 }
0x1502   : > { %v3663_v8 = vpop.f32.mrb[24].mxu0 }
0x1503   : > { %v2406_v45 = vpop.f32.mrb[25].mxu0 }
0x1504   : > { %v3664_v46 = vpop.f32.mrb[26].mxu0 }
0x1505   : > { %v2422_v47 = vpack.c.bf16 %v3664_v46, %v3663_v8  ;;  %v2409_v48 = vpop.f32.mrb[27].mxu0 }
0x1506   : > { %v2421_v6 = vpack.c.bf16 %v2409_v48, %v2406_v45  ;;  %v3414_v45 = vld [vmem:[%s4736_s15 + $0x1] ss:$0 sm:$0xff] }
0x150a   : > { %v3679_v49 = vpop.f32.mrb[28].mxu0 }
0x150b   : > { %v2584_v50 = vpop.f32.mrb[29].mxu0 }
0x150c   : > { %v3680_v53 = vpop.f32.mrb[30].mxu0 }
0x150d   : > { %v2600_v54 = vpack.c.bf16 %v3680_v53, %v3679_v49  ;;  %v2587_v39 = vpop.f32.mrb[31].mxu0  ;;  %v3415_v49 = vld [vmem:[%s4737_s16 + $0x1] ss:$0 sm:$0xff] }
0x150e   : > { %v2599_v55 = vpack.c.bf16 %v2587_v39, %v2584_v50 }
0x1510   : > { %3683 = vmatprep.mubr.msk.bf16.mxu0 %vm1097_vm4, %v2599_v55 }
0x1511   : > { %3684 = vmatmul.mubr.msk.bf16.vlgmr.msra.gmra.mrb[32].mxu0 %vm1097_vm4, %v2600_v54 }
0x1512   : > { %3688 = vmatpush3.bf16.msra.mxu0 %v3804_v25  ;;  %3689 = vmatprep.mubr.msk.bf16.mxu0 %vm1097_vm4, %v2421_v6 }
0x1513   : > { %3721 = vmatprep.subr.bf16.mxu0 %v3988_v0 }
0x151d   : > { %3690 = vmatmul.mubr.msk.bf16.vlgmr.msra.gmra.mrb[32].mxu0 %vm1097_vm4, %v2422_v47 }
0x151e   : > { %3725 = vmatprep.mubr.msk.bf16.mxu0 %vm3989_vm0, %v3988_v0 }
0x15f0   : > { %v3691_v56 = vpop.f32.mrb[32].mxu0 }
0x15f1   : > { %v2708_v57 = vpop.f32.mrb[33].mxu0  ;;  %v2725_v63 = vadd.f32 %v3691_v56, %v4486_v38 }
0x15f2   : > { %v2723_v58 = vadd.f32 %v2708_v57, %v4483_v35  ;;  %v3692_v59 = vpop.f32.mrb[34].mxu0 }
0x15f3   : > { %v2726_v61 = vadd.f32 %v3692_v59, %v4494_v43  ;;  %v2711_v62 = vpop.f32.mrb[35].mxu0  ;;  %v4620_v15 = vadd.f32 %v3411_v40, %v2725_v63 }
0x15f4   : > { %v2735_v1 = vadd.f32 %v3411_v40, %v2723_v58  ;;  %v2724_v11 = vadd.f32 %v2711_v62, %v4489_v41 }
0x15f5   : > { %v2738_v12 = vadd.f32 %v3411_v40, %v2726_v61  ;;  %v2749_v38 = vsel %vm935_vm3, %v4620_v15, 0.0 }
0x15f6   : > { %v4617_v13 = vadd.f32 %v3411_v40, %v2724_v11  ;;  %v2743_v14 = vsel %vm935_vm3, %v2735_v1, 0.0  ;;  %v3808_v11 = vld [vmem:[%s4740_s19 + $0x48] sm:$0xff]  }
0x15f7   : > { %2744 = vadd.xlane.f32.xlu1 %v2743_v14  ;;  %v2752_v43 = vsel %vm935_vm3, %v2738_v12, 0.0  ;;  %v3810_v14 = vld [vmem:[%s4740_s19 + $0x58] sm:$0xff]  }
0x15f8   : > { %v2746_v35 = vsel %vm935_vm3, %v4617_v13, 0.0 }
0x15f9   : > { %2747 = vadd.xlane.f32.xlu0 %v2746_v35  ;;  %v3811_v35 = vld [vmem:[%s4740_s19 + $0x60] sm:$0xff]  }
0x15fb   : > { %2753 = vadd.xlane.f32.xlu1 %v2752_v43  ;;  %v3812_v43 = vld [vmem:[%s4740_s19 + $0x68] sm:$0xff]  }
0x15fd   : > { %2750 = vadd.xlane.f32.xlu0 %v2749_v38  ;;  %v3813_v38 = vld [vmem:[%s4740_s19 + $0x70] sm:$0xff]  }
0x1684   : > { %v2745_v41 = vpop.xlane.xlu1 %2744 }
0x1685   : > { %v2755_v16 = vmul.f32 0.03125, %v2745_v41  ;;  %v3814_v41 = vld [vmem:[%s4740_s19 + $0x78] sm:$0xff]  }
0x1686   : > { %v2748_v17 = vpop.xlane.xlu0 %2747 }
0x1687   : > { %v2759_v18 = vsub.f32 %v2735_v1, %v2755_v16  ;;  %v2756_v19 = vmul.f32 0.03125, %v2748_v17  ;;  %v3807_v1 = vld [vmem:[%s4740_s19 + $0x40] sm:$0xff]  }
0x1688   : > { %v2754_v20 = vpop.xlane.xlu1 %2753  ;;  %3701 = vmatprep.subr.bf16.mxu1 %v3807_v1  ;;  %v3421_v16 = vld [vmem:[%s4739_s18 + $0x1] ss:$0 sm:$0xff] }
0x1689   : > { %v2760_v21 = vsub.f32 %v4617_v13, %v2756_v19  ;;  %v2758_v22 = vmul.f32 0.03125, %v2754_v20  ;;  %v2763_v23 = vmul.f32 %v2759_v18, %v2759_v18 }
0x168a   : > { %v2751_v24 = vpop.xlane.xlu0 %2750 }
0x168b   : > { %v2762_v4 = vsub.f32 %v2738_v12, %v2758_v22  ;;  %v2757_v52 = vmul.f32 0.03125, %v2751_v24  ;;  %v2767_v51 = vsel %vm935_vm3, %v2763_v23, 0.0  ;;  %v2764_v2 = vmul.f32 %v2760_v21, %v2760_v21  ;;  %v3809_v12 = vld [vmem:[%s4740_s19 + $0x50] sm:$0xff]  }
0x168c   : > { %2768 = vadd.xlane.f32.xlu0 %v2767_v51 }
0x168d   : > { %v2761_v10 = vsub.f32 %v4620_v15, %v2757_v52  ;;  %v2770_v27 = vsel %vm935_vm3, %v2764_v2, 0.0  ;;  %v2766_v31 = vmul.f32 %v2762_v4, %v2762_v4 }
0x168e   : > { %2771 = vadd.xlane.f32.xlu1 %v2770_v27 }
0x168f   : > { %v2765_v7 = vmul.f32 %v2761_v10, %v2761_v10  ;;  %v2776_v29 = vsel %vm935_vm3, %v2766_v31, 0.0 }
0x1691   : > { %v2773_v60 = vsel %vm935_vm3, %v2765_v7, 0.0 }
0x1692   : > { %2777 = vadd.xlane.f32.xlu1 %v2776_v29  ;;  %2774 = vadd.xlane.f32.xlu0 %v2773_v60 }
0x1719   : > { %v2769_v26 = vpop.xlane.xlu0 %2768 }
0x171a   : > { %v2779_v3 = vmul.f32 0.03125, %v2769_v26 }
0x171b   : > { %v2772_v28 = vpop.xlane.xlu1 %2771 }
0x171c   : > { %v2783_v30 = vadd.f32 1e-05, %v2779_v3  ;;  %v2780_v32 = vmul.f32 0.03125, %v2772_v28 }
0x171e   : > { %3923 = vrsqrt.f32 %v2783_v30  ;;  %v2784_v34 = vadd.f32 1e-05, %v2780_v32 }
0x171f   : > { %v2778_v36 = vpop.xlane.xlu1 %2777  ;;  %v2775_v37 = vpop.xlane.xlu0 %2774 }
0x1720   : > { %3925 = vrsqrt.f32 %v2784_v34  ;;  %v2782_v42 = vmul.f32 0.03125, %v2778_v36  ;;  %v2781_v44 = vmul.f32 0.03125, %v2775_v37 }
0x1722   : > { %v2786_v9 = vadd.f32 1e-05, %v2782_v42  ;;  %v2785_v25 = vadd.f32 1e-05, %v2781_v44 }
0x1724   : > { %3927 = vrsqrt.f32 %v2786_v9 }
0x1725   : > { %3929 = vrsqrt.f32 %v2785_v25 }
0x1728   : > { %v3924_v8 = vpop.eup %3923 }
0x1729   : > { %v2791_v46 = vmul.f32 %v3924_v8, %v2759_v18 }
0x172a   : > { %v3926_v47 = vpop.eup %3925 }
0x172b   : > { %v2792_v48 = vmul.f32 %v3926_v47, %v2760_v21  ;;  %v2801_v6 = vmul.f32 %v3414_v45, %v2791_v46 }
0x172d   : > { %v2802_v50 = vmul.f32 %v3414_v45, %v2792_v48  ;;  %v2811_v55 = vadd.f32 %v3415_v49, %v2801_v6 }
0x172e   : > { %v3928_v53 = vpop.eup %3927 }
0x172f   : > { %v3930_v54 = vpop.eup %3929  ;;  %v2794_v39 = vmul.f32 %v3928_v53, %v2762_v4  ;;  %v2812_v56 = vadd.f32 %v3415_v49, %v2802_v50 }
0x1730   : > { %v2793_v40 = vmul.f32 %v3930_v54, %v2761_v10 }
0x1731   : > { %v2804_v57 = vmul.f32 %v3414_v45, %v2794_v39  ;;  %v2815_v58 = vpack.c.bf16 %v2812_v56, %v2811_v55 }
0x1732   : > { %v2803_v59 = vmul.f32 %v3414_v45, %v2793_v40 }
0x1733   : > { %3697 = vmatprep.mubr.msk.bf16.mxu1 %vm935_vm3, %v2815_v58  ;;  %v2814_v61 = vadd.f32 %v3415_v49, %v2804_v57  ;;  %v3443_v57 = vld [vmem:[%s4741_s20 + $0x1] ss:$0 sm:$0xff] }
0x1734   : > { %v2813_v62 = vadd.f32 %v3415_v49, %v2803_v59 }
0x1736   : > { %v2816_v63 = vpack.c.bf16 %v2814_v61, %v2813_v62 }
0x1738   : > { %3698 = vmatmul.mubr.msk.bf16.vlgmr.msra.gmra.mrb[24].mxu1 %vm935_vm3, %v2816_v63 }
0x1739   : > { %3702 = vmatpush3.bf16.msra.mxu1 %v3807_v1 }
0x173a   : > { %3703 = vmatprep.subr.bf16.mxu1 %v3808_v11 }
0x173d   : > { %3704 = vmatpush3.bf16.msra.mxu1 %v3808_v11 }
0x173e   : > { %3705 = vmatprep.subr.bf16.mxu1 %v3809_v12 }
0x1741   : > { %3706 = vmatpush3.bf16.msra.mxu1 %v3809_v12 }
0x1742   : > { %3707 = vmatprep.subr.bf16.mxu1 %v3810_v14 }
0x1745   : > { %3708 = vmatpush3.bf16.msra.mxu1 %v3810_v14 }
0x1746   : > { %3709 = vmatprep.subr.bf16.mxu1 %v3811_v35 }
0x1749   : > { %3710 = vmatpush3.bf16.msra.mxu1 %v3811_v35 }
0x174a   : > { %3711 = vmatprep.subr.bf16.mxu1 %v3812_v43 }
0x174d   : > { %3712 = vmatpush3.bf16.msra.mxu1 %v3812_v43 }
0x174e   : > { %3713 = vmatprep.subr.bf16.mxu1 %v3813_v38 }
0x1751   : > { %3714 = vmatpush3.bf16.msra.mxu1 %v3813_v38 }
0x1752   : > { %3715 = vmatprep.subr.bf16.mxu1 %v3814_v41 }
0x1755   : > { %3716 = vmatpush3.bf16.msra.mxu1 %v3814_v41 }
0x180b   : > { %v3699_v17 = vpop.f32.mrb[24].mxu1 }
0x180c   : > { %v2891_v18 = vadd.f32 %v3699_v17, %v3421_v16  ;;  %v2882_v19 = vpop.f32.mrb[25].mxu1 }
0x180d   : > { %v2883_v20 = vadd.f32 %v3421_v16, %v2882_v19  ;;  %v3700_v21 = vpop.f32.mrb[26].mxu1 }
0x180e   : > { %v2903_v22 = vmul.f32 0.044715, %v2891_v18  ;;  %v2894_v23 = vadd.f32 %v3700_v21, %v3421_v16  ;;  %v2885_v24 = vpop.f32.mrb[27].mxu1  ;;  %v2899_v46 = vmul.f32 0.5, %v2891_v18 }
0x180f   : > { %v2901_v4 = vmul.f32 0.044715, %v2883_v20  ;;  %v2886_v52 = vadd.f32 %v3421_v16, %v2885_v24  ;;  %v2897_v6 = vmul.f32 0.5, %v2883_v20 }
0x1810   : > { %v2907_v51 = vmul.f32 %v2903_v22, %v2891_v18  ;;  %v2904_v2 = vmul.f32 0.044715, %v2894_v23  ;;  %v2900_v47 = vmul.f32 0.5, %v2894_v23  ;;  %v3816_v22 = vld [vmem:[%s4744_s23 + $0x8] sm:$0xff]  }
0x1811   : > { %v2905_v10 = vmul.f32 %v2901_v4, %v2883_v20  ;;  %v2902_v27 = vmul.f32 0.044715, %v2886_v52  ;;  %v2898_v49 = vmul.f32 0.5, %v2886_v52 }
0x1812   : > { %v2911_v31 = vmul.f32 %v2907_v51, %v2891_v18  ;;  %v2908_v7 = vmul.f32 %v2904_v2, %v2894_v23 }
0x1813   : > { %v2909_v29 = vmul.f32 %v2905_v10, %v2883_v20  ;;  %v2906_v60 = vmul.f32 %v2902_v27, %v2886_v52  ;;  %v3452_v27 = vld [vmem:[%s4742_s21] ss:$0 sm:$0xff] }
0x1814   : > { %v2915_v5 = vadd.f32 %v2911_v31, %v2891_v18  ;;  %v2912_v33 = vmul.f32 %v2908_v7, %v2894_v23  ;;  %v3453_v7 = vld [vmem:[%s4743_s22] ss:$0 sm:$0xff] }
0x1815   : > { %v2910_v26 = vmul.f32 %v2906_v60, %v2886_v52  ;;  %v2913_v3 = vadd.f32 %v2909_v29, %v2883_v20 }
0x1816   : > { %v2919_v28 = vmul.f32 0.7978846, %v2915_v5  ;;  %v2916_v30 = vadd.f32 %v2912_v33, %v2894_v23 }
0x1817   : > { %v2914_v32 = vadd.f32 %v2910_v26, %v2886_v52  ;;  %v2917_v34 = vmul.f32 0.7978846, %v2913_v3  ;;  %v3817_v26 = vld [vmem:[%s4746_s25] sm:$0xff]  }
0x1818   : > { %3931 = vtanh.f32 %v2919_v28  ;;  %v2920_v36 = vmul.f32 0.7978846, %v2916_v30  ;;  %v3818_v30 = vld [vmem:[%s4746_s25 + $0x8] sm:$0xff]  }
0x1819   : > { %v2918_v37 = vmul.f32 0.7978846, %v2914_v32  ;;  %3933 = vtanh.f32 %v2917_v34 }
0x181a   : > { %3935 = vtanh.f32 %v2920_v36 }
0x181b   : > { %3937 = vtanh.f32 %v2918_v37 }
0x1822   : > { %v3932_v42 = vpop.eup %3931 }
0x1823   : > { %v3934_v44 = vpop.eup %3933  ;;  %v2927_v9 = vadd.f32 1.0, %v3932_v42 }
0x1824   : > { %v3936_v25 = vpop.eup %3935  ;;  %v2925_v8 = vadd.f32 1.0, %v3934_v44 }
0x1825   : > { %v3938_v45 = vpop.eup %3937  ;;  %v2928_v48 = vadd.f32 1.0, %v3936_v25  ;;  %v2931_v53 = vmul.f32 %v2927_v9, %v2899_v46  ;;  %v3458_v9 = vld [vmem:[%s4747_s26] ss:$0 sm:$0xff] }
0x1826   : > { %v2926_v50 = vadd.f32 1.0, %v3938_v45  ;;  %v2929_v39 = vmul.f32 %v2925_v8, %v2897_v6 }
0x1827   : > { %v2932_v54 = vmul.f32 %v2928_v48, %v2900_v47  ;;  %v3454_v47 = vld [vmem:[%s4745_s24] ss:$0 sm:$0xff] }
0x1828   : > { %v2930_v55 = vmul.f32 %v2926_v50, %v2898_v49 }
0x1829   : > { %v2934_v56 = vpack.c.bf16 %v2932_v54, %v2931_v53 }
0x182a   : > { %v2933_v40 = vpack.c.bf16 %v2930_v55, %v2929_v39 }
0x182c   : > { %3717 = vmatprep.mubr.bf16.mxu1 %v2933_v40 }
0x182d   : > { %3718 = vmatmul.mubr.bf16.vlgmr.msra.gmra.mrb[28].mxu1 %v2934_v56 }
0x1900   : > { %v3719_v58 = vpop.f32.mrb[28].mxu1 }
0x1901   : > { %v3050_v59 = vadd.f32 %v3719_v58, %v3443_v57  ;;  %v3042_v61 = vpop.f32.mrb[29].mxu1 }
0x1902   : > { %v3720_v62 = vpop.f32.mrb[30].mxu1 }
0x1903   : > { %v3056_v63 = vadd.f32 %v3050_v59, %v4620_v15  ;;  %v3044_v1 = vpop.f32.mrb[31].mxu1 }
0x1904   : > { %v3045_v11 = vadd.f32 %v3443_v57, %v3044_v1 }
0x1905   : > { %v3087_v12 = vsel %vm935_vm3, %v3056_v63, 0.0 }
0x1906   : > { %v3055_v14 = vadd.f32 %v3045_v11, %v4617_v13  ;;  %3088 = vadd.xlane.f32.xlu0 %v3087_v12  ;;  %v3815_v13 = vld [vmem:[%s4744_s23] sm:$0xff]  }
0x1907   : > { %3722 = vmatpush3.bf16.msra.mxu0 %v3815_v13 }
0x1908   : > { %v3059_v35 = vsel %vm935_vm3, %v3055_v14, 0.0  ;;  %3723 = vmatprep.subr.bf16.mxu0 %v3988_v0 }
0x1909   : > { %3060 = vadd.xlane.f32.xlu1 %v3059_v35 }
0x190b   : > { %3724 = vmatpush3.bf16.msra.mxu0 %v3816_v22 }
0x190c   : > { %3729 = vmatprep.subr.bf16.mxu0 %v3988_v0 }
0x1993   : > { %v3089_v43 = vpop.xlane.xlu0 %3088 }
0x1994   : > { %v3090_v38 = vmul.f32 0.03125, %v3089_v43 }
0x1996   : > { %v3091_v41 = vsub.f32 %v3056_v63, %v3090_v38  ;;  %v3061_v16 = vpop.xlane.xlu1 %3060 }
0x1997   : > { %v3062_v17 = vmul.f32 0.03125, %v3061_v16 }
0x1998   : > { %v3092_v18 = vmul.f32 %v3091_v41, %v3091_v41 }
0x1999   : > { %v3063_v19 = vsub.f32 %v3055_v14, %v3062_v17 }
0x199a   : > { %v3093_v20 = vsel %vm935_vm3, %v3092_v18, 0.0 }
0x199b   : > { %3094 = vadd.xlane.f32.xlu0 %v3093_v20  ;;  %v3064_v15 = vmul.f32 %v3063_v19, %v3063_v19 }
0x199d   : > { %v3065_v21 = vsel %vm935_vm3, %v3064_v15, 0.0 }
0x199e   : > { %3066 = vadd.xlane.f32.xlu1 %v3065_v21 }
0x1a28   : > { %v3095_v23 = vpop.xlane.xlu0 %3094 }
0x1a29   : > { %v3096_v24 = vmul.f32 0.03125, %v3095_v23 }
0x1a2b   : > { %v3097_v4 = vadd.f32 1e-05, %v3096_v24  ;;  %v3067_v52 = vpop.xlane.xlu1 %3066 }
0x1a2c   : > { %v3068_v51 = vmul.f32 0.03125, %v3067_v52 }
0x1a2d   : > { %3939 = vrsqrt.f32 %v3097_v4 }
0x1a2e   : > { %v3069_v2 = vadd.f32 1e-05, %v3068_v51 }
0x1a30   : > { %3941 = vrsqrt.f32 %v3069_v2 }
0x1a37   : > { %v3940_v10 = vpop.eup %3939 }
0x1a38   : > { %v3099_v31 = vmul.f32 %v3940_v10, %v3091_v41 }
0x1a3a   : > { %v3942_v29 = vpop.eup %3941  ;;  %v3100_v60 = vmul.f32 %v3452_v27, %v3099_v31 }
0x1a3b   : > { %v3071_v5 = vmul.f32 %v3942_v29, %v3063_v19 }
0x1a3c   : > { %v3101_v33 = vadd.f32 %v3453_v7, %v3100_v60 }
0x1a3d   : > { %v3078_v3 = vmul.f32 %v3452_v27, %v3071_v5 }
0x1a3e   : > { %v3102_v28 = vpack.c.bf16 %v3101_v33, %v3101_v33 }
0x1a3f   : > { %v3085_v32 = vadd.f32 %v3453_v7, %v3078_v3 }
0x1a40   : > { %3726 = vmatmul.mubr.msk.bf16.vlgmr.msra.gmra.mrb[36].mxu0 %vm935_vm3, %v3102_v28 }
0x1a41   : > { %3730 = vmatpush3.bf16.msra.mxu0 %v3817_v26  ;;  %3733 = vmatprep.mubr.msk.bf16.mxu0 %vm3989_vm0, %v3988_v0  ;;  %v3086_v34 = vpack.c.bf16 %v3085_v32, %v3085_v32 }
0x1a42   : > { %3731 = vmatprep.subr.bf16.mxu0 %v3988_v0 }
0x1a45   : > { %3732 = vmatpush3.bf16.msra.mxu0 %v3818_v30 }
0x1a48   : > { %3734 = vmatmul.mubr.msk.bf16.vlgmr.msra.gmra.mrb[40].mxu0 %vm935_vm3, %v3086_v34 }
0x1b13   : > { %v3163_v36 = vpop.f32.mrb[36].mxu0 }
0x1b14   : > { %v3727_v37 = vpop.f32.mrb[37].mxu0  ;;  %v3164_v48 = vadd.f32 %v3454_v47, %v3163_v36 }
0x1b15   : > { %v3166_v42 = vpop.f32.mrb[38].mxu0 }
0x1b16   : > { %v3728_v44 = vpop.f32.mrb[39].mxu0 }
0x1b1b   : > { %v3229_v25 = vpop.f32.mrb[40].mxu0 }
0x1b1c   : > { %v3230_v8 = vadd.f32 %v3458_v9, %v3229_v25  ;;  %v3735_v45 = vpop.f32.mrb[41].mxu0 }
0x1b1d   : > { %v3232_v46 = vpop.f32.mrb[42].mxu0 }
0x1b1e   : > { %3943 = vtanh.f32 %v3230_v8  ;;  %v3736_v0 = vpop.f32.mrb[43].mxu0 }
0x1b28   : > { %v3944_v6 = vpop.eup %3943 }
0x1b29   : > { %v3236_v49 = vadd.f32 %v3944_v6, %v3164_v48 }
0x1b2b   : > { %3237 = vst [vmem:[%s859_s3] sm:$0xff] %v3236_v49 }
0x1b2c PF: > { %s38_s7 = sadd.s32 1, %s3983_s7  }
0x1b2d   : > { %p35_p3 = scmp.ge.s32.totalorder %s38_s7, 4  }
0x1b2f   :  { %37 = sbr.rel (!%p35_p3) target bundleno = 14 (0xe), region = 181 }
0x1b36   :  { %3257 = vsyncpa [#allocation3], 1 }
0x1b37   :  { %3259 = vsyncpa [#allocation3 + $0x1], 1 }

</bundles_post_ra>
